<compile_context>
chip_gen: v7x
topology: tpu7x:2x2x1
jax: 0.10.0
libtpu: 0.0.40
codegen_flags: <defaults>
</compile_context>

<pallas_src>
import math
import functools

import numpy as np
import jax
import jax.numpy as jnp
from jax.experimental import pallas as pl
from jax.experimental.pallas import tpu as pltpu

_LN_EPS = 1e-5        # PyTorch nn.LayerNorm default
_LANE = 128


# ------------------------------ in-kernel helpers ------------------------------

def _dot(a, b):
    return jnp.dot(a, b, preferred_element_type=jnp.float32)


def _att_scores(q, k):   # (B, Tq, Dh) x (B, Tk, Dh) -> (B, Tq, Tk)
    return jnp.einsum('bqd,bkd->bqk', q, k, preferred_element_type=jnp.float32)


def _att_apply(p, v):    # (B, Tq, Tk) x (B, Tk, Dh) -> (B, Tq, Dh)
    return jnp.einsum('bqk,bkd->bqd', p, v, preferred_element_type=jnp.float32)


def _softmax(s):
    m = jnp.max(s, axis=-1, keepdims=True)
    p = jnp.exp(s - m)
    return p * pl.reciprocal(jnp.sum(p, axis=-1, keepdims=True), approx=True)


def _layernorm(x, g, b):
    mu = jnp.mean(x, axis=-1, keepdims=True)
    xc = x - mu
    var = jnp.mean(xc * xc, axis=-1, keepdims=True)      # biased var (PyTorch LN)
    return xc * jax.lax.rsqrt(var + _LN_EPS) * g + b


# ------------------------------ fused forward kernel ----------------------------

def _fused_forward_kernel(src_ref, labels_ref, ari_ref, w_ref, r_ref, out_ref,
                          *, S, B, N, E, nhead, nlayers, wcol, rrow):
    Dh = E // nhead
    scale = 1.0 / math.sqrt(Dh)

    def W(name):                      # (E, nc) weight slice, lane-aligned start
        c0, nc = wcol[name]
        return w_ref[:, c0:c0 + nc]

    def R(name):                      # (nr, nc) row-parameter slice
        r0, nr, nc = rrow[name]
        return r_ref[r0:r0 + nr, 0:nc]

    fc1_w = R("fc1_w")                                    # (1, E)
    fc1_b = R("fc1_b")                                    # (1, E)
    pe = R("pe")                                          # (S, E)

    # ---- fc_1 (K=1 -> broadcast mul-add) + positional encoding (dropout = id) ----
    sv = src_ref[...]                                     # (S, B)
    x = jnp.concatenate(
        [sv[:, b:b + 1] * fc1_w + fc1_b + pe for b in range(B)], axis=0)  # (B*S, E)
    y = labels_ref[...] * fc1_w + fc1_b + pe[0:1, :]      # (N, E); target T == 1

    # ---- encoder stack ----
    for l in range(nlayers):
        qkv = _dot(x, W(f"enc_wqkv_{l}")) + R(f"enc_bqkv_{l}")      # (B*S, 3E)
        q3 = qkv[:, 0:E].reshape(B, S, E)
        k3 = qkv[:, E:2 * E].reshape(B, S, E)
        v3 = qkv[:, 2 * E:3 * E].reshape(B, S, E)
        heads = []
        for h in range(nhead):
            sl = slice(h * Dh, (h + 1) * Dh)
            s = _att_scores(q3[:, :, sl], k3[:, :, sl]) * scale      # (B, S, S)
            heads.append(_att_apply(_softmax(s), v3[:, :, sl]))      # (B, S, Dh)
        attn = jnp.concatenate(heads, axis=-1).reshape(B * S, E)
        a = _dot(attn, W(f"enc_wo_{l}")) + R(f"enc_bo_{l}")
        x = _layernorm(x + a, R(f"enc_g1_{l}"), R(f"enc_be1_{l}"))
        ff = jnp.maximum(_dot(x, W(f"enc_w1_{l}")) + R(f"enc_b1_{l}"), 0.0)
        ff = _dot(ff, W(f"enc_w2_{l}")) + R(f"enc_b2_{l}")
        x = _layernorm(x + ff, R(f"enc_g2_{l}"), R(f"enc_be2_{l}"))
    memory = x                                            # (B*S, E)

    # ---- cross-attention K/V for ALL decoder layers (memory is layer-invariant) ----
    kv_all = _dot(memory, W("dec_wkvc_all")) + R("dec_bkvc_all")     # (B*S, 2E*nlayers)
    kv3 = kv_all.reshape(B, S, 2 * E * nlayers)

    # ---- decoder stack (target sequence length == 1) ----
    for l in range(nlayers):
        # Masked self-attention over a length-1 sequence is the V projection;
        # Wv @ Wout and its biases were pre-fused into dec_wsa / dec_bsa.
        sa = _dot(y, W(f"dec_wsa_{l}")) + R(f"dec_bsa_{l}")
        y = _layernorm(y + sa, R(f"dec_g1_{l}"), R(f"dec_be1_{l}"))

        # Cross-attention against the encoder memory.
        q3 = (_dot(y, W(f"dec_wqc_{l}")) + R(f"dec_bqc_{l}")).reshape(N, 1, E)
        base = l * 2 * E
        heads = []
        for h in range(nhead):
            kh = kv3[:, :, base + h * Dh: base + (h + 1) * Dh]       # (B, S, Dh)
            vh = kv3[:, :, base + E + h * Dh: base + E + (h + 1) * Dh]
            s = _att_scores(q3[:, :, h * Dh:(h + 1) * Dh], kh) * scale   # (N, 1, S)
            heads.append(_att_apply(_softmax(s), vh))                    # (N, 1, Dh)
        ctx = jnp.concatenate(heads, axis=-1).reshape(N, E)
        a = _dot(ctx, W(f"dec_woc_{l}")) + R(f"dec_boc_{l}")
        y = _layernorm(y + a, R(f"dec_g2_{l}"), R(f"dec_be2_{l}"))

        # Feed-forward.
        ff = jnp.maximum(_dot(y, W(f"dec_w1_{l}")) + R(f"dec_b1_{l}"), 0.0)
        ff = _dot(ff, W(f"dec_w2_{l}")) + R(f"dec_b2_{l}")
        y = _layernorm(y + ff, R(f"dec_g3_{l}"), R(f"dec_be3_{l}"))

    # ---- output head: fc_2, concat with ari_res, esm linears (out_dim == 1) ----
    out = jnp.sum(y * R("fc2_wT"), axis=-1, keepdims=True) + R("fc2_b")    # (N, 1)
    e1_w = R("e1_w")                                                       # (2, LH)
    h1 = out * e1_w[0:1, :] + ari_ref[...] * e1_w[1:2, :] + R("e1_b")      # (N, LH)
    pred = jnp.sum(h1 * R("e2_wT"), axis=-1, keepdims=True) + R("e2_b")    # (N, 1)
    out_ref[...] = pred


# ------------------------------- parameter packing -------------------------------

def pack_params(params, *, nhead, nlayers, S):
    """Packs every weight/bias into two flat VMEM-friendly buffers (host side).

    Returns (wbuf, rbuf, wcol, rrow, meta):
      wbuf : (E, n_cols) f32  -- every (E, .) weight matrix, each starting at a
             128-lane-aligned column (static lane-aligned slices in-kernel).
      rbuf : (n_rows, 128) f32 -- biases, LayerNorm params, PE rows, transposed
             1-column weights; one parameter per (few) row(s).
      wcol : name -> (col_start, n_cols);  rrow : name -> (row_start, n_rows, n_cols)
    """
    P = {k: np.asarray(v, np.float32) for k, v in params.items()}
    E = P["fc1_w"].shape[1]
    out_dim = P["fc2_w"].shape[1]
    LH = P["e1_w"].shape[1]
    assert out_dim == 1, "concat([fc_2(out), ari_res]) requires out_dim == 1"
    assert E % nhead == 0

    # ---- (E, .) weight matrices -> lane-aligned slots in one wide buffer ----
    wcol, wchunks = {}, []
    col = 0

    def add_w(name, mat):
        nonlocal col
        mat = np.asarray(mat, np.float32)
        assert mat.shape[0] == E
        wcol[name] = (col, mat.shape[1])
        wchunks.append((col, mat))
        col += ((mat.shape[1] + _LANE - 1) // _LANE) * _LANE

    for l in range(nlayers):
        add_w(f"enc_wqkv_{l}", P["enc_wqkv"][l])
        add_w(f"enc_wo_{l}", P["enc_wo"][l])
        add_w(f"enc_w1_{l}", P["enc_w1"][l])
        add_w(f"enc_w2_{l}", P["enc_w2"][l])
    for l in range(nlayers):
        # T==1 decoder self-attention == V projection; fuse Wv @ Wout.
        wv = P["dec_wqkv"][l][:, 2 * E:3 * E]
        add_w(f"dec_wsa_{l}", wv @ P["dec_wos"][l])
        add_w(f"dec_wqc_{l}", P["dec_wqc"][l])
        add_w(f"dec_woc_{l}", P["dec_woc"][l])
        add_w(f"dec_w1_{l}", P["dec_w1"][l])
        add_w(f"dec_w2_{l}", P["dec_w2"][l])
    # Cross-attention K/V weights for all layers, concatenated along the output dim.
    add_w("dec_wkvc_all",
          np.concatenate([P["dec_wkvc"][l] for l in range(nlayers)], axis=1))

    wbuf = np.zeros((E, col), np.float32)
    for c0, mat in wchunks:
        wbuf[:, c0:c0 + mat.shape[1]] = mat

    # ---- row-shaped parameters ----
    rrow, rchunks = {}, []
    row = 0

    def add_r(name, mat):
        nonlocal row
        mat = np.asarray(mat, np.float32)
        if mat.ndim == 1:
            mat = mat[None, :]
        rrow[name] = (row, mat.shape[0], mat.shape[1])
        rchunks.append((row, mat))
        row += mat.shape[0]

    add_r("pe", P["pe"][:S])                      # rows 0..S-1 (sublane-aligned)
    add_r("fc1_w", P["fc1_w"])
    add_r("fc1_b", P["fc1_b"])
    add_r("fc2_wT", P["fc2_w"].T)
    add_r("fc2_b", P["fc2_b"])
    add_r("e1_w", P["e1_w"])                      # (2, LH): rows = [w_out, w_ari]
    add_r("e1_b", P["e1_b"])
    add_r("e2_wT", P["e2_w"].T)
    add_r("e2_b", P["e2_b"])
    add_r("dec_bkvc_all",
          np.concatenate([P["dec_bkvc"][l] for l in range(nlayers)], axis=1))
    for l in range(nlayers):
        add_r(f"enc_bqkv_{l}", P["enc_bqkv"][l])
        add_r(f"enc_bo_{l}", P["enc_bo"][l])
        add_r(f"enc_b1_{l}", P["enc_b1"][l])
        add_r(f"enc_b2_{l}", P["enc_b2"][l])
        add_r(f"enc_g1_{l}", P["enc_g1"][l])
        add_r(f"enc_be1_{l}", P["enc_be1"][l])
        add_r(f"enc_g2_{l}", P["enc_g2"][l])
        add_r(f"enc_be2_{l}", P["enc_be2"][l])
    for l in range(nlayers):
        bv = P["dec_bqkv"][l][:, 2 * E:3 * E]
        add_r(f"dec_bsa_{l}", bv @ P["dec_wos"][l] + P["dec_bos"][l])
        add_r(f"dec_bqc_{l}", P["dec_bqc"][l])
        add_r(f"dec_boc_{l}", P["dec_boc"][l])
        add_r(f"dec_b1_{l}", P["dec_b1"][l])
        add_r(f"dec_b2_{l}", P["dec_b2"][l])
        add_r(f"dec_g1_{l}", P["dec_g1"][l])
        add_r(f"dec_be1_{l}", P["dec_be1"][l])
        add_r(f"dec_g2_{l}", P["dec_g2"][l])
        add_r(f"dec_be2_{l}", P["dec_be2"][l])
        add_r(f"dec_g3_{l}", P["dec_g3"][l])
        add_r(f"dec_be3_{l}", P["dec_be3"][l])

    width = max(_LANE, max(((m.shape[1] + _LANE - 1) // _LANE) * _LANE
                           for _, m in rchunks))
    nrows = ((row + 7) // 8) * 8
    rbuf = np.zeros((nrows, width), np.float32)
    for r0, mat in rchunks:
        rbuf[r0:r0 + mat.shape[0], :mat.shape[1]] = mat

    meta = dict(E=E, LH=LH, out_dim=out_dim)
    return jnp.asarray(wbuf), jnp.asarray(rbuf), wcol, rrow, meta


# ---------------------------------- wrapper -------------------------------------

def make_esm_forward(wbuf, rbuf, wcol, rrow, meta, *, S, B, nhead, nlayers):
    E = meta["E"]
    N = B     # decoder batch (= len(labels)) must equal encoder batch

    kernel = functools.partial(
        _fused_forward_kernel, S=S, B=B, N=N, E=E, nhead=nhead, nlayers=nlayers,
        wcol=wcol, rrow=rrow)

    def zmap(nd):
        return lambda i: (0,) * nd

    call = pl.pallas_call(
        kernel,
        out_shape=jax.ShapeDtypeStruct((N, 1), jnp.float32),
        grid=(1,),
        in_specs=[
            pl.BlockSpec((S, B), zmap(2)),                 # src (seq-major 2-D)
            pl.BlockSpec((N, 1), zmap(2)),                 # labels
            pl.BlockSpec((N, 1), zmap(2)),                 # ari_res
            pl.BlockSpec(tuple(wbuf.shape), zmap(2)),      # packed weight matrices
            pl.BlockSpec(tuple(rbuf.shape), zmap(2)),      # packed row params
        ],
        out_specs=pl.BlockSpec((N, 1), zmap(2)),
        compiler_params=pltpu.CompilerParams(
            dimension_semantics=("arbitrary",)),
    )

    def forward(wbuf, rbuf, src, labels, ari_res):
        # Metadata-only reshapes (no transpose / extra HBM traffic per call).
        return call(src.reshape(S, B), labels.reshape(N, 1),
                    ari_res.reshape(N, 1), wbuf, rbuf)

    return jax.jit(forward)


# ---------------------------------- parameters ----------------------------------

def make_pe(d_model, max_len=100):
    position = np.arange(max_len, dtype=np.float32)[:, None]
    div_term = np.exp(np.arange(0, d_model, 2, dtype=np.float32)
                      * (-math.log(10000.0) / d_model))
    pe = np.zeros((max_len, d_model), np.float32)
    pe[:, 0::2] = np.sin(position * div_term)
    pe[:, 1::2] = np.cos(position * div_term)       # d_model is even here
    return pe                                       # (max_len, d_model)


def init_params(key, hidden_dim, nhid, out_dim, linear_hidden, nlayers):
    E, F = hidden_dim, nhid
    keys = iter(jax.random.split(key, 4096))

    def dense(din, dout, scale=0.05):
        w = jax.random.normal(next(keys), (din, dout), jnp.float32) * scale
        b = jax.random.normal(next(keys), (1, dout), jnp.float32) * scale
        return w, b

    def stacked(din, dout):
        ws, bs = zip(*(dense(din, dout) for _ in range(nlayers)))
        return jnp.stack(ws), jnp.stack(bs)

    ln_g = jnp.ones((nlayers, 1, E), jnp.float32)
    ln_b = jnp.zeros((nlayers, 1, E), jnp.float32)

    p = {}
    p["fc1_w"], p["fc1_b"] = dense(1, E)
    p["fc2_w"], p["fc2_b"] = dense(E, out_dim)
    p["e1_w"], p["e1_b"] = dense(2 * out_dim, linear_hidden)
    p["e2_w"], p["e2_b"] = dense(linear_hidden, out_dim)

    p["enc_wqkv"], p["enc_bqkv"] = stacked(E, 3 * E)
    p["enc_wo"], p["enc_bo"] = stacked(E, E)
    p["enc_w1"], p["enc_b1"] = stacked(E, F)
    p["enc_w2"], p["enc_b2"] = stacked(F, E)
    p["enc_g1"], p["enc_be1"] = ln_g, ln_b
    p["enc_g2"], p["enc_be2"] = ln_g, ln_b

    p["dec_wqkv"], p["dec_bqkv"] = stacked(E, 3 * E)
    p["dec_wos"], p["dec_bos"] = stacked(E, E)
    p["dec_wqc"], p["dec_bqc"] = stacked(E, E)
    p["dec_wkvc"], p["dec_bkvc"] = stacked(E, 2 * E)
    p["dec_woc"], p["dec_boc"] = stacked(E, E)
    p["dec_w1"], p["dec_b1"] = stacked(E, F)
    p["dec_w2"], p["dec_b2"] = stacked(F, E)
    p["dec_g1"], p["dec_be1"] = ln_g, ln_b
    p["dec_g2"], p["dec_be2"] = ln_g, ln_b
    p["dec_g3"], p["dec_be3"] = ln_g, ln_b

    p["pe"] = make_pe(E)
    return p


# ------------------------------------ main ---------------------------------------

if __name__ == "__main__":
    # args: hidden_dim=32, out_dim=1 (the concat with ari_res requires it),
    # num_layers=2, linear_hidden=16, nhead=2 (fixed by the module).
    hidden_dim, out_dim, num_layers, linear_hidden, nhead = 32, 1, 2, 16, 2
    S, B = 8, 2   # src sequence length, batch (= number of labels)

    key = jax.random.PRNGKey(0)
    k_src, k_lab, k_ari, k_par = jax.random.split(key, 4)

    src = jax.random.normal(k_src, (S, B, 1), jnp.float32)
    labels = jax.random.normal(k_lab, (B,), jnp.float32)
    # emulate: ari_res is a list of numpy arrays that vstack to (B*out_dim, 1)
    ari_np = np.asarray(jax.random.normal(k_ari, (B, 1), jnp.float32))
    ari_res = jnp.asarray(np.vstack([ari_np[i:i + 1] for i in range(B)]).reshape(-1, 1))

    params = init_params(k_par, hidden_dim, hidden_dim, out_dim,
                         linear_hidden, num_layers)
    wbuf, rbuf, wcol, rrow, meta = pack_params(params, nhead=nhead,
                                               nlayers=num_layers, S=S)

    fwd = make_esm_forward(wbuf, rbuf, wcol, rrow, meta,
                           S=S, B=B, nhead=nhead, nlayers=num_layers)
    esm_pred = jax.block_until_ready(fwd(wbuf, rbuf, src, labels, ari_res))

    assert esm_pred.shape == (B * out_dim, out_dim), esm_pred.shape
    assert bool(jnp.all(jnp.isfinite(esm_pred)))
    print("KERNEL_OK")
</pallas_src>

<mosaic_0001>
module attributes {stable_mosaic.version = 11 : i64} {
  func.func @_fused_forward_kernel(%arg0: i32, %arg1: memref<8x2xf32, #tpu.memory_space<vmem>>, %arg2: memref<2x1xf32, #tpu.memory_space<vmem>>, %arg3: memref<2x1xf32, #tpu.memory_space<vmem>>, %arg4: memref<32x2432xf32, #tpu.memory_space<vmem>>, %arg5: memref<56x128xf32, #tpu.memory_space<vmem>>, %arg6: memref<2x1xf32, #tpu.memory_space<vmem>>) attributes {dimension_semantics = [#tpu.dimension_semantics<arbitrary>], iteration_bounds = array<i64: 1>, scalar_prefetch = 0 : i64, scratch_operands = 0 : i64, tpu.core_type = #tpu.core_type<tc>, window_params = [{pipeline_mode = #tpu.pipeline_mode<synchronous>, transform_indices = @transform_0, window_bounds = array<i64: 8, 2>}, {pipeline_mode = #tpu.pipeline_mode<synchronous>, transform_indices = @transform_1, window_bounds = array<i64: 2, 1>}, {pipeline_mode = #tpu.pipeline_mode<synchronous>, transform_indices = @transform_2, window_bounds = array<i64: 2, 1>}, {pipeline_mode = #tpu.pipeline_mode<synchronous>, transform_indices = @transform_3, window_bounds = array<i64: 32, 2432>}, {pipeline_mode = #tpu.pipeline_mode<synchronous>, transform_indices = @transform_4, window_bounds = array<i64: 56, 128>}, {pipeline_mode = #tpu.pipeline_mode<synchronous>, transform_indices = @transform_5, window_bounds = array<i64: 2, 1>}]} {
    %c8 = arith.constant 8 : index
    %c0 = arith.constant 0 : index
    %0 = vector.load %arg5[%c8, %c0] : memref<56x128xf32, #tpu.memory_space<vmem>>, vector<1x32xf32>
    %c9 = arith.constant 9 : index
    %c0_0 = arith.constant 0 : index
    %1 = vector.load %arg5[%c9, %c0_0] : memref<56x128xf32, #tpu.memory_space<vmem>>, vector<1x32xf32>
    %c0_1 = arith.constant 0 : index
    %c0_2 = arith.constant 0 : index
    %2 = vector.load %arg5[%c0_1, %c0_2] : memref<56x128xf32, #tpu.memory_space<vmem>>, vector<8x32xf32>
    %c0_3 = arith.constant 0 : index
    %c0_4 = arith.constant 0 : index
    %3 = vector.load %arg1[%c0_3, %c0_4] : memref<8x2xf32, #tpu.memory_space<vmem>>, vector<8x2xf32>
    %4 = vector.extract_strided_slice %3 {offsets = [0, 0], sizes = [8, 1], strides = [1, 1]} : vector<8x2xf32> to vector<8x1xf32>
    %5 = vector.broadcast %4 : vector<8x1xf32> to vector<8x32xf32>
    %6 = vector.broadcast %0 : vector<1x32xf32> to vector<8x32xf32>
    %7 = arith.mulf %5, %6 : vector<8x32xf32>
    %8 = vector.broadcast %1 : vector<1x32xf32> to vector<8x32xf32>
    %9 = arith.addf %7, %8 : vector<8x32xf32>
    %10 = arith.addf %9, %2 : vector<8x32xf32>
    %11 = vector.extract_strided_slice %3 {offsets = [0, 1], sizes = [8, 1], strides = [1, 1]} : vector<8x2xf32> to vector<8x1xf32>
    %12 = vector.broadcast %11 : vector<8x1xf32> to vector<8x32xf32>
    %13 = vector.broadcast %0 : vector<1x32xf32> to vector<8x32xf32>
    %14 = arith.mulf %12, %13 : vector<8x32xf32>
    %15 = vector.broadcast %1 : vector<1x32xf32> to vector<8x32xf32>
    %16 = arith.addf %14, %15 : vector<8x32xf32>
    %17 = arith.addf %16, %2 : vector<8x32xf32>
    %18 = tpu.concatenate %10, %17 in 0 : vector<8x32xf32>, vector<8x32xf32> -> vector<16x32xf32>
    %c0_5 = arith.constant 0 : index
    %c0_6 = arith.constant 0 : index
    %19 = vector.load %arg2[%c0_5, %c0_6] : memref<2x1xf32, #tpu.memory_space<vmem>>, vector<2x1xf32>
    %20 = vector.broadcast %19 : vector<2x1xf32> to vector<2x32xf32>
    %21 = vector.broadcast %0 : vector<1x32xf32> to vector<2x32xf32>
    %22 = arith.mulf %20, %21 : vector<2x32xf32>
    %23 = vector.broadcast %1 : vector<1x32xf32> to vector<2x32xf32>
    %24 = arith.addf %22, %23 : vector<2x32xf32>
    %25 = vector.extract_strided_slice %2 {offsets = [0, 0], sizes = [1, 32], strides = [1, 1]} : vector<8x32xf32> to vector<1x32xf32>
    %26 = vector.broadcast %25 : vector<1x32xf32> to vector<2x32xf32>
    %27 = arith.addf %24, %26 : vector<2x32xf32>
    %c0_7 = arith.constant 0 : index
    %c0_8 = arith.constant 0 : index
    %28 = vector.load %arg4[%c0_7, %c0_8] : memref<32x2432xf32, #tpu.memory_space<vmem>>, vector<32x96xf32>
    %cst = arith.constant dense<0.000000e+00> : vector<16x96xf32>
    %29 = tpu.matmul %18, %28, %cst {dimension_numbers = #tpu.dot_dimension_numbers<[1], [0], [0], [1], [0, 0, 1, 1], [], []>} : vector<16x32xf32>, vector<32x96xf32>, vector<16x96xf32> -> vector<16x96xf32>
    %c18 = arith.constant 18 : index
    %c0_9 = arith.constant 0 : index
    %30 = vector.load %arg5[%c18, %c0_9] : memref<56x128xf32, #tpu.memory_space<vmem>>, vector<1x96xf32>
    %31 = vector.broadcast %30 : vector<1x96xf32> to vector<16x96xf32>
    %32 = arith.addf %29, %31 : vector<16x96xf32>
    %33 = vector.extract_strided_slice %32 {offsets = [0, 0], sizes = [16, 32], strides = [1, 1]} : vector<16x96xf32> to vector<16x32xf32>
    %34 = vector.shape_cast %33 : vector<16x32xf32> to vector<2x8x32xf32>
    %35 = vector.extract_strided_slice %32 {offsets = [0, 32], sizes = [16, 32], strides = [1, 1]} : vector<16x96xf32> to vector<16x32xf32>
    %36 = vector.shape_cast %35 : vector<16x32xf32> to vector<2x8x32xf32>
    %37 = vector.extract_strided_slice %32 {offsets = [0, 64], sizes = [16, 32], strides = [1, 1]} : vector<16x96xf32> to vector<16x32xf32>
    %38 = vector.shape_cast %37 : vector<16x32xf32> to vector<2x8x32xf32>
    %39 = vector.extract_strided_slice %34 {offsets = [0, 0, 0], sizes = [2, 8, 16], strides = [1, 1, 1]} : vector<2x8x32xf32> to vector<2x8x16xf32>
    %40 = vector.extract_strided_slice %36 {offsets = [0, 0, 0], sizes = [2, 8, 16], strides = [1, 1, 1]} : vector<2x8x32xf32> to vector<2x8x16xf32>
    "tpu.trace_start"() <{level = 10 : i32, message = "bqd,bkd->bqk"}> : () -> ()
    %cst_10 = arith.constant dense<0.000000e+00> : vector<2x8x8xf32>
    %41 = tpu.matmul %39, %40, %cst_10 {dimension_numbers = #tpu.dot_dimension_numbers<[2], [2], [1], [1], [0, 0, 0, 1, 1, 1], [0], [0]>} : vector<2x8x16xf32>, vector<2x8x16xf32>, vector<2x8x8xf32> -> vector<2x8x8xf32>
    "tpu.trace_stop"() : () -> ()
    %cst_11 = arith.constant 2.500000e-01 : f32
    %42 = vector.broadcast %cst_11 : f32 to vector<2x8x8xf32>
    %43 = arith.mulf %41, %42 : vector<2x8x8xf32>
    %cst_12 = arith.constant dense<0xFF800000> : vector<2x8xf32>
    %44 = vector.multi_reduction <maximumf>, %43, %cst_12 [2] : vector<2x8x8xf32> to vector<2x8xf32>
    %45 = vector.shape_cast %44 : vector<2x8xf32> to vector<2x8x1xf32>
    %46 = vector.broadcast %45 : vector<2x8x1xf32> to vector<2x8x8xf32>
    %47 = arith.subf %43, %46 : vector<2x8x8xf32>
    %48 = math.exp %47 : vector<2x8x8xf32>
    %cst_13 = arith.constant dense<0.000000e+00> : vector<2x8xf32>
    %49 = vector.multi_reduction <add>, %48, %cst_13 [2] : vector<2x8x8xf32> to vector<2x8xf32>
    %50 = vector.shape_cast %49 : vector<2x8xf32> to vector<2x8x1xf32>
    %51 = tpu.reciprocal %50 {approx = true} : vector<2x8x1xf32> -> vector<2x8x1xf32>
    %52 = vector.broadcast %51 : vector<2x8x1xf32> to vector<2x8x8xf32>
    %53 = arith.mulf %48, %52 : vector<2x8x8xf32>
    %54 = vector.extract_strided_slice %38 {offsets = [0, 0, 0], sizes = [2, 8, 16], strides = [1, 1, 1]} : vector<2x8x32xf32> to vector<2x8x16xf32>
    "tpu.trace_start"() <{level = 10 : i32, message = "bqk,bkd->bqd"}> : () -> ()
    %cst_14 = arith.constant dense<0.000000e+00> : vector<2x8x16xf32>
    %55 = tpu.matmul %53, %54, %cst_14 {dimension_numbers = #tpu.dot_dimension_numbers<[2], [1], [1], [2], [0, 0, 0, 1, 1, 2], [0], [0]>} : vector<2x8x8xf32>, vector<2x8x16xf32>, vector<2x8x16xf32> -> vector<2x8x16xf32>
    "tpu.trace_stop"() : () -> ()
    %56 = vector.extract_strided_slice %34 {offsets = [0, 0, 16], sizes = [2, 8, 16], strides = [1, 1, 1]} : vector<2x8x32xf32> to vector<2x8x16xf32>
    %57 = vector.extract_strided_slice %36 {offsets = [0, 0, 16], sizes = [2, 8, 16], strides = [1, 1, 1]} : vector<2x8x32xf32> to vector<2x8x16xf32>
    "tpu.trace_start"() <{level = 10 : i32, message = "bqd,bkd->bqk"}> : () -> ()
    %cst_15 = arith.constant dense<0.000000e+00> : vector<2x8x8xf32>
    %58 = tpu.matmul %56, %57, %cst_15 {dimension_numbers = #tpu.dot_dimension_numbers<[2], [2], [1], [1], [0, 0, 0, 1, 1, 1], [0], [0]>} : vector<2x8x16xf32>, vector<2x8x16xf32>, vector<2x8x8xf32> -> vector<2x8x8xf32>
    "tpu.trace_stop"() : () -> ()
    %cst_16 = arith.constant 2.500000e-01 : f32
    %59 = vector.broadcast %cst_16 : f32 to vector<2x8x8xf32>
    %60 = arith.mulf %58, %59 : vector<2x8x8xf32>
    %cst_17 = arith.constant dense<0xFF800000> : vector<2x8xf32>
    %61 = vector.multi_reduction <maximumf>, %60, %cst_17 [2] : vector<2x8x8xf32> to vector<2x8xf32>
    %62 = vector.shape_cast %61 : vector<2x8xf32> to vector<2x8x1xf32>
    %63 = vector.broadcast %62 : vector<2x8x1xf32> to vector<2x8x8xf32>
    %64 = arith.subf %60, %63 : vector<2x8x8xf32>
    %65 = math.exp %64 : vector<2x8x8xf32>
    %cst_18 = arith.constant dense<0.000000e+00> : vector<2x8xf32>
    %66 = vector.multi_reduction <add>, %65, %cst_18 [2] : vector<2x8x8xf32> to vector<2x8xf32>
    %67 = vector.shape_cast %66 : vector<2x8xf32> to vector<2x8x1xf32>
    %68 = tpu.reciprocal %67 {approx = true} : vector<2x8x1xf32> -> vector<2x8x1xf32>
    %69 = vector.broadcast %68 : vector<2x8x1xf32> to vector<2x8x8xf32>
    %70 = arith.mulf %65, %69 : vector<2x8x8xf32>
    %71 = vector.extract_strided_slice %38 {offsets = [0, 0, 16], sizes = [2, 8, 16], strides = [1, 1, 1]} : vector<2x8x32xf32> to vector<2x8x16xf32>
    "tpu.trace_start"() <{level = 10 : i32, message = "bqk,bkd->bqd"}> : () -> ()
    %cst_19 = arith.constant dense<0.000000e+00> : vector<2x8x16xf32>
    %72 = tpu.matmul %70, %71, %cst_19 {dimension_numbers = #tpu.dot_dimension_numbers<[2], [1], [1], [2], [0, 0, 0, 1, 1, 2], [0], [0]>} : vector<2x8x8xf32>, vector<2x8x16xf32>, vector<2x8x16xf32> -> vector<2x8x16xf32>
    "tpu.trace_stop"() : () -> ()
    %73 = tpu.concatenate %55, %72 in 2 : vector<2x8x16xf32>, vector<2x8x16xf32> -> vector<2x8x32xf32>
    %74 = vector.shape_cast %73 : vector<2x8x32xf32> to vector<16x32xf32>
    %c0_20 = arith.constant 0 : index
    %c128 = arith.constant 128 : index
    %75 = vector.load %arg4[%c0_20, %c128] : memref<32x2432xf32, #tpu.memory_space<vmem>>, vector<32x32xf32>
    %cst_21 = arith.constant dense<0.000000e+00> : vector<16x32xf32>
    %76 = tpu.matmul %74, %75, %cst_21 {dimension_numbers = #tpu.dot_dimension_numbers<[1], [0], [0], [1], [0, 0, 1, 1], [], []>} : vector<16x32xf32>, vector<32x32xf32>, vector<16x32xf32> -> vector<16x32xf32>
    %c19 = arith.constant 19 : index
    %c0_22 = arith.constant 0 : index
    %77 = vector.load %arg5[%c19, %c0_22] : memref<56x128xf32, #tpu.memory_space<vmem>>, vector<1x32xf32>
    %78 = vector.broadcast %77 : vector<1x32xf32> to vector<16x32xf32>
    %79 = arith.addf %76, %78 : vector<16x32xf32>
    %80 = arith.addf %18, %79 : vector<16x32xf32>
    %c22 = arith.constant 22 : index
    %c0_23 = arith.constant 0 : index
    %81 = vector.load %arg5[%c22, %c0_23] : memref<56x128xf32, #tpu.memory_space<vmem>>, vector<1x32xf32>
    %c23 = arith.constant 23 : index
    %c0_24 = arith.constant 0 : index
    %82 = vector.load %arg5[%c23, %c0_24] : memref<56x128xf32, #tpu.memory_space<vmem>>, vector<1x32xf32>
    %cst_25 = arith.constant dense<0.000000e+00> : vector<16xf32>
    %83 = vector.multi_reduction <add>, %80, %cst_25 [1] : vector<16x32xf32> to vector<16xf32>
    %84 = vector.shape_cast %83 : vector<16xf32> to vector<16x1xf32>
    %cst_26 = arith.constant 3.200000e+01 : f32
    %85 = vector.broadcast %cst_26 : f32 to vector<16x1xf32>
    %86 = arith.divf %84, %85 : vector<16x1xf32>
    %87 = vector.broadcast %86 : vector<16x1xf32> to vector<16x32xf32>
    %88 = arith.subf %80, %87 : vector<16x32xf32>
    %89 = arith.mulf %88, %88 : vector<16x32xf32>
    %cst_27 = arith.constant dense<0.000000e+00> : vector<16xf32>
    %90 = vector.multi_reduction <add>, %89, %cst_27 [1] : vector<16x32xf32> to vector<16xf32>
    %91 = vector.shape_cast %90 : vector<16xf32> to vector<16x1xf32>
    %cst_28 = arith.constant 3.200000e+01 : f32
    %92 = vector.broadcast %cst_28 : f32 to vector<16x1xf32>
    %93 = arith.divf %91, %92 : vector<16x1xf32>
    %cst_29 = arith.constant 9.99999974E-6 : f32
    %94 = vector.broadcast %cst_29 : f32 to vector<16x1xf32>
    %95 = arith.addf %93, %94 : vector<16x1xf32>
    %96 = math.rsqrt %95 : vector<16x1xf32>
    %97 = vector.broadcast %96 : vector<16x1xf32> to vector<16x32xf32>
    %98 = arith.mulf %88, %97 : vector<16x32xf32>
    %99 = vector.broadcast %81 : vector<1x32xf32> to vector<16x32xf32>
    %100 = arith.mulf %98, %99 : vector<16x32xf32>
    %101 = vector.broadcast %82 : vector<1x32xf32> to vector<16x32xf32>
    %102 = arith.addf %100, %101 : vector<16x32xf32>
    %c0_30 = arith.constant 0 : index
    %c256 = arith.constant 256 : index
    %103 = vector.load %arg4[%c0_30, %c256] : memref<32x2432xf32, #tpu.memory_space<vmem>>, vector<32x32xf32>
    %cst_31 = arith.constant dense<0.000000e+00> : vector<16x32xf32>
    %104 = tpu.matmul %102, %103, %cst_31 {dimension_numbers = #tpu.dot_dimension_numbers<[1], [0], [0], [1], [0, 0, 1, 1], [], []>} : vector<16x32xf32>, vector<32x32xf32>, vector<16x32xf32> -> vector<16x32xf32>
    %c20 = arith.constant 20 : index
    %c0_32 = arith.constant 0 : index
    %105 = vector.load %arg5[%c20, %c0_32] : memref<56x128xf32, #tpu.memory_space<vmem>>, vector<1x32xf32>
    %106 = vector.broadcast %105 : vector<1x32xf32> to vector<16x32xf32>
    %107 = arith.addf %104, %106 : vector<16x32xf32>
    %cst_33 = arith.constant 0.000000e+00 : f32
    %108 = vector.broadcast %cst_33 : f32 to vector<16x32xf32>
    %109 = arith.maximumf %107, %108 : vector<16x32xf32>
    %c0_34 = arith.constant 0 : index
    %c384 = arith.constant 384 : index
    %110 = vector.load %arg4[%c0_34, %c384] : memref<32x2432xf32, #tpu.memory_space<vmem>>, vector<32x32xf32>
    %cst_35 = arith.constant dense<0.000000e+00> : vector<16x32xf32>
    %111 = tpu.matmul %109, %110, %cst_35 {dimension_numbers = #tpu.dot_dimension_numbers<[1], [0], [0], [1], [0, 0, 1, 1], [], []>} : vector<16x32xf32>, vector<32x32xf32>, vector<16x32xf32> -> vector<16x32xf32>
    %c21 = arith.constant 21 : index
    %c0_36 = arith.constant 0 : index
    %112 = vector.load %arg5[%c21, %c0_36] : memref<56x128xf32, #tpu.memory_space<vmem>>, vector<1x32xf32>
    %113 = vector.broadcast %112 : vector<1x32xf32> to vector<16x32xf32>
    %114 = arith.addf %111, %113 : vector<16x32xf32>
    %115 = arith.addf %102, %114 : vector<16x32xf32>
    %c24 = arith.constant 24 : index
    %c0_37 = arith.constant 0 : index
    %116 = vector.load %arg5[%c24, %c0_37] : memref<56x128xf32, #tpu.memory_space<vmem>>, vector<1x32xf32>
    %c25 = arith.constant 25 : index
    %c0_38 = arith.constant 0 : index
    %117 = vector.load %arg5[%c25, %c0_38] : memref<56x128xf32, #tpu.memory_space<vmem>>, vector<1x32xf32>
    %cst_39 = arith.constant dense<0.000000e+00> : vector<16xf32>
    %118 = vector.multi_reduction <add>, %115, %cst_39 [1] : vector<16x32xf32> to vector<16xf32>
    %119 = vector.shape_cast %118 : vector<16xf32> to vector<16x1xf32>
    %cst_40 = arith.constant 3.200000e+01 : f32
    %120 = vector.broadcast %cst_40 : f32 to vector<16x1xf32>
    %121 = arith.divf %119, %120 : vector<16x1xf32>
    %122 = vector.broadcast %121 : vector<16x1xf32> to vector<16x32xf32>
    %123 = arith.subf %115, %122 : vector<16x32xf32>
    %124 = arith.mulf %123, %123 : vector<16x32xf32>
    %cst_41 = arith.constant dense<0.000000e+00> : vector<16xf32>
    %125 = vector.multi_reduction <add>, %124, %cst_41 [1] : vector<16x32xf32> to vector<16xf32>
    %126 = vector.shape_cast %125 : vector<16xf32> to vector<16x1xf32>
    %cst_42 = arith.constant 3.200000e+01 : f32
    %127 = vector.broadcast %cst_42 : f32 to vector<16x1xf32>
    %128 = arith.divf %126, %127 : vector<16x1xf32>
    %cst_43 = arith.constant 9.99999974E-6 : f32
    %129 = vector.broadcast %cst_43 : f32 to vector<16x1xf32>
    %130 = arith.addf %128, %129 : vector<16x1xf32>
    %131 = math.rsqrt %130 : vector<16x1xf32>
    %132 = vector.broadcast %131 : vector<16x1xf32> to vector<16x32xf32>
    %133 = arith.mulf %123, %132 : vector<16x32xf32>
    %134 = vector.broadcast %116 : vector<1x32xf32> to vector<16x32xf32>
    %135 = arith.mulf %133, %134 : vector<16x32xf32>
    %136 = vector.broadcast %117 : vector<1x32xf32> to vector<16x32xf32>
    %137 = arith.addf %135, %136 : vector<16x32xf32>
    %c0_44 = arith.constant 0 : index
    %c512 = arith.constant 512 : index
    %138 = vector.load %arg4[%c0_44, %c512] : memref<32x2432xf32, #tpu.memory_space<vmem>>, vector<32x96xf32>
    %cst_45 = arith.constant dense<0.000000e+00> : vector<16x96xf32>
    %139 = tpu.matmul %137, %138, %cst_45 {dimension_numbers = #tpu.dot_dimension_numbers<[1], [0], [0], [1], [0, 0, 1, 1], [], []>} : vector<16x32xf32>, vector<32x96xf32>, vector<16x96xf32> -> vector<16x96xf32>
    %c26 = arith.constant 26 : index
    %c0_46 = arith.constant 0 : index
    %140 = vector.load %arg5[%c26, %c0_46] : memref<56x128xf32, #tpu.memory_space<vmem>>, vector<1x96xf32>
    %141 = vector.broadcast %140 : vector<1x96xf32> to vector<16x96xf32>
    %142 = arith.addf %139, %141 : vector<16x96xf32>
    %143 = vector.extract_strided_slice %142 {offsets = [0, 0], sizes = [16, 32], strides = [1, 1]} : vector<16x96xf32> to vector<16x32xf32>
    %144 = vector.shape_cast %143 : vector<16x32xf32> to vector<2x8x32xf32>
    %145 = vector.extract_strided_slice %142 {offsets = [0, 32], sizes = [16, 32], strides = [1, 1]} : vector<16x96xf32> to vector<16x32xf32>
    %146 = vector.shape_cast %145 : vector<16x32xf32> to vector<2x8x32xf32>
    %147 = vector.extract_strided_slice %142 {offsets = [0, 64], sizes = [16, 32], strides = [1, 1]} : vector<16x96xf32> to vector<16x32xf32>
    %148 = vector.shape_cast %147 : vector<16x32xf32> to vector<2x8x32xf32>
    %149 = vector.extract_strided_slice %144 {offsets = [0, 0, 0], sizes = [2, 8, 16], strides = [1, 1, 1]} : vector<2x8x32xf32> to vector<2x8x16xf32>
    %150 = vector.extract_strided_slice %146 {offsets = [0, 0, 0], sizes = [2, 8, 16], strides = [1, 1, 1]} : vector<2x8x32xf32> to vector<2x8x16xf32>
    "tpu.trace_start"() <{level = 10 : i32, message = "bqd,bkd->bqk"}> : () -> ()
    %cst_47 = arith.constant dense<0.000000e+00> : vector<2x8x8xf32>
    %151 = tpu.matmul %149, %150, %cst_47 {dimension_numbers = #tpu.dot_dimension_numbers<[2], [2], [1], [1], [0, 0, 0, 1, 1, 1], [0], [0]>} : vector<2x8x16xf32>, vector<2x8x16xf32>, vector<2x8x8xf32> -> vector<2x8x8xf32>
    "tpu.trace_stop"() : () -> ()
    %cst_48 = arith.constant 2.500000e-01 : f32
    %152 = vector.broadcast %cst_48 : f32 to vector<2x8x8xf32>
    %153 = arith.mulf %151, %152 : vector<2x8x8xf32>
    %cst_49 = arith.constant dense<0xFF800000> : vector<2x8xf32>
    %154 = vector.multi_reduction <maximumf>, %153, %cst_49 [2] : vector<2x8x8xf32> to vector<2x8xf32>
    %155 = vector.shape_cast %154 : vector<2x8xf32> to vector<2x8x1xf32>
    %156 = vector.broadcast %155 : vector<2x8x1xf32> to vector<2x8x8xf32>
    %157 = arith.subf %153, %156 : vector<2x8x8xf32>
    %158 = math.exp %157 : vector<2x8x8xf32>
    %cst_50 = arith.constant dense<0.000000e+00> : vector<2x8xf32>
    %159 = vector.multi_reduction <add>, %158, %cst_50 [2] : vector<2x8x8xf32> to vector<2x8xf32>
    %160 = vector.shape_cast %159 : vector<2x8xf32> to vector<2x8x1xf32>
    %161 = tpu.reciprocal %160 {approx = true} : vector<2x8x1xf32> -> vector<2x8x1xf32>
    %162 = vector.broadcast %161 : vector<2x8x1xf32> to vector<2x8x8xf32>
    %163 = arith.mulf %158, %162 : vector<2x8x8xf32>
    %164 = vector.extract_strided_slice %148 {offsets = [0, 0, 0], sizes = [2, 8, 16], strides = [1, 1, 1]} : vector<2x8x32xf32> to vector<2x8x16xf32>
    "tpu.trace_start"() <{level = 10 : i32, message = "bqk,bkd->bqd"}> : () -> ()
    %cst_51 = arith.constant dense<0.000000e+00> : vector<2x8x16xf32>
    %165 = tpu.matmul %163, %164, %cst_51 {dimension_numbers = #tpu.dot_dimension_numbers<[2], [1], [1], [2], [0, 0, 0, 1, 1, 2], [0], [0]>} : vector<2x8x8xf32>, vector<2x8x16xf32>, vector<2x8x16xf32> -> vector<2x8x16xf32>
    "tpu.trace_stop"() : () -> ()
    %166 = vector.extract_strided_slice %144 {offsets = [0, 0, 16], sizes = [2, 8, 16], strides = [1, 1, 1]} : vector<2x8x32xf32> to vector<2x8x16xf32>
    %167 = vector.extract_strided_slice %146 {offsets = [0, 0, 16], sizes = [2, 8, 16], strides = [1, 1, 1]} : vector<2x8x32xf32> to vector<2x8x16xf32>
    "tpu.trace_start"() <{level = 10 : i32, message = "bqd,bkd->bqk"}> : () -> ()
    %cst_52 = arith.constant dense<0.000000e+00> : vector<2x8x8xf32>
    %168 = tpu.matmul %166, %167, %cst_52 {dimension_numbers = #tpu.dot_dimension_numbers<[2], [2], [1], [1], [0, 0, 0, 1, 1, 1], [0], [0]>} : vector<2x8x16xf32>, vector<2x8x16xf32>, vector<2x8x8xf32> -> vector<2x8x8xf32>
    "tpu.trace_stop"() : () -> ()
    %cst_53 = arith.constant 2.500000e-01 : f32
    %169 = vector.broadcast %cst_53 : f32 to vector<2x8x8xf32>
    %170 = arith.mulf %168, %169 : vector<2x8x8xf32>
    %cst_54 = arith.constant dense<0xFF800000> : vector<2x8xf32>
    %171 = vector.multi_reduction <maximumf>, %170, %cst_54 [2] : vector<2x8x8xf32> to vector<2x8xf32>
    %172 = vector.shape_cast %171 : vector<2x8xf32> to vector<2x8x1xf32>
    %173 = vector.broadcast %172 : vector<2x8x1xf32> to vector<2x8x8xf32>
    %174 = arith.subf %170, %173 : vector<2x8x8xf32>
    %175 = math.exp %174 : vector<2x8x8xf32>
    %cst_55 = arith.constant dense<0.000000e+00> : vector<2x8xf32>
    %176 = vector.multi_reduction <add>, %175, %cst_55 [2] : vector<2x8x8xf32> to vector<2x8xf32>
    %177 = vector.shape_cast %176 : vector<2x8xf32> to vector<2x8x1xf32>
    %178 = tpu.reciprocal %177 {approx = true} : vector<2x8x1xf32> -> vector<2x8x1xf32>
    %179 = vector.broadcast %178 : vector<2x8x1xf32> to vector<2x8x8xf32>
    %180 = arith.mulf %175, %179 : vector<2x8x8xf32>
    %181 = vector.extract_strided_slice %148 {offsets = [0, 0, 16], sizes = [2, 8, 16], strides = [1, 1, 1]} : vector<2x8x32xf32> to vector<2x8x16xf32>
    "tpu.trace_start"() <{level = 10 : i32, message = "bqk,bkd->bqd"}> : () -> ()
    %cst_56 = arith.constant dense<0.000000e+00> : vector<2x8x16xf32>
    %182 = tpu.matmul %180, %181, %cst_56 {dimension_numbers = #tpu.dot_dimension_numbers<[2], [1], [1], [2], [0, 0, 0, 1, 1, 2], [0], [0]>} : vector<2x8x8xf32>, vector<2x8x16xf32>, vector<2x8x16xf32> -> vector<2x8x16xf32>
    "tpu.trace_stop"() : () -> ()
    %183 = tpu.concatenate %165, %182 in 2 : vector<2x8x16xf32>, vector<2x8x16xf32> -> vector<2x8x32xf32>
    %184 = vector.shape_cast %183 : vector<2x8x32xf32> to vector<16x32xf32>
    %c0_57 = arith.constant 0 : index
    %c640 = arith.constant 640 : index
    %185 = vector.load %arg4[%c0_57, %c640] : memref<32x2432xf32, #tpu.memory_space<vmem>>, vector<32x32xf32>
    %cst_58 = arith.constant dense<0.000000e+00> : vector<16x32xf32>
    %186 = tpu.matmul %184, %185, %cst_58 {dimension_numbers = #tpu.dot_dimension_numbers<[1], [0], [0], [1], [0, 0, 1, 1], [], []>} : vector<16x32xf32>, vector<32x32xf32>, vector<16x32xf32> -> vector<16x32xf32>
    %c27 = arith.constant 27 : index
    %c0_59 = arith.constant 0 : index
    %187 = vector.load %arg5[%c27, %c0_59] : memref<56x128xf32, #tpu.memory_space<vmem>>, vector<1x32xf32>
    %188 = vector.broadcast %187 : vector<1x32xf32> to vector<16x32xf32>
    %189 = arith.addf %186, %188 : vector<16x32xf32>
    %190 = arith.addf %137, %189 : vector<16x32xf32>
    %c30 = arith.constant 30 : index
    %c0_60 = arith.constant 0 : index
    %191 = vector.load %arg5[%c30, %c0_60] : memref<56x128xf32, #tpu.memory_space<vmem>>, vector<1x32xf32>
    %c31 = arith.constant 31 : index
    %c0_61 = arith.constant 0 : index
    %192 = vector.load %arg5[%c31, %c0_61] : memref<56x128xf32, #tpu.memory_space<vmem>>, vector<1x32xf32>
    %cst_62 = arith.constant dense<0.000000e+00> : vector<16xf32>
    %193 = vector.multi_reduction <add>, %190, %cst_62 [1] : vector<16x32xf32> to vector<16xf32>
    %194 = vector.shape_cast %193 : vector<16xf32> to vector<16x1xf32>
    %cst_63 = arith.constant 3.200000e+01 : f32
    %195 = vector.broadcast %cst_63 : f32 to vector<16x1xf32>
    %196 = arith.divf %194, %195 : vector<16x1xf32>
    %197 = vector.broadcast %196 : vector<16x1xf32> to vector<16x32xf32>
    %198 = arith.subf %190, %197 : vector<16x32xf32>
    %199 = arith.mulf %198, %198 : vector<16x32xf32>
    %cst_64 = arith.constant dense<0.000000e+00> : vector<16xf32>
    %200 = vector.multi_reduction <add>, %199, %cst_64 [1] : vector<16x32xf32> to vector<16xf32>
    %201 = vector.shape_cast %200 : vector<16xf32> to vector<16x1xf32>
    %cst_65 = arith.constant 3.200000e+01 : f32
    %202 = vector.broadcast %cst_65 : f32 to vector<16x1xf32>
    %203 = arith.divf %201, %202 : vector<16x1xf32>
    %cst_66 = arith.constant 9.99999974E-6 : f32
    %204 = vector.broadcast %cst_66 : f32 to vector<16x1xf32>
    %205 = arith.addf %203, %204 : vector<16x1xf32>
    %206 = math.rsqrt %205 : vector<16x1xf32>
    %207 = vector.broadcast %206 : vector<16x1xf32> to vector<16x32xf32>
    %208 = arith.mulf %198, %207 : vector<16x32xf32>
    %209 = vector.broadcast %191 : vector<1x32xf32> to vector<16x32xf32>
    %210 = arith.mulf %208, %209 : vector<16x32xf32>
    %211 = vector.broadcast %192 : vector<1x32xf32> to vector<16x32xf32>
    %212 = arith.addf %210, %211 : vector<16x32xf32>
    %c0_67 = arith.constant 0 : index
    %c768 = arith.constant 768 : index
    %213 = vector.load %arg4[%c0_67, %c768] : memref<32x2432xf32, #tpu.memory_space<vmem>>, vector<32x32xf32>
    %cst_68 = arith.constant dense<0.000000e+00> : vector<16x32xf32>
    %214 = tpu.matmul %212, %213, %cst_68 {dimension_numbers = #tpu.dot_dimension_numbers<[1], [0], [0], [1], [0, 0, 1, 1], [], []>} : vector<16x32xf32>, vector<32x32xf32>, vector<16x32xf32> -> vector<16x32xf32>
    %c28 = arith.constant 28 : index
    %c0_69 = arith.constant 0 : index
    %215 = vector.load %arg5[%c28, %c0_69] : memref<56x128xf32, #tpu.memory_space<vmem>>, vector<1x32xf32>
    %216 = vector.broadcast %215 : vector<1x32xf32> to vector<16x32xf32>
    %217 = arith.addf %214, %216 : vector<16x32xf32>
    %cst_70 = arith.constant 0.000000e+00 : f32
    %218 = vector.broadcast %cst_70 : f32 to vector<16x32xf32>
    %219 = arith.maximumf %217, %218 : vector<16x32xf32>
    %c0_71 = arith.constant 0 : index
    %c896 = arith.constant 896 : index
    %220 = vector.load %arg4[%c0_71, %c896] : memref<32x2432xf32, #tpu.memory_space<vmem>>, vector<32x32xf32>
    %cst_72 = arith.constant dense<0.000000e+00> : vector<16x32xf32>
    %221 = tpu.matmul %219, %220, %cst_72 {dimension_numbers = #tpu.dot_dimension_numbers<[1], [0], [0], [1], [0, 0, 1, 1], [], []>} : vector<16x32xf32>, vector<32x32xf32>, vector<16x32xf32> -> vector<16x32xf32>
    %c29 = arith.constant 29 : index
    %c0_73 = arith.constant 0 : index
    %222 = vector.load %arg5[%c29, %c0_73] : memref<56x128xf32, #tpu.memory_space<vmem>>, vector<1x32xf32>
    %223 = vector.broadcast %222 : vector<1x32xf32> to vector<16x32xf32>
    %224 = arith.addf %221, %223 : vector<16x32xf32>
    %225 = arith.addf %212, %224 : vector<16x32xf32>
    %c32 = arith.constant 32 : index
    %c0_74 = arith.constant 0 : index
    %226 = vector.load %arg5[%c32, %c0_74] : memref<56x128xf32, #tpu.memory_space<vmem>>, vector<1x32xf32>
    %c33 = arith.constant 33 : index
    %c0_75 = arith.constant 0 : index
    %227 = vector.load %arg5[%c33, %c0_75] : memref<56x128xf32, #tpu.memory_space<vmem>>, vector<1x32xf32>
    %cst_76 = arith.constant dense<0.000000e+00> : vector<16xf32>
    %228 = vector.multi_reduction <add>, %225, %cst_76 [1] : vector<16x32xf32> to vector<16xf32>
    %229 = vector.shape_cast %228 : vector<16xf32> to vector<16x1xf32>
    %cst_77 = arith.constant 3.200000e+01 : f32
    %230 = vector.broadcast %cst_77 : f32 to vector<16x1xf32>
    %231 = arith.divf %229, %230 : vector<16x1xf32>
    %232 = vector.broadcast %231 : vector<16x1xf32> to vector<16x32xf32>
    %233 = arith.subf %225, %232 : vector<16x32xf32>
    %234 = arith.mulf %233, %233 : vector<16x32xf32>
    %cst_78 = arith.constant dense<0.000000e+00> : vector<16xf32>
    %235 = vector.multi_reduction <add>, %234, %cst_78 [1] : vector<16x32xf32> to vector<16xf32>
    %236 = vector.shape_cast %235 : vector<16xf32> to vector<16x1xf32>
    %cst_79 = arith.constant 3.200000e+01 : f32
    %237 = vector.broadcast %cst_79 : f32 to vector<16x1xf32>
    %238 = arith.divf %236, %237 : vector<16x1xf32>
    %cst_80 = arith.constant 9.99999974E-6 : f32
    %239 = vector.broadcast %cst_80 : f32 to vector<16x1xf32>
    %240 = arith.addf %238, %239 : vector<16x1xf32>
    %241 = math.rsqrt %240 : vector<16x1xf32>
    %242 = vector.broadcast %241 : vector<16x1xf32> to vector<16x32xf32>
    %243 = arith.mulf %233, %242 : vector<16x32xf32>
    %244 = vector.broadcast %226 : vector<1x32xf32> to vector<16x32xf32>
    %245 = arith.mulf %243, %244 : vector<16x32xf32>
    %246 = vector.broadcast %227 : vector<1x32xf32> to vector<16x32xf32>
    %247 = arith.addf %245, %246 : vector<16x32xf32>
    %c0_81 = arith.constant 0 : index
    %c2304 = arith.constant 2304 : index
    %248 = vector.load %arg4[%c0_81, %c2304] : memref<32x2432xf32, #tpu.memory_space<vmem>>, vector<32x128xf32>
    %cst_82 = arith.constant dense<0.000000e+00> : vector<16x128xf32>
    %249 = tpu.matmul %247, %248, %cst_82 {dimension_numbers = #tpu.dot_dimension_numbers<[1], [0], [0], [1], [0, 0, 1, 1], [], []>} : vector<16x32xf32>, vector<32x128xf32>, vector<16x128xf32> -> vector<16x128xf32>
    %c17 = arith.constant 17 : index
    %c0_83 = arith.constant 0 : index
    %250 = vector.load %arg5[%c17, %c0_83] : memref<56x128xf32, #tpu.memory_space<vmem>>, vector<1x128xf32>
    %251 = vector.broadcast %250 : vector<1x128xf32> to vector<16x128xf32>
    %252 = arith.addf %249, %251 : vector<16x128xf32>
    %253 = vector.shape_cast %252 : vector<16x128xf32> to vector<2x8x128xf32>
    %c0_84 = arith.constant 0 : index
    %c1024 = arith.constant 1024 : index
    %254 = vector.load %arg4[%c0_84, %c1024] : memref<32x2432xf32, #tpu.memory_space<vmem>>, vector<32x32xf32>
    %cst_85 = arith.constant dense<0.000000e+00> : vector<2x32xf32>
    %255 = tpu.matmul %27, %254, %cst_85 {dimension_numbers = #tpu.dot_dimension_numbers<[1], [0], [0], [1], [0, 0, 1, 1], [], []>} : vector<2x32xf32>, vector<32x32xf32>, vector<2x32xf32> -> vector<2x32xf32>
    %c34 = arith.constant 34 : index
    %c0_86 = arith.constant 0 : index
    %256 = vector.load %arg5[%c34, %c0_86] : memref<56x128xf32, #tpu.memory_space<vmem>>, vector<1x32xf32>
    %257 = vector.broadcast %256 : vector<1x32xf32> to vector<2x32xf32>
    %258 = arith.addf %255, %257 : vector<2x32xf32>
    %259 = arith.addf %27, %258 : vector<2x32xf32>
    %c39 = arith.constant 39 : index
    %c0_87 = arith.constant 0 : index
    %260 = vector.load %arg5[%c39, %c0_87] : memref<56x128xf32, #tpu.memory_space<vmem>>, vector<1x32xf32>
    %c40 = arith.constant 40 : index
    %c0_88 = arith.constant 0 : index
    %261 = vector.load %arg5[%c40, %c0_88] : memref<56x128xf32, #tpu.memory_space<vmem>>, vector<1x32xf32>
    %cst_89 = arith.constant dense<0.000000e+00> : vector<2xf32>
    %262 = vector.multi_reduction <add>, %259, %cst_89 [1] : vector<2x32xf32> to vector<2xf32>
    %263 = vector.shape_cast %262 : vector<2xf32> to vector<2x1xf32>
    %cst_90 = arith.constant 3.200000e+01 : f32
    %264 = vector.broadcast %cst_90 : f32 to vector<2x1xf32>
    %265 = arith.divf %263, %264 : vector<2x1xf32>
    %266 = vector.broadcast %265 : vector<2x1xf32> to vector<2x32xf32>
    %267 = arith.subf %259, %266 : vector<2x32xf32>
    %268 = arith.mulf %267, %267 : vector<2x32xf32>
    %cst_91 = arith.constant dense<0.000000e+00> : vector<2xf32>
    %269 = vector.multi_reduction <add>, %268, %cst_91 [1] : vector<2x32xf32> to vector<2xf32>
    %270 = vector.shape_cast %269 : vector<2xf32> to vector<2x1xf32>
    %cst_92 = arith.constant 3.200000e+01 : f32
    %271 = vector.broadcast %cst_92 : f32 to vector<2x1xf32>
    %272 = arith.divf %270, %271 : vector<2x1xf32>
    %cst_93 = arith.constant 9.99999974E-6 : f32
    %273 = vector.broadcast %cst_93 : f32 to vector<2x1xf32>
    %274 = arith.addf %272, %273 : vector<2x1xf32>
    %275 = math.rsqrt %274 : vector<2x1xf32>
    %276 = vector.broadcast %275 : vector<2x1xf32> to vector<2x32xf32>
    %277 = arith.mulf %267, %276 : vector<2x32xf32>
    %278 = vector.broadcast %260 : vector<1x32xf32> to vector<2x32xf32>
    %279 = arith.mulf %277, %278 : vector<2x32xf32>
    %280 = vector.broadcast %261 : vector<1x32xf32> to vector<2x32xf32>
    %281 = arith.addf %279, %280 : vector<2x32xf32>
    %c0_94 = arith.constant 0 : index
    %c1152 = arith.constant 1152 : index
    %282 = vector.load %arg4[%c0_94, %c1152] : memref<32x2432xf32, #tpu.memory_space<vmem>>, vector<32x32xf32>
    %cst_95 = arith.constant dense<0.000000e+00> : vector<2x32xf32>
    %283 = tpu.matmul %281, %282, %cst_95 {dimension_numbers = #tpu.dot_dimension_numbers<[1], [0], [0], [1], [0, 0, 1, 1], [], []>} : vector<2x32xf32>, vector<32x32xf32>, vector<2x32xf32> -> vector<2x32xf32>
    %c35 = arith.constant 35 : index
    %c0_96 = arith.constant 0 : index
    %284 = vector.load %arg5[%c35, %c0_96] : memref<56x128xf32, #tpu.memory_space<vmem>>, vector<1x32xf32>
    %285 = vector.broadcast %284 : vector<1x32xf32> to vector<2x32xf32>
    %286 = arith.addf %283, %285 : vector<2x32xf32>
    %287 = vector.shape_cast %286 : vector<2x32xf32> to vector<2x1x32xf32>
    %288 = vector.extract_strided_slice %253 {offsets = [0, 0, 0], sizes = [2, 8, 16], strides = [1, 1, 1]} : vector<2x8x128xf32> to vector<2x8x16xf32>
    %289 = vector.extract_strided_slice %253 {offsets = [0, 0, 32], sizes = [2, 8, 16], strides = [1, 1, 1]} : vector<2x8x128xf32> to vector<2x8x16xf32>
    %290 = vector.extract_strided_slice %287 {offsets = [0, 0, 0], sizes = [2, 1, 16], strides = [1, 1, 1]} : vector<2x1x32xf32> to vector<2x1x16xf32>
    "tpu.trace_start"() <{level = 10 : i32, message = "bqd,bkd->bqk"}> : () -> ()
    %cst_97 = arith.constant dense<0.000000e+00> : vector<2x1x8xf32>
    %291 = tpu.matmul %290, %288, %cst_97 {dimension_numbers = #tpu.dot_dimension_numbers<[2], [2], [1], [1], [0, 0, 0, 1, 1, 1], [0], [0]>} : vector<2x1x16xf32>, vector<2x8x16xf32>, vector<2x1x8xf32> -> vector<2x1x8xf32>
    "tpu.trace_stop"() : () -> ()
    %cst_98 = arith.constant 2.500000e-01 : f32
    %292 = vector.broadcast %cst_98 : f32 to vector<2x1x8xf32>
    %293 = arith.mulf %291, %292 : vector<2x1x8xf32>
    %cst_99 = arith.constant dense<0xFF800000> : vector<2x1xf32>
    %294 = vector.multi_reduction <maximumf>, %293, %cst_99 [2] : vector<2x1x8xf32> to vector<2x1xf32>
    %295 = vector.shape_cast %294 : vector<2x1xf32> to vector<2x1x1xf32>
    %296 = vector.broadcast %295 : vector<2x1x1xf32> to vector<2x1x8xf32>
    %297 = arith.subf %293, %296 : vector<2x1x8xf32>
    %298 = math.exp %297 : vector<2x1x8xf32>
    %cst_100 = arith.constant dense<0.000000e+00> : vector<2x1xf32>
    %299 = vector.multi_reduction <add>, %298, %cst_100 [2] : vector<2x1x8xf32> to vector<2x1xf32>
    %300 = vector.shape_cast %299 : vector<2x1xf32> to vector<2x1x1xf32>
    %301 = tpu.reciprocal %300 {approx = true} : vector<2x1x1xf32> -> vector<2x1x1xf32>
    %302 = vector.broadcast %301 : vector<2x1x1xf32> to vector<2x1x8xf32>
    %303 = arith.mulf %298, %302 : vector<2x1x8xf32>
    "tpu.trace_start"() <{level = 10 : i32, message = "bqk,bkd->bqd"}> : () -> ()
    %cst_101 = arith.constant dense<0.000000e+00> : vector<2x1x16xf32>
    %304 = tpu.matmul %303, %289, %cst_101 {dimension_numbers = #tpu.dot_dimension_numbers<[2], [1], [1], [2], [0, 0, 0, 1, 1, 2], [0], [0]>} : vector<2x1x8xf32>, vector<2x8x16xf32>, vector<2x1x16xf32> -> vector<2x1x16xf32>
    "tpu.trace_stop"() : () -> ()
    %305 = vector.extract_strided_slice %253 {offsets = [0, 0, 16], sizes = [2, 8, 16], strides = [1, 1, 1]} : vector<2x8x128xf32> to vector<2x8x16xf32>
    %306 = vector.extract_strided_slice %253 {offsets = [0, 0, 48], sizes = [2, 8, 16], strides = [1, 1, 1]} : vector<2x8x128xf32> to vector<2x8x16xf32>
    %307 = vector.extract_strided_slice %287 {offsets = [0, 0, 16], sizes = [2, 1, 16], strides = [1, 1, 1]} : vector<2x1x32xf32> to vector<2x1x16xf32>
    "tpu.trace_start"() <{level = 10 : i32, message = "bqd,bkd->bqk"}> : () -> ()
    %cst_102 = arith.constant dense<0.000000e+00> : vector<2x1x8xf32>
    %308 = tpu.matmul %307, %305, %cst_102 {dimension_numbers = #tpu.dot_dimension_numbers<[2], [2], [1], [1], [0, 0, 0, 1, 1, 1], [0], [0]>} : vector<2x1x16xf32>, vector<2x8x16xf32>, vector<2x1x8xf32> -> vector<2x1x8xf32>
    "tpu.trace_stop"() : () -> ()
    %cst_103 = arith.constant 2.500000e-01 : f32
    %309 = vector.broadcast %cst_103 : f32 to vector<2x1x8xf32>
    %310 = arith.mulf %308, %309 : vector<2x1x8xf32>
    %cst_104 = arith.constant dense<0xFF800000> : vector<2x1xf32>
    %311 = vector.multi_reduction <maximumf>, %310, %cst_104 [2] : vector<2x1x8xf32> to vector<2x1xf32>
    %312 = vector.shape_cast %311 : vector<2x1xf32> to vector<2x1x1xf32>
    %313 = vector.broadcast %312 : vector<2x1x1xf32> to vector<2x1x8xf32>
    %314 = arith.subf %310, %313 : vector<2x1x8xf32>
    %315 = math.exp %314 : vector<2x1x8xf32>
    %cst_105 = arith.constant dense<0.000000e+00> : vector<2x1xf32>
    %316 = vector.multi_reduction <add>, %315, %cst_105 [2] : vector<2x1x8xf32> to vector<2x1xf32>
    %317 = vector.shape_cast %316 : vector<2x1xf32> to vector<2x1x1xf32>
    %318 = tpu.reciprocal %317 {approx = true} : vector<2x1x1xf32> -> vector<2x1x1xf32>
    %319 = vector.broadcast %318 : vector<2x1x1xf32> to vector<2x1x8xf32>
    %320 = arith.mulf %315, %319 : vector<2x1x8xf32>
    "tpu.trace_start"() <{level = 10 : i32, message = "bqk,bkd->bqd"}> : () -> ()
    %cst_106 = arith.constant dense<0.000000e+00> : vector<2x1x16xf32>
    %321 = tpu.matmul %320, %306, %cst_106 {dimension_numbers = #tpu.dot_dimension_numbers<[2], [1], [1], [2], [0, 0, 0, 1, 1, 2], [0], [0]>} : vector<2x1x8xf32>, vector<2x8x16xf32>, vector<2x1x16xf32> -> vector<2x1x16xf32>
    "tpu.trace_stop"() : () -> ()
    %322 = tpu.concatenate %304, %321 in 2 : vector<2x1x16xf32>, vector<2x1x16xf32> -> vector<2x1x32xf32>
    %323 = vector.shape_cast %322 : vector<2x1x32xf32> to vector<2x32xf32>
    %c0_107 = arith.constant 0 : index
    %c1280 = arith.constant 1280 : index
    %324 = vector.load %arg4[%c0_107, %c1280] : memref<32x2432xf32, #tpu.memory_space<vmem>>, vector<32x32xf32>
    %cst_108 = arith.constant dense<0.000000e+00> : vector<2x32xf32>
    %325 = tpu.matmul %323, %324, %cst_108 {dimension_numbers = #tpu.dot_dimension_numbers<[1], [0], [0], [1], [0, 0, 1, 1], [], []>} : vector<2x32xf32>, vector<32x32xf32>, vector<2x32xf32> -> vector<2x32xf32>
    %c36 = arith.constant 36 : index
    %c0_109 = arith.constant 0 : index
    %326 = vector.load %arg5[%c36, %c0_109] : memref<56x128xf32, #tpu.memory_space<vmem>>, vector<1x32xf32>
    %327 = vector.broadcast %326 : vector<1x32xf32> to vector<2x32xf32>
    %328 = arith.addf %325, %327 : vector<2x32xf32>
    %329 = arith.addf %281, %328 : vector<2x32xf32>
    %c41 = arith.constant 41 : index
    %c0_110 = arith.constant 0 : index
    %330 = vector.load %arg5[%c41, %c0_110] : memref<56x128xf32, #tpu.memory_space<vmem>>, vector<1x32xf32>
    %c42 = arith.constant 42 : index
    %c0_111 = arith.constant 0 : index
    %331 = vector.load %arg5[%c42, %c0_111] : memref<56x128xf32, #tpu.memory_space<vmem>>, vector<1x32xf32>
    %cst_112 = arith.constant dense<0.000000e+00> : vector<2xf32>
    %332 = vector.multi_reduction <add>, %329, %cst_112 [1] : vector<2x32xf32> to vector<2xf32>
    %333 = vector.shape_cast %332 : vector<2xf32> to vector<2x1xf32>
    %cst_113 = arith.constant 3.200000e+01 : f32
    %334 = vector.broadcast %cst_113 : f32 to vector<2x1xf32>
    %335 = arith.divf %333, %334 : vector<2x1xf32>
    %336 = vector.broadcast %335 : vector<2x1xf32> to vector<2x32xf32>
    %337 = arith.subf %329, %336 : vector<2x32xf32>
    %338 = arith.mulf %337, %337 : vector<2x32xf32>
    %cst_114 = arith.constant dense<0.000000e+00> : vector<2xf32>
    %339 = vector.multi_reduction <add>, %338, %cst_114 [1] : vector<2x32xf32> to vector<2xf32>
    %340 = vector.shape_cast %339 : vector<2xf32> to vector<2x1xf32>
    %cst_115 = arith.constant 3.200000e+01 : f32
    %341 = vector.broadcast %cst_115 : f32 to vector<2x1xf32>
    %342 = arith.divf %340, %341 : vector<2x1xf32>
    %cst_116 = arith.constant 9.99999974E-6 : f32
    %343 = vector.broadcast %cst_116 : f32 to vector<2x1xf32>
    %344 = arith.addf %342, %343 : vector<2x1xf32>
    %345 = math.rsqrt %344 : vector<2x1xf32>
    %346 = vector.broadcast %345 : vector<2x1xf32> to vector<2x32xf32>
    %347 = arith.mulf %337, %346 : vector<2x32xf32>
    %348 = vector.broadcast %330 : vector<1x32xf32> to vector<2x32xf32>
    %349 = arith.mulf %347, %348 : vector<2x32xf32>
    %350 = vector.broadcast %331 : vector<1x32xf32> to vector<2x32xf32>
    %351 = arith.addf %349, %350 : vector<2x32xf32>
    %c0_117 = arith.constant 0 : index
    %c1408 = arith.constant 1408 : index
    %352 = vector.load %arg4[%c0_117, %c1408] : memref<32x2432xf32, #tpu.memory_space<vmem>>, vector<32x32xf32>
    %cst_118 = arith.constant dense<0.000000e+00> : vector<2x32xf32>
    %353 = tpu.matmul %351, %352, %cst_118 {dimension_numbers = #tpu.dot_dimension_numbers<[1], [0], [0], [1], [0, 0, 1, 1], [], []>} : vector<2x32xf32>, vector<32x32xf32>, vector<2x32xf32> -> vector<2x32xf32>
    %c37 = arith.constant 37 : index
    %c0_119 = arith.constant 0 : index
    %354 = vector.load %arg5[%c37, %c0_119] : memref<56x128xf32, #tpu.memory_space<vmem>>, vector<1x32xf32>
    %355 = vector.broadcast %354 : vector<1x32xf32> to vector<2x32xf32>
    %356 = arith.addf %353, %355 : vector<2x32xf32>
    %cst_120 = arith.constant 0.000000e+00 : f32
    %357 = vector.broadcast %cst_120 : f32 to vector<2x32xf32>
    %358 = arith.maximumf %356, %357 : vector<2x32xf32>
    %c0_121 = arith.constant 0 : index
    %c1536 = arith.constant 1536 : index
    %359 = vector.load %arg4[%c0_121, %c1536] : memref<32x2432xf32, #tpu.memory_space<vmem>>, vector<32x32xf32>
    %cst_122 = arith.constant dense<0.000000e+00> : vector<2x32xf32>
    %360 = tpu.matmul %358, %359, %cst_122 {dimension_numbers = #tpu.dot_dimension_numbers<[1], [0], [0], [1], [0, 0, 1, 1], [], []>} : vector<2x32xf32>, vector<32x32xf32>, vector<2x32xf32> -> vector<2x32xf32>
    %c38 = arith.constant 38 : index
    %c0_123 = arith.constant 0 : index
    %361 = vector.load %arg5[%c38, %c0_123] : memref<56x128xf32, #tpu.memory_space<vmem>>, vector<1x32xf32>
    %362 = vector.broadcast %361 : vector<1x32xf32> to vector<2x32xf32>
    %363 = arith.addf %360, %362 : vector<2x32xf32>
    %364 = arith.addf %351, %363 : vector<2x32xf32>
    %c43 = arith.constant 43 : index
    %c0_124 = arith.constant 0 : index
    %365 = vector.load %arg5[%c43, %c0_124] : memref<56x128xf32, #tpu.memory_space<vmem>>, vector<1x32xf32>
    %c44 = arith.constant 44 : index
    %c0_125 = arith.constant 0 : index
    %366 = vector.load %arg5[%c44, %c0_125] : memref<56x128xf32, #tpu.memory_space<vmem>>, vector<1x32xf32>
    %cst_126 = arith.constant dense<0.000000e+00> : vector<2xf32>
    %367 = vector.multi_reduction <add>, %364, %cst_126 [1] : vector<2x32xf32> to vector<2xf32>
    %368 = vector.shape_cast %367 : vector<2xf32> to vector<2x1xf32>
    %cst_127 = arith.constant 3.200000e+01 : f32
    %369 = vector.broadcast %cst_127 : f32 to vector<2x1xf32>
    %370 = arith.divf %368, %369 : vector<2x1xf32>
    %371 = vector.broadcast %370 : vector<2x1xf32> to vector<2x32xf32>
    %372 = arith.subf %364, %371 : vector<2x32xf32>
    %373 = arith.mulf %372, %372 : vector<2x32xf32>
    %cst_128 = arith.constant dense<0.000000e+00> : vector<2xf32>
    %374 = vector.multi_reduction <add>, %373, %cst_128 [1] : vector<2x32xf32> to vector<2xf32>
    %375 = vector.shape_cast %374 : vector<2xf32> to vector<2x1xf32>
    %cst_129 = arith.constant 3.200000e+01 : f32
    %376 = vector.broadcast %cst_129 : f32 to vector<2x1xf32>
    %377 = arith.divf %375, %376 : vector<2x1xf32>
    %cst_130 = arith.constant 9.99999974E-6 : f32
    %378 = vector.broadcast %cst_130 : f32 to vector<2x1xf32>
    %379 = arith.addf %377, %378 : vector<2x1xf32>
    %380 = math.rsqrt %379 : vector<2x1xf32>
    %381 = vector.broadcast %380 : vector<2x1xf32> to vector<2x32xf32>
    %382 = arith.mulf %372, %381 : vector<2x32xf32>
    %383 = vector.broadcast %365 : vector<1x32xf32> to vector<2x32xf32>
    %384 = arith.mulf %382, %383 : vector<2x32xf32>
    %385 = vector.broadcast %366 : vector<1x32xf32> to vector<2x32xf32>
    %386 = arith.addf %384, %385 : vector<2x32xf32>
    %c0_131 = arith.constant 0 : index
    %c1664 = arith.constant 1664 : index
    %387 = vector.load %arg4[%c0_131, %c1664] : memref<32x2432xf32, #tpu.memory_space<vmem>>, vector<32x32xf32>
    %cst_132 = arith.constant dense<0.000000e+00> : vector<2x32xf32>
    %388 = tpu.matmul %386, %387, %cst_132 {dimension_numbers = #tpu.dot_dimension_numbers<[1], [0], [0], [1], [0, 0, 1, 1], [], []>} : vector<2x32xf32>, vector<32x32xf32>, vector<2x32xf32> -> vector<2x32xf32>
    %c45 = arith.constant 45 : index
    %c0_133 = arith.constant 0 : index
    %389 = vector.load %arg5[%c45, %c0_133] : memref<56x128xf32, #tpu.memory_space<vmem>>, vector<1x32xf32>
    %390 = vector.broadcast %389 : vector<1x32xf32> to vector<2x32xf32>
    %391 = arith.addf %388, %390 : vector<2x32xf32>
    %392 = arith.addf %386, %391 : vector<2x32xf32>
    %c50 = arith.constant 50 : index
    %c0_134 = arith.constant 0 : index
    %393 = vector.load %arg5[%c50, %c0_134] : memref<56x128xf32, #tpu.memory_space<vmem>>, vector<1x32xf32>
    %c51 = arith.constant 51 : index
    %c0_135 = arith.constant 0 : index
    %394 = vector.load %arg5[%c51, %c0_135] : memref<56x128xf32, #tpu.memory_space<vmem>>, vector<1x32xf32>
    %cst_136 = arith.constant dense<0.000000e+00> : vector<2xf32>
    %395 = vector.multi_reduction <add>, %392, %cst_136 [1] : vector<2x32xf32> to vector<2xf32>
    %396 = vector.shape_cast %395 : vector<2xf32> to vector<2x1xf32>
    %cst_137 = arith.constant 3.200000e+01 : f32
    %397 = vector.broadcast %cst_137 : f32 to vector<2x1xf32>
    %398 = arith.divf %396, %397 : vector<2x1xf32>
    %399 = vector.broadcast %398 : vector<2x1xf32> to vector<2x32xf32>
    %400 = arith.subf %392, %399 : vector<2x32xf32>
    %401 = arith.mulf %400, %400 : vector<2x32xf32>
    %cst_138 = arith.constant dense<0.000000e+00> : vector<2xf32>
    %402 = vector.multi_reduction <add>, %401, %cst_138 [1] : vector<2x32xf32> to vector<2xf32>
    %403 = vector.shape_cast %402 : vector<2xf32> to vector<2x1xf32>
    %cst_139 = arith.constant 3.200000e+01 : f32
    %404 = vector.broadcast %cst_139 : f32 to vector<2x1xf32>
    %405 = arith.divf %403, %404 : vector<2x1xf32>
    %cst_140 = arith.constant 9.99999974E-6 : f32
    %406 = vector.broadcast %cst_140 : f32 to vector<2x1xf32>
    %407 = arith.addf %405, %406 : vector<2x1xf32>
    %408 = math.rsqrt %407 : vector<2x1xf32>
    %409 = vector.broadcast %408 : vector<2x1xf32> to vector<2x32xf32>
    %410 = arith.mulf %400, %409 : vector<2x32xf32>
    %411 = vector.broadcast %393 : vector<1x32xf32> to vector<2x32xf32>
    %412 = arith.mulf %410, %411 : vector<2x32xf32>
    %413 = vector.broadcast %394 : vector<1x32xf32> to vector<2x32xf32>
    %414 = arith.addf %412, %413 : vector<2x32xf32>
    %c0_141 = arith.constant 0 : index
    %c1792 = arith.constant 1792 : index
    %415 = vector.load %arg4[%c0_141, %c1792] : memref<32x2432xf32, #tpu.memory_space<vmem>>, vector<32x32xf32>
    %cst_142 = arith.constant dense<0.000000e+00> : vector<2x32xf32>
    %416 = tpu.matmul %414, %415, %cst_142 {dimension_numbers = #tpu.dot_dimension_numbers<[1], [0], [0], [1], [0, 0, 1, 1], [], []>} : vector<2x32xf32>, vector<32x32xf32>, vector<2x32xf32> -> vector<2x32xf32>
    %c46 = arith.constant 46 : index
    %c0_143 = arith.constant 0 : index
    %417 = vector.load %arg5[%c46, %c0_143] : memref<56x128xf32, #tpu.memory_space<vmem>>, vector<1x32xf32>
    %418 = vector.broadcast %417 : vector<1x32xf32> to vector<2x32xf32>
    %419 = arith.addf %416, %418 : vector<2x32xf32>
    %420 = vector.shape_cast %419 : vector<2x32xf32> to vector<2x1x32xf32>
    %421 = vector.extract_strided_slice %253 {offsets = [0, 0, 64], sizes = [2, 8, 16], strides = [1, 1, 1]} : vector<2x8x128xf32> to vector<2x8x16xf32>
    %422 = vector.extract_strided_slice %253 {offsets = [0, 0, 96], sizes = [2, 8, 16], strides = [1, 1, 1]} : vector<2x8x128xf32> to vector<2x8x16xf32>
    %423 = vector.extract_strided_slice %420 {offsets = [0, 0, 0], sizes = [2, 1, 16], strides = [1, 1, 1]} : vector<2x1x32xf32> to vector<2x1x16xf32>
    "tpu.trace_start"() <{level = 10 : i32, message = "bqd,bkd->bqk"}> : () -> ()
    %cst_144 = arith.constant dense<0.000000e+00> : vector<2x1x8xf32>
    %424 = tpu.matmul %423, %421, %cst_144 {dimension_numbers = #tpu.dot_dimension_numbers<[2], [2], [1], [1], [0, 0, 0, 1, 1, 1], [0], [0]>} : vector<2x1x16xf32>, vector<2x8x16xf32>, vector<2x1x8xf32> -> vector<2x1x8xf32>
    "tpu.trace_stop"() : () -> ()
    %cst_145 = arith.constant 2.500000e-01 : f32
    %425 = vector.broadcast %cst_145 : f32 to vector<2x1x8xf32>
    %426 = arith.mulf %424, %425 : vector<2x1x8xf32>
    %cst_146 = arith.constant dense<0xFF800000> : vector<2x1xf32>
    %427 = vector.multi_reduction <maximumf>, %426, %cst_146 [2] : vector<2x1x8xf32> to vector<2x1xf32>
    %428 = vector.shape_cast %427 : vector<2x1xf32> to vector<2x1x1xf32>
    %429 = vector.broadcast %428 : vector<2x1x1xf32> to vector<2x1x8xf32>
    %430 = arith.subf %426, %429 : vector<2x1x8xf32>
    %431 = math.exp %430 : vector<2x1x8xf32>
    %cst_147 = arith.constant dense<0.000000e+00> : vector<2x1xf32>
    %432 = vector.multi_reduction <add>, %431, %cst_147 [2] : vector<2x1x8xf32> to vector<2x1xf32>
    %433 = vector.shape_cast %432 : vector<2x1xf32> to vector<2x1x1xf32>
    %434 = tpu.reciprocal %433 {approx = true} : vector<2x1x1xf32> -> vector<2x1x1xf32>
    %435 = vector.broadcast %434 : vector<2x1x1xf32> to vector<2x1x8xf32>
    %436 = arith.mulf %431, %435 : vector<2x1x8xf32>
    "tpu.trace_start"() <{level = 10 : i32, message = "bqk,bkd->bqd"}> : () -> ()
    %cst_148 = arith.constant dense<0.000000e+00> : vector<2x1x16xf32>
    %437 = tpu.matmul %436, %422, %cst_148 {dimension_numbers = #tpu.dot_dimension_numbers<[2], [1], [1], [2], [0, 0, 0, 1, 1, 2], [0], [0]>} : vector<2x1x8xf32>, vector<2x8x16xf32>, vector<2x1x16xf32> -> vector<2x1x16xf32>
    "tpu.trace_stop"() : () -> ()
    %438 = vector.extract_strided_slice %253 {offsets = [0, 0, 80], sizes = [2, 8, 16], strides = [1, 1, 1]} : vector<2x8x128xf32> to vector<2x8x16xf32>
    %439 = vector.extract_strided_slice %253 {offsets = [0, 0, 112], sizes = [2, 8, 16], strides = [1, 1, 1]} : vector<2x8x128xf32> to vector<2x8x16xf32>
    %440 = vector.extract_strided_slice %420 {offsets = [0, 0, 16], sizes = [2, 1, 16], strides = [1, 1, 1]} : vector<2x1x32xf32> to vector<2x1x16xf32>
    "tpu.trace_start"() <{level = 10 : i32, message = "bqd,bkd->bqk"}> : () -> ()
    %cst_149 = arith.constant dense<0.000000e+00> : vector<2x1x8xf32>
    %441 = tpu.matmul %440, %438, %cst_149 {dimension_numbers = #tpu.dot_dimension_numbers<[2], [2], [1], [1], [0, 0, 0, 1, 1, 1], [0], [0]>} : vector<2x1x16xf32>, vector<2x8x16xf32>, vector<2x1x8xf32> -> vector<2x1x8xf32>
    "tpu.trace_stop"() : () -> ()
    %cst_150 = arith.constant 2.500000e-01 : f32
    %442 = vector.broadcast %cst_150 : f32 to vector<2x1x8xf32>
    %443 = arith.mulf %441, %442 : vector<2x1x8xf32>
    %cst_151 = arith.constant dense<0xFF800000> : vector<2x1xf32>
    %444 = vector.multi_reduction <maximumf>, %443, %cst_151 [2] : vector<2x1x8xf32> to vector<2x1xf32>
    %445 = vector.shape_cast %444 : vector<2x1xf32> to vector<2x1x1xf32>
    %446 = vector.broadcast %445 : vector<2x1x1xf32> to vector<2x1x8xf32>
    %447 = arith.subf %443, %446 : vector<2x1x8xf32>
    %448 = math.exp %447 : vector<2x1x8xf32>
    %cst_152 = arith.constant dense<0.000000e+00> : vector<2x1xf32>
    %449 = vector.multi_reduction <add>, %448, %cst_152 [2] : vector<2x1x8xf32> to vector<2x1xf32>
    %450 = vector.shape_cast %449 : vector<2x1xf32> to vector<2x1x1xf32>
    %451 = tpu.reciprocal %450 {approx = true} : vector<2x1x1xf32> -> vector<2x1x1xf32>
    %452 = vector.broadcast %451 : vector<2x1x1xf32> to vector<2x1x8xf32>
    %453 = arith.mulf %448, %452 : vector<2x1x8xf32>
    "tpu.trace_start"() <{level = 10 : i32, message = "bqk,bkd->bqd"}> : () -> ()
    %cst_153 = arith.constant dense<0.000000e+00> : vector<2x1x16xf32>
    %454 = tpu.matmul %453, %439, %cst_153 {dimension_numbers = #tpu.dot_dimension_numbers<[2], [1], [1], [2], [0, 0, 0, 1, 1, 2], [0], [0]>} : vector<2x1x8xf32>, vector<2x8x16xf32>, vector<2x1x16xf32> -> vector<2x1x16xf32>
    "tpu.trace_stop"() : () -> ()
    %455 = tpu.concatenate %437, %454 in 2 : vector<2x1x16xf32>, vector<2x1x16xf32> -> vector<2x1x32xf32>
    %456 = vector.shape_cast %455 : vector<2x1x32xf32> to vector<2x32xf32>
    %c0_154 = arith.constant 0 : index
    %c1920 = arith.constant 1920 : index
    %457 = vector.load %arg4[%c0_154, %c1920] : memref<32x2432xf32, #tpu.memory_space<vmem>>, vector<32x32xf32>
    %cst_155 = arith.constant dense<0.000000e+00> : vector<2x32xf32>
    %458 = tpu.matmul %456, %457, %cst_155 {dimension_numbers = #tpu.dot_dimension_numbers<[1], [0], [0], [1], [0, 0, 1, 1], [], []>} : vector<2x32xf32>, vector<32x32xf32>, vector<2x32xf32> -> vector<2x32xf32>
    %c47 = arith.constant 47 : index
    %c0_156 = arith.constant 0 : index
    %459 = vector.load %arg5[%c47, %c0_156] : memref<56x128xf32, #tpu.memory_space<vmem>>, vector<1x32xf32>
    %460 = vector.broadcast %459 : vector<1x32xf32> to vector<2x32xf32>
    %461 = arith.addf %458, %460 : vector<2x32xf32>
    %462 = arith.addf %414, %461 : vector<2x32xf32>
    %c52 = arith.constant 52 : index
    %c0_157 = arith.constant 0 : index
    %463 = vector.load %arg5[%c52, %c0_157] : memref<56x128xf32, #tpu.memory_space<vmem>>, vector<1x32xf32>
    %c53 = arith.constant 53 : index
    %c0_158 = arith.constant 0 : index
    %464 = vector.load %arg5[%c53, %c0_158] : memref<56x128xf32, #tpu.memory_space<vmem>>, vector<1x32xf32>
    %cst_159 = arith.constant dense<0.000000e+00> : vector<2xf32>
    %465 = vector.multi_reduction <add>, %462, %cst_159 [1] : vector<2x32xf32> to vector<2xf32>
    %466 = vector.shape_cast %465 : vector<2xf32> to vector<2x1xf32>
    %cst_160 = arith.constant 3.200000e+01 : f32
    %467 = vector.broadcast %cst_160 : f32 to vector<2x1xf32>
    %468 = arith.divf %466, %467 : vector<2x1xf32>
    %469 = vector.broadcast %468 : vector<2x1xf32> to vector<2x32xf32>
    %470 = arith.subf %462, %469 : vector<2x32xf32>
    %471 = arith.mulf %470, %470 : vector<2x32xf32>
    %cst_161 = arith.constant dense<0.000000e+00> : vector<2xf32>
    %472 = vector.multi_reduction <add>, %471, %cst_161 [1] : vector<2x32xf32> to vector<2xf32>
    %473 = vector.shape_cast %472 : vector<2xf32> to vector<2x1xf32>
    %cst_162 = arith.constant 3.200000e+01 : f32
    %474 = vector.broadcast %cst_162 : f32 to vector<2x1xf32>
    %475 = arith.divf %473, %474 : vector<2x1xf32>
    %cst_163 = arith.constant 9.99999974E-6 : f32
    %476 = vector.broadcast %cst_163 : f32 to vector<2x1xf32>
    %477 = arith.addf %475, %476 : vector<2x1xf32>
    %478 = math.rsqrt %477 : vector<2x1xf32>
    %479 = vector.broadcast %478 : vector<2x1xf32> to vector<2x32xf32>
    %480 = arith.mulf %470, %479 : vector<2x32xf32>
    %481 = vector.broadcast %463 : vector<1x32xf32> to vector<2x32xf32>
    %482 = arith.mulf %480, %481 : vector<2x32xf32>
    %483 = vector.broadcast %464 : vector<1x32xf32> to vector<2x32xf32>
    %484 = arith.addf %482, %483 : vector<2x32xf32>
    %c0_164 = arith.constant 0 : index
    %c2048 = arith.constant 2048 : index
    %485 = vector.load %arg4[%c0_164, %c2048] : memref<32x2432xf32, #tpu.memory_space<vmem>>, vector<32x32xf32>
    %cst_165 = arith.constant dense<0.000000e+00> : vector<2x32xf32>
    %486 = tpu.matmul %484, %485, %cst_165 {dimension_numbers = #tpu.dot_dimension_numbers<[1], [0], [0], [1], [0, 0, 1, 1], [], []>} : vector<2x32xf32>, vector<32x32xf32>, vector<2x32xf32> -> vector<2x32xf32>
    %c48 = arith.constant 48 : index
    %c0_166 = arith.constant 0 : index
    %487 = vector.load %arg5[%c48, %c0_166] : memref<56x128xf32, #tpu.memory_space<vmem>>, vector<1x32xf32>
    %488 = vector.broadcast %487 : vector<1x32xf32> to vector<2x32xf32>
    %489 = arith.addf %486, %488 : vector<2x32xf32>
    %cst_167 = arith.constant 0.000000e+00 : f32
    %490 = vector.broadcast %cst_167 : f32 to vector<2x32xf32>
    %491 = arith.maximumf %489, %490 : vector<2x32xf32>
    %c0_168 = arith.constant 0 : index
    %c2176 = arith.constant 2176 : index
    %492 = vector.load %arg4[%c0_168, %c2176] : memref<32x2432xf32, #tpu.memory_space<vmem>>, vector<32x32xf32>
    %cst_169 = arith.constant dense<0.000000e+00> : vector<2x32xf32>
    %493 = tpu.matmul %491, %492, %cst_169 {dimension_numbers = #tpu.dot_dimension_numbers<[1], [0], [0], [1], [0, 0, 1, 1], [], []>} : vector<2x32xf32>, vector<32x32xf32>, vector<2x32xf32> -> vector<2x32xf32>
    %c49 = arith.constant 49 : index
    %c0_170 = arith.constant 0 : index
    %494 = vector.load %arg5[%c49, %c0_170] : memref<56x128xf32, #tpu.memory_space<vmem>>, vector<1x32xf32>
    %495 = vector.broadcast %494 : vector<1x32xf32> to vector<2x32xf32>
    %496 = arith.addf %493, %495 : vector<2x32xf32>
    %497 = arith.addf %484, %496 : vector<2x32xf32>
    %c54 = arith.constant 54 : index
    %c0_171 = arith.constant 0 : index
    %498 = vector.load %arg5[%c54, %c0_171] : memref<56x128xf32, #tpu.memory_space<vmem>>, vector<1x32xf32>
    %c55 = arith.constant 55 : index
    %c0_172 = arith.constant 0 : index
    %499 = vector.load %arg5[%c55, %c0_172] : memref<56x128xf32, #tpu.memory_space<vmem>>, vector<1x32xf32>
    %cst_173 = arith.constant dense<0.000000e+00> : vector<2xf32>
    %500 = vector.multi_reduction <add>, %497, %cst_173 [1] : vector<2x32xf32> to vector<2xf32>
    %501 = vector.shape_cast %500 : vector<2xf32> to vector<2x1xf32>
    %cst_174 = arith.constant 3.200000e+01 : f32
    %502 = vector.broadcast %cst_174 : f32 to vector<2x1xf32>
    %503 = arith.divf %501, %502 : vector<2x1xf32>
    %504 = vector.broadcast %503 : vector<2x1xf32> to vector<2x32xf32>
    %505 = arith.subf %497, %504 : vector<2x32xf32>
    %506 = arith.mulf %505, %505 : vector<2x32xf32>
    %cst_175 = arith.constant dense<0.000000e+00> : vector<2xf32>
    %507 = vector.multi_reduction <add>, %506, %cst_175 [1] : vector<2x32xf32> to vector<2xf32>
    %508 = vector.shape_cast %507 : vector<2xf32> to vector<2x1xf32>
    %cst_176 = arith.constant 3.200000e+01 : f32
    %509 = vector.broadcast %cst_176 : f32 to vector<2x1xf32>
    %510 = arith.divf %508, %509 : vector<2x1xf32>
    %cst_177 = arith.constant 9.99999974E-6 : f32
    %511 = vector.broadcast %cst_177 : f32 to vector<2x1xf32>
    %512 = arith.addf %510, %511 : vector<2x1xf32>
    %513 = math.rsqrt %512 : vector<2x1xf32>
    %514 = vector.broadcast %513 : vector<2x1xf32> to vector<2x32xf32>
    %515 = arith.mulf %505, %514 : vector<2x32xf32>
    %516 = vector.broadcast %498 : vector<1x32xf32> to vector<2x32xf32>
    %517 = arith.mulf %515, %516 : vector<2x32xf32>
    %518 = vector.broadcast %499 : vector<1x32xf32> to vector<2x32xf32>
    %519 = arith.addf %517, %518 : vector<2x32xf32>
    %c10 = arith.constant 10 : index
    %c0_178 = arith.constant 0 : index
    %520 = vector.load %arg5[%c10, %c0_178] : memref<56x128xf32, #tpu.memory_space<vmem>>, vector<1x32xf32>
    %521 = vector.broadcast %520 : vector<1x32xf32> to vector<2x32xf32>
    %522 = arith.mulf %519, %521 : vector<2x32xf32>
    %cst_179 = arith.constant dense<0.000000e+00> : vector<2xf32>
    %523 = vector.multi_reduction <add>, %522, %cst_179 [1] : vector<2x32xf32> to vector<2xf32>
    %524 = vector.shape_cast %523 : vector<2xf32> to vector<2x1xf32>
    %c11 = arith.constant 11 : index
    %c0_180 = arith.constant 0 : index
    %525 = vector.load %arg5[%c11, %c0_180] : memref<56x128xf32, #tpu.memory_space<vmem>>, vector<1x1xf32>
    %526 = vector.broadcast %525 : vector<1x1xf32> to vector<2x1xf32>
    %527 = arith.addf %524, %526 : vector<2x1xf32>
    %c12 = arith.constant 12 : index
    %c0_181 = arith.constant 0 : index
    %528 = vector.load %arg5[%c12, %c0_181] : memref<56x128xf32, #tpu.memory_space<vmem>>, vector<2x16xf32>
    %529 = vector.extract_strided_slice %528 {offsets = [0, 0], sizes = [1, 16], strides = [1, 1]} : vector<2x16xf32> to vector<1x16xf32>
    %530 = vector.broadcast %527 : vector<2x1xf32> to vector<2x16xf32>
    %531 = vector.broadcast %529 : vector<1x16xf32> to vector<2x16xf32>
    %532 = arith.mulf %530, %531 : vector<2x16xf32>
    %c0_182 = arith.constant 0 : index
    %c0_183 = arith.constant 0 : index
    %533 = vector.load %arg3[%c0_182, %c0_183] : memref<2x1xf32, #tpu.memory_space<vmem>>, vector<2x1xf32>
    %534 = vector.extract_strided_slice %528 {offsets = [1, 0], sizes = [1, 16], strides = [1, 1]} : vector<2x16xf32> to vector<1x16xf32>
    %535 = vector.broadcast %533 : vector<2x1xf32> to vector<2x16xf32>
    %536 = vector.broadcast %534 : vector<1x16xf32> to vector<2x16xf32>
    %537 = arith.mulf %535, %536 : vector<2x16xf32>
    %538 = arith.addf %532, %537 : vector<2x16xf32>
    %c14 = arith.constant 14 : index
    %c0_184 = arith.constant 0 : index
    %539 = vector.load %arg5[%c14, %c0_184] : memref<56x128xf32, #tpu.memory_space<vmem>>, vector<1x16xf32>
    %540 = vector.broadcast %539 : vector<1x16xf32> to vector<2x16xf32>
    %541 = arith.addf %538, %540 : vector<2x16xf32>
    %c15 = arith.constant 15 : index
    %c0_185 = arith.constant 0 : index
    %542 = vector.load %arg5[%c15, %c0_185] : memref<56x128xf32, #tpu.memory_space<vmem>>, vector<1x16xf32>
    %543 = vector.broadcast %542 : vector<1x16xf32> to vector<2x16xf32>
    %544 = arith.mulf %541, %543 : vector<2x16xf32>
    %cst_186 = arith.constant dense<0.000000e+00> : vector<2xf32>
    %545 = vector.multi_reduction <add>, %544, %cst_186 [1] : vector<2x16xf32> to vector<2xf32>
    %546 = vector.shape_cast %545 : vector<2xf32> to vector<2x1xf32>
    %c16 = arith.constant 16 : index
    %c0_187 = arith.constant 0 : index
    %547 = vector.load %arg5[%c16, %c0_187] : memref<56x128xf32, #tpu.memory_space<vmem>>, vector<1x1xf32>
    %548 = vector.broadcast %547 : vector<1x1xf32> to vector<2x1xf32>
    %549 = arith.addf %546, %548 : vector<2x1xf32>
    %c0_188 = arith.constant 0 : index
    %c0_189 = arith.constant 0 : index
    %550 = vector.load %arg6[%c0_188, %c0_189] : memref<2x1xf32, #tpu.memory_space<vmem>>, vector<2x1xf32>
    tpu.vector_store %arg6[%c0_188, %c0_189], %549 {strides = array<i32>} : memref<2x1xf32, #tpu.memory_space<vmem>>, vector<2x1xf32>,
    return
  }
  func.func @transform_0(%arg0: i32) -> (i32, i32) {
    %c0_i32 = arith.constant 0 : i32
    %c0_i32_0 = arith.constant 0 : i32
    %c0_i32_1 = arith.constant 0 : i32
    return %c0_i32, %c0_i32_0 : i32, i32
  }
  func.func @transform_1(%arg0: i32) -> (i32, i32) {
    %c0_i32 = arith.constant 0 : i32
    %c0_i32_0 = arith.constant 0 : i32
    %c0_i32_1 = arith.constant 0 : i32
    return %c0_i32, %c0_i32_0 : i32, i32
  }
  func.func @transform_2(%arg0: i32) -> (i32, i32) {
    %c0_i32 = arith.constant 0 : i32
    %c0_i32_0 = arith.constant 0 : i32
    %c0_i32_1 = arith.constant 0 : i32
    return %c0_i32, %c0_i32_0 : i32, i32
  }
  func.func @transform_3(%arg0: i32) -> (i32, i32) {
    %c0_i32 = arith.constant 0 : i32
    %c0_i32_0 = arith.constant 0 : i32
    %c0_i32_1 = arith.constant 0 : i32
    return %c0_i32, %c0_i32_0 : i32, i32
  }
  func.func @transform_4(%arg0: i32) -> (i32, i32) {
    %c0_i32 = arith.constant 0 : i32
    %c0_i32_0 = arith.constant 0 : i32
    %c0_i32_1 = arith.constant 0 : i32
    return %c0_i32, %c0_i32_0 : i32, i32
  }
  func.func @transform_5(%arg0: i32) -> (i32, i32) {
    %c0_i32 = arith.constant 0 : i32
    %c0_i32_0 = arith.constant 0 : i32
    %c0_i32_1 = arith.constant 0 : i32
    return %c0_i32, %c0_i32_0 : i32, i32
  }
}

</mosaic_0001>

<bundles_post_ra>
// kernel: forward.1
= control target key start
LH: loop header
LB: loop body
LE: loop exit
PB: predicated region body
PF: predicated region fallthrough
CT: control target
= control target key end

     0   :  { %10 = vsyncpa [#allocation3], 0  ;;  %s6354_s0 = inlined_call_operand.vmem [shape: f32[8,2], index: 0, kind: input, shape index: {}]   ;;  %s6355_s1 = inlined_call_operand.vmem [shape: f32[2,1], index: 1, kind: input, shape index: {}]   ;;  %s6356_s2 = inlined_call_operand.vmem [shape: f32[2,1], index: 2, kind: input, shape index: {}]   ;;  %s6357_s3 = inlined_call_operand.hbm [shape: f32[32,2432], index: 3, kind: input, shape index: {}]   ;;  %s6358_s4 = inlined_call_operand.hbm [shape: f32[56,128], index: 4, kind: input, shape index: {}]   ;;  %s6359_s5 = inlined_call_operand.vmem [shape: f32[2,1], index: 5, kind: output, shape index: {}]  }
   0x1   :  { %11 = vsyncpa [#allocation5], 0  ;;  %s5830_s18 = smov [#allocation2]   ;;  %s5782_s22 = scalar_lea.hbm %s6357_s3, 9728 }
   0x2   :  { %s23_s19 = sshll.u32 %s5830_s18, 4  ;;  %p5783_p0 = scmp.ne.s32.totalorder %s6357_s3, %s5782_s22  ;;  %s24_s19 = int_to_ptr.vmem [resolvable:$true] %s23_s19 }
   0x3   :  { %p5786_p1 = scmp.lt.u32.totalorder %s5782_s22, %s6357_s3 }
   0x5   :  { %p5788_p2 = pnand %p5786_p1, %p5783_p0 }
   0x7   :  { %5791 = shalt.err (!%p5788_p2)
}
   0x8   :  { %s5792_s27 = scalar_lea.vmem %s24_s19, 9728  ;;  %p5797_p4 = scmp.lt.s32.totalorder %s24_s19, %s24_s19 }
   0x9   :  { %p5793_p3 = scmp.ne.s32.totalorder %s24_s19, %s5792_s27  ;;  %p5798_p5 = scmp.lt.s32.totalorder %s5792_s27, %s5792_s27 }
   0xb   :  { %p5799_p6 = por %p5798_p5, %p5797_p4 }
   0xd   :  { %p5800_p7 = pnand %p5799_p6, %p5793_p3 }
   0xf   :  { %5803 = shalt.err (!%p5800_p7)
}
  0x10   :  { %s5831_s28 = smov 2432   ;;  %s5832_s29 = smov 152  }
  0x11   :  { %29 = dma.hbm_to_vmem [thread:$0]  %s6357_s3, 9728, %s24_s19, [#allocation3], %s5831_s28, %s5831_s28, %s5832_s29  }
  0x12   :  { %s5833_s7 = smov [#allocation4]   ;;  %s5804_s11 = scalar_lea.hbm %s6358_s4, 896 }
  0x13   :  { %s35_s8 = sshll.u32 %s5833_s7, 4  ;;  %p5805_p8 = scmp.ne.s32.totalorder %s6358_s4, %s5804_s11  ;;  %s36_s8 = int_to_ptr.vmem [resolvable:$true] %s35_s8 }
  0x14   :  { %p5808_p9 = scmp.lt.u32.totalorder %s5804_s11, %s6358_s4 }
  0x16   :  { %p5810_p10 = pnand %p5808_p9, %p5805_p8 }
  0x18   :  { %5813 = shalt.err (!%p5810_p10)
}
  0x19   :  { %s5814_s16 = scalar_lea.vmem %s36_s8, 896  ;;  %p5819_p12 = scmp.lt.s32.totalorder %s36_s8, %s36_s8 }
  0x1a   :  { %p5815_p11 = scmp.ne.s32.totalorder %s36_s8, %s5814_s16  ;;  %p5820_p13 = scmp.lt.s32.totalorder %s5814_s16, %s5814_s16 }
  0x1c   :  { %p5821_p0 = por %p5820_p13, %p5819_p12 }
  0x1e   :  { %p5822_p1 = pnand %p5821_p0, %p5815_p11 }
  0x20   :  { %5825 = shalt.err (!%p5822_p1)
}
  0x21   :  { %s5834_s3 = smov 128   ;;  %s5835_s17 = smov 8  }
  0x22   :  { %41 = dma.hbm_to_vmem [thread:$0]  %s6358_s4, 896, %s36_s8, [#allocation5], %s5834_s3, %s5834_s3, %s5835_s17  }
  0x23   :  { %5826 = dma.done.wait [#allocation3], 9728  }
  0x24   :  { %5827 = vsyncadd [#allocation3], 4294957568 }
  0x25   :  { %5828 = dma.done.wait [#allocation5], 896  }
  0x26   :  { %5829 = vsyncadd [#allocation5], 4294966400  ;;  %v5836_v0 = vmov 0   ;;  %v51_v1 = vld [vmem:[%s6354_s0] sm:$0xff]  ;;  %v89_v3 = vld [vmem:[#allocation2 + $0x98] sm:$0xff]  ;;  %v5837_v5 = vmov 1  }
  0x27   :  { %5683 = vset.pattern.permute.xlu0 %v5836_v0  ;;  %5686 = vset.pattern.permute.xlu1 %v5836_v0  ;;  %v88_v2 = vld [vmem:[#allocation2] sm:$0xff]  ;;  %v90_v6 = vld [vmem:[#allocation2 + $0x130] sm:$0xff]  ;;  %v91_v7 = vld [vmem:[#allocation2 + $0x1c8] sm:$0xff]  ;;  %vm97_vm0 = vcmask 261120   ;;  %v5838_v20 = vmov 0.0   ;;  %vm5839_vm1 = vmmov 0  }
  0x28   :  { %54 = vperm.xlu0 %5683, %v51_v1   ;;  %v5532_v4 = vpack.c.bf16 %v89_v3, %v88_v2  ;;  %v5536_v8 = vpack.c.bf16 %v91_v7, %v90_v6  ;;  %v4873_v9 = vld [vmem:[#allocation4 + $0x8] ss:$0 sm:$0xff]  ;;  %v4874_v11 = vld [vmem:[#allocation4 + $0x9] ss:$0 sm:$0xff]  ;;  %v50_v13 = vld [vmem:[#allocation4] sm:$0xff]  ;;  %5174 = vmatprep.subr.mxu1 %v5838_v20  ;;  %s5840_s0 = smov 96  }
  0x29   :  { %5176 = vmatprep.mubr.msk.f32.mxu1 %vm5839_vm1, %v5838_v20  ;;  %v4875_v21 = vld [vmem:[#allocation4 + $0x12] ss:$0 sm:$0xff]  ;;  %vm182_vm2 = vcmask 130048   ;;  %vm336_vm3 = vcmask 64512   ;;  %s5841_s4 = smov 64   ;;  %s5842_s22 = smov 80  }
  0x2a   :  { %5533 = vmatprep.subr.bf16.mxu0 %v5532_v4  ;;  %s5843_s23 = smov 112   ;;  %s5844_s24 = smov 48   ;;  %vm2503_vm4 = vcmask 254976   ;;  %vm2784_vm5 = vcmask 57344   ;;  %vm3321_vm6 = vcmask 1041409   ;;  %vm4855_vm7 = vcmask 123904  }
  0x2b   :  { %5535 = vmatpush3.bf16.msra.mxu0 %v5532_v4  ;;  %s5845_s25 = smov 16   ;;  %vm4865_vm8 = vcmask 1024  }
  0x2c   :  { %5684 = vset.pattern.permute.xlu0 %v5837_v5  ;;  %5537 = vmatprep.subr.bf16.mxu0 %v5536_v8 }
  0x2d   :  { %69 = vperm.xlu0 %5684, %v51_v1  }
  0x2f   :  { %5539 = vmatpush3.bf16.msra.mxu0 %v5536_v8 }
  0x30   :  { %5194 = vmatprep.subr.mxu0 %v5838_v20 }
  0x31   :  { %5685 = vset.pattern.permute.xlu0 %v5836_v0 }
  0xa7   :  { %v55_v10 = vpop.permute.xlu0 %54 }
  0xa8   :  { %v61_v12 = vmul.f32 %v4873_v9, %v55_v10 }
  0xaa   :  { %v66_v14 = vadd.f32 %v4874_v11, %v61_v12 }
  0xac   :  { %v70_v15 = vpop.permute.xlu0 %69  ;;  %v5906_v16 = vadd.f32 %v66_v14, %v50_v13 }
  0xad   :  { %v72_v17 = vmul.f32 %v4873_v9, %v70_v15 }
  0xae   :  { %5171 = vmatprep.mubr.msk.f32.mxu0 %vm97_vm0, %v5906_v16 }
  0xaf   :  { %v73_v18 = vadd.f32 %v4874_v11, %v72_v17 }
  0xb1   :  { %v5910_v19 = vadd.f32 %v73_v18, %v50_v13 }
  0xb3   :  { %5172 = vmatmul.mubr.msk.f32.vlgmr.msra.gmra.mrb[0].mxu0 %vm97_vm0, %v5910_v19 }
  0xb4   :  { %5196 = vmatprep.mubr.msk.f32.mxu0 %vm5839_vm1, %v5838_v20 }
 0x186   :  { %v5173_v22 = vpop.f32.mrb[0].mxu0 }
 0x187   :  { %v170_v23 = vpop.f32.mrb[1].mxu0  ;;  %v5924_v25 = vadd.f32 %v5173_v22, %v4875_v21 }
 0x188   :  { %v5920_v24 = vadd.f32 %v4875_v21, %v170_v23 }
 0x18a   :  { %180 = vrot.lane.b32.xlu1 %v5920_v24, %s5840_s0 }
 0x18e   :  { %258 = vrot.lane.b32.xlu1 %v5924_v25, %s5840_s0 }
 0x1fc   :  { %v181_v26 = vpop.permute.xlu1 %180 }
 0x1fd   :  { %5175 = vmatpush3.xpose.msk.msra.mxu1 %vm182_vm2, %v181_v26 }
 0x1fe   :  { %5179 = vmatprep.subr.mxu1 %v5838_v20 }
 0x200   :  { %5177 = vmatmul.mubr.msk.f32.vlgmr.msra.gmra.mrb[0].mxu1 %vm182_vm2, %v5920_v24  ;;  %v259_v27 = vpop.permute.xlu1 %258 }
 0x201   :  { %5180 = vmatpush3.xpose.msk.msra.mxu1 %vm182_vm2, %v259_v27  ;;  %5181 = vmatprep.mubr.msk.f32.mxu1 %vm5839_vm1, %v5838_v20 }
 0x202   :  { %5184 = vmatprep.subr.mxu1 %v5838_v20 }
 0x204   :  { %5182 = vmatmul.mubr.msk.f32.vlgmr.msra.gmra.mrb[2].mxu1 %vm182_vm2, %v5924_v25 }
 0x205   :  { %5186 = vmatprep.mubr.msk.f32.mxu1 %vm5839_vm1, %v5838_v20 }
 0x2d3   :  { %v253_v28 = vpop.f32.mrb[0].mxu1 }
 0x2d4   :  { %v334_v29 = vmul.f32 0.25, %v253_v28  ;;  %v5178_v30 = vpop.f32.mrb[1].mxu1 }
 0x2d5   :  { %v855_v30 = vld [vmem:[#allocation2 + $0x138] sm:$0xff] }
 0x2d6   :  { %v337_v31 = vsel %vm336_vm3, %v334_v29, -inf }
 0x2d7   :  { %338 = vmax.xlane.f32.xlu1 %v337_v31  ;;  %v330_v32 = vpop.f32.mrb[2].mxu1  ;;  %v856_v31 = vld [vmem:[#allocation2 + $0x1d0] sm:$0xff] }
 0x2d8   :  { %v335_v33 = vmul.f32 0.25, %v330_v32  ;;  %v5183_v34 = vpop.f32.mrb[3].mxu1  ;;  %v5544_v32 = vpack.c.bf16 %v856_v31, %v855_v30 }
 0x2da   :  { %v340_v35 = vsel %vm336_vm3, %v335_v33, -inf }
 0x2db   :  { %341 = vmax.xlane.f32.xlu0 %v340_v35 }
 0x2e8   :  { %435 = vrot.lane.b32.xlu1 %v5924_v25, %s5841_s4 }
 0x2ec   :  { %513 = vrot.lane.b32.xlu1 %v5920_v24, %s5842_s22 }
 0x364   :  { %v339_v36 = vpop.xlane.xlu1 %338 }
 0x365   :  { %v343_v37 = vsub.f32 %v334_v29, %v339_v36  ;;  %v854_v29 = vld [vmem:[#allocation2 + $0xa0] sm:$0xff] }
 0x367   :  { %v345_v38 = vmul.f32 1.442695, %v343_v37 }
 0x368   :  { %v342_v39 = vpop.xlane.xlu0 %341  ;;  %v436_v40 = vpop.permute.xlu1 %435 }
 0x369   :  { %5687 = vpow2.f32 %v345_v38  ;;  %v344_v41 = vsub.f32 %v335_v33, %v342_v39 }
 0x36b   :  { %v347_v42 = vmul.f32 1.442695, %v344_v41  ;;  %v4890_v41 = vld [vmem:[#allocation4 + $0x13] ss:$0 sm:$0xff] }
 0x36c   :  { %v514_v43 = vpop.permute.xlu1 %513 }
 0x36d   :  { %5689 = vpow2.f32 %v347_v42  ;;  %5195 = vmatpush3.xpose.msk.msra.mxu0 %vm182_vm2, %v514_v43 }
 0x36e   :  { %5204 = vmatprep.subr.mxu0 %v5838_v20 }
 0x373   :  { %v5688_v44 = vpop.eup %5687 }
 0x374   :  { %v349_v45 = vsel %vm336_vm3, %v5688_v44, 0.0 }
 0x375   :  { %350 = vadd.xlane.f32.xlu0 %v349_v45 }
 0x377   :  { %v5690_v46 = vpop.eup %5689 }
 0x378   :  { %v352_v47 = vsel %vm336_vm3, %v5690_v46, 0.0 }
 0x379   :  { %353 = vadd.xlane.f32.xlu1 %v352_v47 }
 0x38a   :  { %511 = vrot.lane.b32.xlu1 %v5920_v24, %s5843_s23 }
 0x38b   :  { %359 = vrot.lane.b32.xlu0 %v5920_v24, %s5841_s4 }
 0x38f   :  { %591 = vrot.lane.b32.xlu0 %v5924_v25, %s5842_s22 }
 0x393   :  { %589 = vrot.lane.b32.xlu0 %v5924_v25, %s5843_s23 }
 0x402   :  { %v351_v48 = vpop.xlane.xlu0 %350 }
 0x403   :  { %5691 = vrcp.f32 %v351_v48 }
 0x406   :  { %v360_v49 = vpop.permute.xlu0 %359  ;;  %v354_v50 = vpop.xlane.xlu1 %353 }
 0x407   :  { %5693 = vrcp.f32 %v354_v50  ;;  %5185 = vmatpush3.msra.mxu1 %v360_v49 }
 0x408   :  { %5189 = vmatprep.subr.mxu1 %v5838_v20 }
 0x40a   :  { %v512_v51 = vpop.permute.xlu1 %511  ;;  %v592_v56 = vpop.permute.xlu0 %591 }
 0x40b   :  { %5197 = vmatmul.mubr.msk.f32.vlgmr.msra.gmra.mrb[2].mxu0 %vm182_vm2, %v512_v51 }
 0x40c   :  { %5206 = vmatprep.mubr.msk.f32.mxu0 %vm5839_vm1, %v5838_v20 }
 0x40d   :  { %v5692_v52 = vpop.eup %5691 }
 0x40e   :  { %v357_v53 = vmul.f32 %v5692_v52, %v5688_v44  ;;  %v590_v57 = vpop.permute.xlu0 %589 }
 0x410   :  { %5187 = vmatmul.mubr.msk.f32.vlgmr.msra.gmra.mrb[4].mxu1 %vm336_vm3, %v357_v53 }
 0x411   :  { %v5694_v54 = vpop.eup %5693  ;;  %5190 = vmatpush3.msra.mxu1 %v436_v40  ;;  %5191 = vmatprep.mubr.msk.f32.mxu1 %vm5839_vm1, %v5838_v20 }
 0x412   :  { %v358_v55 = vmul.f32 %v5694_v54, %v5690_v46  ;;  %5199 = vmatprep.subr.mxu1 %v5838_v20 }
 0x414   :  { %5192 = vmatmul.mubr.msk.f32.vlgmr.msra.gmra.mrb[6].mxu1 %vm336_vm3, %v358_v55 }
 0x415   :  { %5201 = vmatprep.mubr.msk.f32.mxu1 %vm5839_vm1, %v5838_v20 }
 0x418   :  { %5200 = vmatpush3.xpose.msk.msra.mxu1 %vm182_vm2, %v592_v56 }
 0x419   :  { %5209 = vmatprep.subr.mxu1 %v5838_v20 }
 0x41b   :  { %5202 = vmatmul.mubr.msk.f32.vlgmr.msra.gmra.mrb[8].mxu1 %vm182_vm2, %v590_v57 }
 0x41c   :  { %5211 = vmatprep.mubr.msk.f32.mxu1 %vm5839_vm1, %v5838_v20 }
 0x4de   :  { %v585_v58 = vpop.f32.mrb[2].mxu0 }
 0x4df   :  { %v667_v59 = vmul.f32 0.25, %v585_v58  ;;  %v5198_v60 = vpop.f32.mrb[3].mxu0 }
 0x4e1   :  { %v669_v61 = vsel %vm336_vm3, %v667_v59, -inf }
 0x4e2   :  { %670 = vmax.xlane.f32.xlu1 %v669_v61  ;;  %v988_v61 = vld [vmem:[#allocation2 + $0x140] sm:$0xff] }
 0x4e3   :  { %v431_v62 = vpop.f32.mrb[4].mxu1 }
 0x4e4   :  { %v5188_v63 = vpop.f32.mrb[5].mxu1 }
 0x4e7   :  { %v507_v0 = vpop.f32.mrb[6].mxu1 }
 0x4e8   :  { %v5193_v1 = vpop.f32.mrb[7].mxu1 }
 0x4e9   :  { %v1079_v1 = vld [vmem:[#allocation2 + $0xb0] sm:$0xff] }
 0x4ee   :  { %v663_v2 = vpop.f32.mrb[8].mxu1 }
 0x4ef   :  { %v668_v3 = vmul.f32 0.25, %v663_v2  ;;  %v5203_v4 = vpop.f32.mrb[9].mxu1 }
 0x4f1   :  { %v672_v5 = vsel %vm336_vm3, %v668_v3, -inf }
 0x4f2   :  { %673 = vmax.xlane.f32.xlu0 %v672_v5 }
 0x56f   :  { %v671_v6 = vpop.xlane.xlu1 %670 }
 0x570   :  { %v675_v7 = vsub.f32 %v667_v59, %v671_v6  ;;  %v987_v59 = vld [vmem:[#allocation2 + $0xa8] sm:$0xff] }
 0x572   :  { %v677_v8 = vmul.f32 1.442695, %v675_v7 }
 0x574   :  { %5695 = vpow2.f32 %v677_v8 }
 0x57e   :  { %v5696_v9 = vpop.eup %5695 }
 0x57f   :  { %v674_v10 = vpop.xlane.xlu0 %673  ;;  %v681_v11 = vsel %vm336_vm3, %v5696_v9, 0.0 }
 0x580   :  { %v676_v12 = vsub.f32 %v668_v3, %v674_v10  ;;  %682 = vadd.xlane.f32.xlu0 %v681_v11  ;;  %v4893_v10 = vld [vmem:[#allocation4 + $0x16] ss:$0 sm:$0xff] }
 0x582   :  { %v679_v13 = vmul.f32 1.442695, %v676_v12 }
 0x584   :  { %5697 = vpow2.f32 %v679_v13 }
 0x58e   :  { %v5698_v14 = vpop.eup %5697 }
 0x58f   :  { %v684_v15 = vsel %vm336_vm3, %v5698_v14, 0.0 }
 0x590   :  { %685 = vadd.xlane.f32.xlu1 %v684_v15 }
 0x596   :  { %691 = vrot.lane.b32.xlu0 %v5920_v24, %s5844_s24  ;;  %v853_v24 = vld [vmem:[#allocation2 + $0x8] sm:$0xff] }
 0x5a1   :  { %767 = vrot.lane.b32.xlu1 %v5924_v25, %s5844_s24  ;;  %v5540_v25 = vpack.c.bf16 %v854_v29, %v853_v24 }
 0x60d   :  { %v683_v17 = vpop.xlane.xlu0 %682 }
 0x60e   :  { %5699 = vrcp.f32 %v683_v17 }
 0x611   :  { %v692_v18 = vpop.permute.xlu0 %691 }
 0x612   :  { %5205 = vmatpush3.msra.mxu0 %v692_v18 }
 0x613   :  { %5541 = vmatprep.subr.bf16.mxu0 %v5540_v25 }
 0x618   :  { %v5700_v21 = vpop.eup %5699 }
 0x619   :  { %v689_v22 = vmul.f32 %v5700_v21, %v5696_v9 }
 0x61b   :  { %5207 = vmatmul.mubr.msk.f32.vlgmr.msra.gmra.mrb[4].mxu0 %vm336_vm3, %v689_v22  ;;  %v1080_v22 = vld [vmem:[#allocation2 + $0x148] sm:$0xff] }
 0x61c   :  { %5543 = vmatpush3.bf16.msra.mxu0 %v5540_v25 }
 0x61d   :  { %v686_v23 = vpop.xlane.xlu1 %685  ;;  %5545 = vmatprep.subr.bf16.mxu0 %v5544_v32 }
 0x61e   :  { %5701 = vrcp.f32 %v686_v23  ;;  %v1081_v23 = vld [vmem:[#allocation2 + $0x1e0] sm:$0xff] }
 0x620   :  { %5547 = vmatpush3.bf16.msra.mxu0 %v5544_v32  ;;  %v4898_v32 = vld [vmem:[#allocation4 + $0x15] ss:$0 sm:$0xff] }
 0x621   :  { %v768_v26 = vpop.permute.xlu1 %767 }
 0x622   :  { %5210 = vmatpush3.msra.mxu1 %v768_v26  ;;  %v5560_v26 = vpack.c.bf16 %v1081_v23, %v1080_v22 }
 0x628   :  { %v5702_v27 = vpop.eup %5701 }
 0x629   :  { %v690_v28 = vmul.f32 %v5702_v27, %v5698_v14  ;;  %v4894_v14 = vld [vmem:[#allocation4 + $0x17] ss:$0 sm:$0xff]  ;;  %v4895_v27 = vld [vmem:[#allocation4 + $0x14] ss:$0 sm:$0xff] }
 0x62b   :  { %5212 = vmatmul.mubr.msk.f32.vlgmr.msra.gmra.mrb[10].mxu1 %vm336_vm3, %v690_v28 }
 0x6ee   :  { %v763_v33 = vpop.f32.mrb[4].mxu0 }
 0x6ef   :  { %845 = vrot.lane.b32.xlu1 %v763_v33, %s5845_s25  ;;  %v5208_v34 = vpop.f32.mrb[5].mxu0 }
 0x6fe   :  { %v839_v35 = vpop.f32.mrb[10].mxu1 }
 0x6ff   :  { %847 = vrot.lane.b32.xlu0 %v839_v35, %s5845_s25  ;;  %v5213_v36 = vpop.f32.mrb[11].mxu1 }
 0x761   :  { %v846_v37 = vpop.permute.xlu1 %845 }
 0x762   :  { %v851_v38 = vsel %vm182_vm2, %v431_v62, %v846_v37  ;;  %v989_v62 = vld [vmem:[#allocation2 + $0x1d8] sm:$0xff] }
 0x763   :  { %5222 = vmatprep.mubr.msk.f32.mxu0 %vm97_vm0, %v851_v38  ;;  %v5552_v63 = vpack.c.bf16 %v989_v62, %v988_v61  ;;  %v4901_v62 = vld [vmem:[#allocation4 + $0x18] ss:$0 sm:$0xff] }
 0x771   :  { %v848_v39 = vpop.permute.xlu0 %847 }
 0x772   :  { %v852_v40 = vsel %vm182_vm2, %v507_v0, %v848_v39  ;;  %v1078_v0 = vld [vmem:[#allocation2 + $0x18] sm:$0xff] }
 0x773   :  { %5223 = vmatmul.mubr.msk.f32.vlgmr.msra.gmra.mrb[6].mxu0 %vm97_vm0, %v852_v40  ;;  %v5556_v2 = vpack.c.bf16 %v1079_v1, %v1078_v0 }
 0x775   :  { %5557 = vmatprep.subr.bf16.mxu0 %v5556_v2 }
 0x776   :  { %5559 = vmatpush3.bf16.msra.mxu0 %v5556_v2  ;;  %v4902_v2 = vld [vmem:[#allocation4 + $0x19] ss:$0 sm:$0xff] }
 0x777   :  { %5561 = vmatprep.subr.bf16.mxu0 %v5560_v26 }
 0x77a   :  { %5563 = vmatpush3.bf16.msra.mxu0 %v5560_v26 }
 0x77b   :  { %5258 = vmatprep.subr.mxu0 %v5838_v20 }
 0x846   :  { %v5224_v42 = vpop.f32.mrb[6].mxu0 }
 0x847   :  { %v940_v43 = vadd.f32 %v5224_v42, %v4890_v41  ;;  %v934_v44 = vpop.f32.mrb[7].mxu0 }
 0x848   :  { %v935_v45 = vadd.f32 %v4890_v41, %v934_v44 }
 0x849   :  { %v944_v46 = vadd.f32 %v940_v43, %v5910_v19 }
 0x84a   :  { %v943_v47 = vadd.f32 %v935_v45, %v5906_v16  ;;  %v986_v16 = vld [vmem:[#allocation2 + $0x10] sm:$0xff] }
 0x84b   :  { %v950_v48 = vsel %vm97_vm0, %v944_v46, 0.0  ;;  %v5548_v60 = vpack.c.bf16 %v987_v59, %v986_v16 }
 0x84c   :  { %951 = vadd.xlane.f32.xlu0 %v950_v48  ;;  %v947_v49 = vsel %vm97_vm0, %v943_v47, 0.0 }
 0x84d   :  { %948 = vadd.xlane.f32.xlu1 %v947_v49  ;;  %5549 = vmatprep.subr.bf16.mxu1 %v5548_v60 }
 0x84e   :  { %5551 = vmatpush3.bf16.msra.mxu1 %v5548_v60 }
 0x84f   :  { %5553 = vmatprep.subr.bf16.mxu1 %v5552_v63 }
 0x852   :  { %5555 = vmatpush3.bf16.msra.mxu1 %v5552_v63 }
 0x8d9   :  { %v952_v50 = vpop.xlane.xlu0 %951 }
 0x8da   :  { %v955_v51 = vmul.f32 0.03125, %v952_v50  ;;  %v949_v52 = vpop.xlane.xlu1 %948 }
 0x8db   :  { %v954_v53 = vmul.f32 0.03125, %v949_v52  ;;  %v1211_v52 = vld [vmem:[#allocation2 + $0xb8] sm:$0xff] }
 0x8dc   :  { %v957_v54 = vsub.f32 %v944_v46, %v955_v51  ;;  %v1210_v51 = vld [vmem:[#allocation2 + $0x20] sm:$0xff] }
 0x8dd   :  { %v956_v55 = vsub.f32 %v943_v47, %v954_v53  ;;  %v5564_v53 = vpack.c.bf16 %v1211_v52, %v1210_v51 }
 0x8de   :  { %v959_v56 = vmul.f32 %v957_v54, %v957_v54 }
 0x8df   :  { %v958_v57 = vmul.f32 %v956_v55, %v956_v55  ;;  %5565 = vmatprep.subr.bf16.mxu1 %v5564_v53 }
 0x8e0   :  { %v963_v58 = vsel %vm97_vm0, %v959_v56, 0.0 }
 0x8e1   :  { %964 = vadd.xlane.f32.xlu1 %v963_v58  ;;  %v960_v19 = vsel %vm97_vm0, %v958_v57, 0.0 }
 0x8e2   :  { %961 = vadd.xlane.f32.xlu0 %v960_v19 }
 0x96e   :  { %v965_v3 = vpop.xlane.xlu1 %964 }
 0x96f   :  { %v967_v4 = vmul.f32 0.03125, %v965_v3  ;;  %v962_v5 = vpop.xlane.xlu0 %961 }
 0x970   :  { %v966_v6 = vmul.f32 0.03125, %v962_v5 }
 0x971   :  { %v969_v7 = vadd.f32 1e-05, %v967_v4 }
 0x972   :  { %v968_v8 = vadd.f32 1e-05, %v966_v6 }
 0x973   :  { %5703 = vrsqrt.f32 %v969_v7  ;;  %v4903_v7 = vld [vmem:[#allocation4 + $0x1a] ss:$0 sm:$0xff] }
 0x974   :  { %5705 = vrsqrt.f32 %v968_v8 }
 0x97d   :  { %v5704_v9 = vpop.eup %5703 }
 0x97e   :  { %v5706_v11 = vpop.eup %5705  ;;  %v973_v12 = vmul.f32 %v5704_v9, %v957_v54  ;;  %v1212_v54 = vld [vmem:[#allocation2 + $0x150] sm:$0xff] }
 0x97f   :  { %v972_v13 = vmul.f32 %v5706_v11, %v956_v55  ;;  %v1213_v55 = vld [vmem:[#allocation2 + $0x1e8] sm:$0xff] }
 0x980   :  { %v979_v15 = vmul.f32 %v4893_v10, %v973_v12  ;;  %v5568_v56 = vpack.c.bf16 %v1213_v55, %v1212_v54 }
 0x981   :  { %v978_v17 = vmul.f32 %v4893_v10, %v972_v13 }
 0x982   :  { %v985_v21 = vadd.f32 %v4894_v14, %v979_v15 }
 0x983   :  { %v984_v18 = vadd.f32 %v4894_v14, %v978_v17 }
 0x985   :  { %5233 = vmatprep.mubr.msk.f32.mxu1 %vm97_vm0, %v984_v18 }
 0x986   :  { %5234 = vmatmul.mubr.msk.f32.vlgmr.msra.gmra.mrb[12].mxu1 %vm97_vm0, %v985_v21 }
 0x987   :  { %5567 = vmatpush3.bf16.msra.mxu1 %v5564_v53 }
 0x988   :  { %5569 = vmatprep.subr.bf16.mxu1 %v5568_v56 }
 0x98b   :  { %5571 = vmatpush3.bf16.msra.mxu1 %v5568_v56 }
 0x98c   :  { %5263 = vmatprep.subr.mxu1 %v5838_v20 }
 0xa59   :  { %v5235_v28 = vpop.f32.mrb[12].mxu1 }
 0xa5a   :  { %v1073_v24 = vadd.f32 %v5235_v28, %v4895_v27  ;;  %v1067_v29 = vpop.f32.mrb[13].mxu1 }
 0xa5b   :  { %v1068_v30 = vadd.f32 %v4895_v27, %v1067_v29 }
 0xa5c   :  { %v1077_v31 = vmax.f32 %v1073_v24, 0.0 }
 0xa5d   :  { %v1076_v25 = vmax.f32 %v1068_v30, 0.0 }
 0xa5f   :  { %5244 = vmatprep.mubr.msk.f32.mxu0 %vm97_vm0, %v1076_v25 }
 0xa60   :  { %5245 = vmatmul.mubr.msk.f32.vlgmr.msra.gmra.mrb[8].mxu0 %vm97_vm0, %v1077_v31 }
 0xa61   :  { %5260 = vmatprep.mubr.msk.f32.mxu0 %vm5839_vm1, %v5838_v20 }
 0xb33   :  { %v5246_v33 = vpop.f32.mrb[8].mxu0 }
 0xb34   :  { %v1165_v34 = vadd.f32 %v5246_v33, %v4898_v32  ;;  %v1159_v35 = vpop.f32.mrb[9].mxu0 }
 0xb35   :  { %v1160_v36 = vadd.f32 %v4898_v32, %v1159_v35 }
 0xb36   :  { %v1169_v37 = vadd.f32 %v1165_v34, %v985_v21 }
 0xb37   :  { %v1168_v38 = vadd.f32 %v1160_v36, %v984_v18 }
 0xb38   :  { %v1175_v39 = vsel %vm97_vm0, %v1169_v37, 0.0 }
 0xb39   :  { %1176 = vadd.xlane.f32.xlu1 %v1175_v39  ;;  %v1172_v40 = vsel %vm97_vm0, %v1168_v38, 0.0 }
 0xb3a   :  { %1173 = vadd.xlane.f32.xlu0 %v1172_v40 }
 0xbc6   :  { %v1177_v41 = vpop.xlane.xlu1 %1176 }
 0xbc7   :  { %v1179_v42 = vmul.f32 0.03125, %v1177_v41  ;;  %v1174_v43 = vpop.xlane.xlu0 %1173 }
 0xbc8   :  { %v1178_v44 = vmul.f32 0.03125, %v1174_v43 }
 0xbc9   :  { %v1181_v45 = vsub.f32 %v1169_v37, %v1179_v42 }
 0xbca   :  { %v1180_v46 = vsub.f32 %v1168_v38, %v1178_v44 }
 0xbcb   :  { %v1183_v47 = vmul.f32 %v1181_v45, %v1181_v45 }
 0xbcc   :  { %v1182_v48 = vmul.f32 %v1180_v46, %v1180_v46 }
 0xbcd   :  { %v1187_v49 = vsel %vm97_vm0, %v1183_v47, 0.0 }
 0xbce   :  { %1188 = vadd.xlane.f32.xlu1 %v1187_v49  ;;  %v1184_v50 = vsel %vm97_vm0, %v1182_v48, 0.0 }
 0xbcf   :  { %1185 = vadd.xlane.f32.xlu0 %v1184_v50 }
 0xc5b   :  { %v1189_v57 = vpop.xlane.xlu1 %1188 }
 0xc5c   :  { %v1191_v58 = vmul.f32 0.03125, %v1189_v57  ;;  %v1186_v19 = vpop.xlane.xlu0 %1185 }
 0xc5d   :  { %v1190_v16 = vmul.f32 0.03125, %v1186_v19 }
 0xc5e   :  { %v1193_v59 = vadd.f32 1e-05, %v1191_v58 }
 0xc5f   :  { %v1192_v60 = vadd.f32 1e-05, %v1190_v16 }
 0xc60   :  { %5707 = vrsqrt.f32 %v1193_v59 }
 0xc61   :  { %5709 = vrsqrt.f32 %v1192_v60 }
 0xc6a   :  { %v5708_v61 = vpop.eup %5707 }
 0xc6b   :  { %v5710_v63 = vpop.eup %5709  ;;  %v1197_v0 = vmul.f32 %v5708_v61, %v1181_v45 }
 0xc6c   :  { %v1196_v1 = vmul.f32 %v5710_v63, %v1180_v46 }
 0xc6d   :  { %v1203_v3 = vmul.f32 %v4901_v62, %v1197_v0 }
 0xc6e   :  { %v1202_v4 = vmul.f32 %v4901_v62, %v1196_v1 }
 0xc6f   :  { %v6010_v6 = vadd.f32 %v4902_v2, %v1203_v3 }
 0xc70   :  { %v6008_v5 = vadd.f32 %v4902_v2, %v1202_v4 }
 0xc72   :  { %5255 = vmatprep.mubr.msk.f32.mxu1 %vm97_vm0, %v6008_v5 }
 0xc73   :  { %5256 = vmatmul.mubr.msk.f32.vlgmr.msra.gmra.mrb[14].mxu1 %vm97_vm0, %v6010_v6 }
 0xc74   :  { %5265 = vmatprep.mubr.msk.f32.mxu1 %vm5839_vm1, %v5838_v20 }
 0xd46   :  { %v5257_v8 = vpop.f32.mrb[14].mxu1 }
 0xd47   :  { %v6018_v9 = vadd.f32 %v5257_v8, %v4903_v7  ;;  %v1291_v10 = vpop.f32.mrb[15].mxu1 }
 0xd48   :  { %v6020_v11 = vadd.f32 %v4903_v7, %v1291_v10 }
 0xd49   :  { %1378 = vrot.lane.b32.xlu1 %v6018_v9, %s5840_s0 }
 0xd4a   :  { %1301 = vrot.lane.b32.xlu0 %v6020_v11, %s5840_s0 }
 0xdbb   :  { %v1379_v12 = vpop.permute.xlu1 %1378 }
 0xdbc   :  { %5264 = vmatpush3.xpose.msk.msra.mxu1 %vm182_vm2, %v1379_v12  ;;  %v1302_v13 = vpop.permute.xlu0 %1301 }
 0xdbd   :  { %5259 = vmatpush3.xpose.msk.msra.mxu0 %vm182_vm2, %v1302_v13  ;;  %5273 = vmatprep.subr.mxu1 %v5838_v20 }
 0xdbe   :  { %5268 = vmatprep.subr.mxu0 %v5838_v20 }
 0xdbf   :  { %5266 = vmatmul.mubr.msk.f32.vlgmr.msra.gmra.mrb[16].mxu1 %vm182_vm2, %v6018_v9 }
 0xdc0   :  { %5261 = vmatmul.mubr.msk.f32.vlgmr.msra.gmra.mrb[10].mxu0 %vm182_vm2, %v6020_v11  ;;  %5275 = vmatprep.mubr.msk.f32.mxu1 %vm5839_vm1, %v5838_v20 }
 0xdc1   :  { %5270 = vmatprep.mubr.msk.f32.mxu0 %vm5839_vm1, %v5838_v20 }
 0xe92   :  { %v1450_v14 = vpop.f32.mrb[16].mxu1 }
 0xe93   :  { %v1455_v15 = vmul.f32 0.25, %v1450_v14  ;;  %v1373_v17 = vpop.f32.mrb[10].mxu0  ;;  %v5267_v18 = vpop.f32.mrb[17].mxu1 }
 0xe94   :  { %v1454_v21 = vmul.f32 0.25, %v1373_v17  ;;  %v5262_v22 = vpop.f32.mrb[11].mxu0  ;;  %v1974_v17 = vld [vmem:[#allocation2 + $0x158] sm:$0xff]  ;;  %v1975_v18 = vld [vmem:[#allocation2 + $0x1f0] sm:$0xff] }
 0xe95   :  { %v1459_v23 = vsel %vm336_vm3, %v1455_v15, -inf }
 0xe96   :  { %1460 = vmax.xlane.f32.xlu0 %v1459_v23  ;;  %v1456_v26 = vsel %vm336_vm3, %v1454_v21, -inf }
 0xe97   :  { %1457 = vmax.xlane.f32.xlu1 %v1456_v26 }
 0xea8   :  { %1554 = vrot.lane.b32.xlu1 %v6018_v9, %s5841_s4 }
 0xeac   :  { %1478 = vrot.lane.b32.xlu0 %v6020_v11, %s5841_s4  ;;  %1632 = vrot.lane.b32.xlu1 %v6020_v11, %s5842_s22 }
 0xf23   :  { %v1461_v27 = vpop.xlane.xlu0 %1460 }
 0xf24   :  { %v1463_v28 = vsub.f32 %v1455_v15, %v1461_v27  ;;  %v1458_v24 = vpop.xlane.xlu1 %1457  ;;  %v1973_v15 = vld [vmem:[#allocation2 + $0xc0] sm:$0xff] }
 0xf25   :  { %v1462_v29 = vsub.f32 %v1454_v21, %v1458_v24  ;;  %v5576_v21 = vpack.c.bf16 %v1975_v18, %v1974_v17 }
 0xf26   :  { %v1466_v30 = vmul.f32 1.442695, %v1463_v28 }
 0xf27   :  { %v1464_v25 = vmul.f32 1.442695, %v1462_v29  ;;  %v1479_v31 = vpop.permute.xlu0 %1478 }
 0xf28   :  { %5711 = vpow2.f32 %v1466_v30  ;;  %v1555_v32 = vpop.permute.xlu1 %1554  ;;  %5269 = vmatpush3.msra.mxu0 %v1479_v31 }
 0xf29   :  { %5713 = vpow2.f32 %v1464_v25  ;;  %5274 = vmatpush3.msra.mxu1 %v1555_v32  ;;  %5278 = vmatprep.subr.mxu0 %v5838_v20  ;;  %v4918_v25 = vld [vmem:[#allocation4 + $0x1b] ss:$0 sm:$0xff] }
 0xf2a   :  { %5283 = vmatprep.subr.mxu1 %v5838_v20 }
 0xf2c   :  { %v1633_v37 = vpop.permute.xlu1 %1632 }
 0xf32   :  { %v5712_v33 = vpop.eup %5711 }
 0xf33   :  { %v5714_v34 = vpop.eup %5713  ;;  %v1471_v35 = vsel %vm336_vm3, %v5712_v33, 0.0 }
 0xf34   :  { %1472 = vadd.xlane.f32.xlu1 %v1471_v35  ;;  %v1468_v36 = vsel %vm336_vm3, %v5714_v34, 0.0 }
 0xf35   :  { %1469 = vadd.xlane.f32.xlu0 %v1468_v36 }
 0xf45   :  { %1630 = vrot.lane.b32.xlu1 %v6020_v11, %s5843_s23 }
 0xf4b   :  { %1710 = vrot.lane.b32.xlu0 %v6018_v9, %s5842_s22 }
 0xf4f   :  { %1708 = vrot.lane.b32.xlu0 %v6018_v9, %s5843_s23 }
 0xfc1   :  { %v1473_v38 = vpop.xlane.xlu1 %1472 }
 0xfc2   :  { %5715 = vrcp.f32 %v1473_v38  ;;  %v1470_v39 = vpop.xlane.xlu0 %1469 }
 0xfc3   :  { %5717 = vrcp.f32 %v1470_v39 }
 0xfc5   :  { %v1631_v46 = vpop.permute.xlu1 %1630 }
 0xfc6   :  { %v1711_v41 = vpop.permute.xlu0 %1710 }
 0xfca   :  { %v1709_v45 = vpop.permute.xlu0 %1708 }
 0xfcc   :  { %v5716_v40 = vpop.eup %5715 }
 0xfcd   :  { %v5718_v42 = vpop.eup %5717  ;;  %v1477_v43 = vmul.f32 %v5716_v40, %v5712_v33 }
 0xfce   :  { %v1476_v44 = vmul.f32 %v5718_v42, %v5714_v34 }
 0xfcf   :  { %5276 = vmatmul.mubr.msk.f32.vlgmr.msra.gmra.mrb[18].mxu1 %vm336_vm3, %v1477_v43 }
 0xfd0   :  { %5284 = vmatpush3.xpose.msk.msra.mxu1 %vm182_vm2, %v1711_v41  ;;  %5271 = vmatmul.mubr.msk.f32.vlgmr.msra.gmra.mrb[12].mxu0 %vm336_vm3, %v1476_v44 }
 0xfd1   :  { %5279 = vmatpush3.xpose.msk.msra.mxu0 %vm182_vm2, %v1633_v37  ;;  %5285 = vmatprep.mubr.msk.f32.mxu1 %vm5839_vm1, %v5838_v20 }
 0xfd2   :  { %5280 = vmatprep.mubr.msk.f32.mxu0 %vm5839_vm1, %v5838_v20  ;;  %5293 = vmatprep.subr.mxu1 %v5838_v20 }
 0xfd3   :  { %5286 = vmatmul.mubr.msk.f32.vlgmr.msra.gmra.mrb[20].mxu1 %vm182_vm2, %v1709_v45  ;;  %5288 = vmatprep.subr.mxu0 %v5838_v20 }
 0xfd4   :  { %5281 = vmatmul.mubr.msk.f32.vlgmr.msra.gmra.mrb[14].mxu0 %vm182_vm2, %v1631_v46  ;;  %5295 = vmatprep.mubr.msk.f32.mxu1 %vm5839_vm1, %v5838_v20 }
 0xfd5   :  { %5290 = vmatprep.mubr.msk.f32.mxu0 %vm5839_vm1, %v5838_v20 }
0x10a2   :  { %v6072_v47 = vpop.f32.mrb[18].mxu1 }
0x10a3   :  { %v1550_v48 = vpop.f32.mrb[12].mxu0  ;;  %v5277_v49 = vpop.f32.mrb[19].mxu1 }
0x10a4   :  { %v5272_v50 = vpop.f32.mrb[13].mxu0 }
0x10a5   :  { %v2106_v50 = vld [vmem:[#allocation2 + $0x160] sm:$0xff] }
0x10a6   :  { %v1782_v51 = vpop.f32.mrb[20].mxu1 }
0x10a7   :  { %v1787_v52 = vmul.f32 0.25, %v1782_v51  ;;  %v1704_v53 = vpop.f32.mrb[14].mxu0  ;;  %v5287_v54 = vpop.f32.mrb[21].mxu1  ;;  %v2107_v51 = vld [vmem:[#allocation2 + $0x1f8] sm:$0xff] }
0x10a8   :  { %v1786_v55 = vmul.f32 0.25, %v1704_v53  ;;  %v5282_v56 = vpop.f32.mrb[15].mxu0  ;;  %v75_v53 = vld [vmem:[%s6355_s1] sm:$0x3]  ;;  %v2196_v54 = vld [vmem:[#allocation2 + $0x38] sm:$0xff]  ;;  %s5848_s1 = smov 32  }
0x10a9   :  { %v1791_v57 = vsel %vm336_vm3, %v1787_v52, -inf }
0x10aa   :  { %1792 = vmax.xlane.f32.xlu0 %v1791_v57  ;;  %v1788_v58 = vsel %vm336_vm3, %v1786_v55, -inf }
0x10ab   :  { %1789 = vmax.xlane.f32.xlu1 %v1788_v58 }
0x1137   :  { %v1793_v19 = vpop.xlane.xlu0 %1792 }
0x1138   :  { %v1795_v16 = vsub.f32 %v1787_v52, %v1793_v19  ;;  %v1790_v59 = vpop.xlane.xlu1 %1789  ;;  %v5584_v52 = vpack.c.bf16 %v2107_v51, %v2106_v50 }
0x1139   :  { %v1794_v60 = vsub.f32 %v1786_v55, %v1790_v59  ;;  %v2197_v55 = vld [vmem:[#allocation2 + $0xd0] sm:$0xff] }
0x113a   :  { %v1798_v61 = vmul.f32 1.442695, %v1795_v16  ;;  %v5588_v56 = vpack.c.bf16 %v2197_v55, %v2196_v54 }
0x113b   :  { %v1796_v62 = vmul.f32 1.442695, %v1794_v60 }
0x113c   :  { %5719 = vpow2.f32 %v1798_v61 }
0x113d   :  { %5721 = vpow2.f32 %v1796_v62  ;;  %v4921_v62 = vld [vmem:[#allocation4 + $0x1e] ss:$0 sm:$0xff] }
0x1146   :  { %v5720_v63 = vpop.eup %5719 }
0x1147   :  { %v5722_v0 = vpop.eup %5721  ;;  %v1803_v1 = vsel %vm336_vm3, %v5720_v63, 0.0 }
0x1148   :  { %1804 = vadd.xlane.f32.xlu1 %v1803_v1  ;;  %v1800_v2 = vsel %vm336_vm3, %v5722_v0, 0.0 }
0x1149   :  { %1801 = vadd.xlane.f32.xlu0 %v1800_v2  ;;  %v4922_v2 = vld [vmem:[#allocation4 + $0x1f] ss:$0 sm:$0xff] }
0x1159   :  { %1886 = vrot.lane.b32.xlu1 %v6018_v9, %s5844_s24  ;;  %v1972_v9 = vld [vmem:[#allocation2 + $0x28] sm:$0xff] }
0x115f   :  { %1810 = vrot.lane.b32.xlu0 %v6020_v11, %s5844_s24  ;;  %v5572_v11 = vpack.c.bf16 %v1973_v15, %v1972_v9  ;;  %v83_v9 = vlaneseq  ;;  %v4923_v15 = vld [vmem:[#allocation4 + $0x1c] ss:$0 sm:$0xff] }
0x1161   :  { %v6103_v17 = vshrl.u32 %v83_v9, 7 }
0x11d5   :  { %v1805_v3 = vpop.xlane.xlu1 %1804 }
0x11d6   :  { %5723 = vrcp.f32 %v1805_v3  ;;  %v1802_v4 = vpop.xlane.xlu0 %1801 }
0x11d7   :  { %5725 = vrcp.f32 %v1802_v4 }
0x11d9   :  { %v1887_v7 = vpop.permute.xlu1 %1886 }
0x11da   :  { %5294 = vmatpush3.msra.mxu1 %v1887_v7  ;;  %v1811_v8 = vpop.permute.xlu0 %1810 }
0x11db   :  { %5289 = vmatpush3.msra.mxu0 %v1811_v8 }
0x11dc   :  { %5573 = vmatprep.subr.bf16.mxu0 %v5572_v11 }
0x11e0   :  { %v5724_v10 = vpop.eup %5723 }
0x11e1   :  { %v5726_v12 = vpop.eup %5725  ;;  %v1809_v13 = vmul.f32 %v5724_v10, %v5720_v63  ;;  %v2198_v10 = vld [vmem:[#allocation2 + $0x168] sm:$0xff] }
0x11e2   :  { %v1808_v14 = vmul.f32 %v5726_v12, %v5722_v0  ;;  %v2199_v12 = vld [vmem:[#allocation2 + $0x200] sm:$0xff] }
0x11e3   :  { %5296 = vmatmul.mubr.msk.f32.vlgmr.msra.gmra.mrb[22].mxu1 %vm336_vm3, %v1809_v13  ;;  %v5592_v13 = vpack.c.bf16 %v2199_v12, %v2198_v10 }
0x11e4   :  { %5291 = vmatmul.mubr.msk.f32.vlgmr.msra.gmra.mrb[16].mxu0 %vm336_vm3, %v1808_v14  ;;  %v5846_v14 = vmov 0.0|0.0  }
0x11e5   :  { %5575 = vmatpush3.bf16.msra.mxu0 %v5572_v11 }
0x11e6   :  { %5577 = vmatprep.subr.bf16.mxu0 %v5576_v21 }
0x11e9   :  { %5579 = vmatpush3.bf16.msra.mxu0 %v5576_v21 }
0x11ea   :  { %5589 = vmatprep.subr.bf16.mxu0 %v5588_v56 }
0x12b6   :  { %v1958_v22 = vpop.f32.mrb[22].mxu1 }
0x12b7   :  { %v1882_v23 = vpop.f32.mrb[16].mxu0  ;;  %1966 = vrot.lane.b32.xlu0 %v1958_v22, %s5845_s25  ;;  %v5297_v26 = vpop.f32.mrb[23].mxu1 }
0x12b8   :  { %1964 = vrot.lane.b32.xlu1 %v1882_v23, %s5845_s25  ;;  %v5292_v27 = vpop.f32.mrb[17].mxu0  ;;  %v2418_v23 = vld [vmem:[#allocation2 + $0x40] sm:$0xff]  ;;  %v2419_v26 = vld [vmem:[#allocation2 + $0xd8] sm:$0xff] }
0x1329   :  { %v1967_v28 = vpop.permute.xlu0 %1966 }
0x132a   :  { %v1965_v24 = vpop.permute.xlu1 %1964  ;;  %v1971_v30 = vsel %vm182_vm2, %v6072_v47, %v1967_v28  ;;  %v6106_v28 = vsub.s32 0, %v6103_v17 }
0x132b   :  { %v1970_v29 = vsel %vm182_vm2, %v1550_v48, %v1965_v24  ;;  %v2105_v48 = vld [vmem:[#allocation2 + $0xc8] sm:$0xff] }
0x132c   :  { %5306 = vmatprep.mubr.msk.f32.mxu0 %vm97_vm0, %v1970_v29  ;;  %v5779_v24 = vld [vmem:[#allocation4 + $0x8] ss:$0 sm:$0xff] }
0x132d   :  { %5307 = vmatmul.mubr.msk.f32.vlgmr.msra.gmra.mrb[18].mxu0 %vm97_vm0, %v1971_v30 }
0x132e   :  { %5591 = vmatpush3.bf16.msra.mxu0 %v5588_v56 }
0x132f   :  { %5593 = vmatprep.subr.bf16.mxu0 %v5592_v13 }
0x1332   :  { %5595 = vmatpush3.bf16.msra.mxu0 %v5592_v13 }
0x1333   :  { %5604 = vmatprep.subr.bf16.mxu0 %v5846_v14 }
0x1400   :  { %v5308_v31 = vpop.f32.mrb[18].mxu0 }
0x1401   :  { %v2059_v32 = vadd.f32 %v5308_v31, %v4918_v25  ;;  %v2053_v33 = vpop.f32.mrb[19].mxu0 }
0x1402   :  { %v2054_v34 = vadd.f32 %v4918_v25, %v2053_v33  ;;  %v5605_v25 = vpack.c.bf16 %v2419_v26, %v2418_v23  ;;  %v2421_v33 = vld [vmem:[#allocation2 + $0x208] sm:$0xff] }
0x1403   :  { %v2063_v35 = vadd.f32 %v2059_v32, %v6010_v6  ;;  %v2420_v32 = vld [vmem:[#allocation2 + $0x170] sm:$0xff] }
0x1404   :  { %v2062_v36 = vadd.f32 %v2054_v34, %v6008_v5  ;;  %v2104_v5 = vld [vmem:[#allocation2 + $0x30] sm:$0xff]  ;;  %v5780_v34 = vld [vmem:[#allocation4] sm:$0xff] }
0x1405   :  { %v2069_v37 = vsel %vm97_vm0, %v2063_v35, 0.0  ;;  %v5580_v49 = vpack.c.bf16 %v2105_v48, %v2104_v5 }
0x1406   :  { %2070 = vadd.xlane.f32.xlu0 %v2069_v37  ;;  %v2066_v38 = vsel %vm97_vm0, %v2062_v36, 0.0 }
0x1407   :  { %2067 = vadd.xlane.f32.xlu1 %v2066_v38  ;;  %5581 = vmatprep.subr.bf16.mxu1 %v5580_v49  ;;  %v5608_v38 = vpack.c.bf16 %v2421_v33, %v2420_v32  ;;  %v2527_v33 = vld [vmem:[#allocation2 + $0x48] sm:$0xff] }
0x1408   :  { %5583 = vmatpush3.bf16.msra.mxu1 %v5580_v49 }
0x1409   :  { %5585 = vmatprep.subr.bf16.mxu1 %v5584_v52 }
0x140c   :  { %5587 = vmatpush3.bf16.msra.mxu1 %v5584_v52 }
0x1493   :  { %v2071_v39 = vpop.xlane.xlu0 %2070 }
0x1494   :  { %v2073_v40 = vmul.f32 0.03125, %v2071_v39  ;;  %v2068_v41 = vpop.xlane.xlu1 %2067 }
0x1495   :  { %v2072_v42 = vmul.f32 0.03125, %v2068_v41 }
0x1496   :  { %v2075_v43 = vsub.f32 %v2063_v35, %v2073_v40  ;;  %v86_v35 = vrot.slane %v5780_v34, %v6106_v28  ;;  %v4926_v40 = vld [vmem:[#allocation4 + $0x1d] ss:$0 sm:$0xff]  ;;  %v2528_v34 = vld [vmem:[#allocation2 + $0xe0] sm:$0xff] }
0x1497   :  { %v2074_v44 = vsub.f32 %v2062_v36, %v2072_v42  ;;  %v5781_v36 = vld [vmem:[#allocation4 + $0x9] ss:$0 sm:$0xff] }
0x1498   :  { %v2077_v45 = vmul.f32 %v2075_v43, %v2075_v43 }
0x1499   :  { %v2076_v46 = vmul.f32 %v2074_v44, %v2074_v44 }
0x149a   :  { %v2081_v47 = vsel %vm97_vm0, %v2077_v45, 0.0 }
0x149b   :  { %2082 = vadd.xlane.f32.xlu1 %v2081_v47  ;;  %v2078_v6 = vsel %vm97_vm0, %v2076_v46, 0.0  ;;  %v4934_v46 = vld [vmem:[#allocation4 + $0x22] ss:$0 sm:$0xff] }
0x149c   :  { %2079 = vadd.xlane.f32.xlu0 %v2078_v6 }
0x14b2   :  { %78 = vperm.xlu0 %5685, %v75_v53  }
0x1528   :  { %v2083_v57 = vpop.xlane.xlu1 %2082 }
0x1529   :  { %v2085_v58 = vmul.f32 0.03125, %v2083_v57  ;;  %v2080_v19 = vpop.xlane.xlu0 %2079 }
0x152a   :  { %v2084_v16 = vmul.f32 0.03125, %v2080_v19 }
0x152b   :  { %v2087_v59 = vadd.f32 1e-05, %v2085_v58 }
0x152c   :  { %v2086_v60 = vadd.f32 1e-05, %v2084_v16 }
0x152d   :  { %5727 = vrsqrt.f32 %v2087_v59 }
0x152e   :  { %5729 = vrsqrt.f32 %v2086_v60 }
0x1531   :  { %v79_v18 = vpop.permute.xlu0 %78 }
0x1532   :  { %v81_v29 = vmul.f32 %v5779_v24, %v79_v18 }
0x1534   :  { %v82_v37 = vadd.f32 %v5781_v36, %v81_v29  ;;  %v4930_v29 = vld [vmem:[#allocation4 + $0x21] ss:$0 sm:$0xff] }
0x1536   :  { %v87_v39 = vadd.f32 %v86_v35, %v82_v37  ;;  %v5611_v37 = vpack.c.bf16 %v2528_v34, %v2527_v33 }
0x1537   :  { %v5728_v61 = vpop.eup %5727 }
0x1538   :  { %v5730_v63 = vpop.eup %5729  ;;  %v2091_v0 = vmul.f32 %v5728_v61, %v2075_v43 }
0x1539   :  { %v2090_v1 = vmul.f32 %v5730_v63, %v2074_v44 }
0x153a   :  { %v2097_v3 = vmul.f32 %v4921_v62, %v2091_v0 }
0x153b   :  { %v2096_v4 = vmul.f32 %v4921_v62, %v2090_v1 }
0x153c   :  { %v2103_v8 = vadd.f32 %v4922_v2, %v2097_v3  ;;  %v2329_v3 = vld [vmem:[#allocation2 + $0x128] sm:$0xff] }
0x153d   :  { %v2102_v7 = vadd.f32 %v4922_v2, %v2096_v4  ;;  %v2328_v2 = vld [vmem:[#allocation2 + $0x90] sm:$0xff] }
0x153e   :  { %v5596_v4 = vpack.c.bf16 %v2329_v3, %v2328_v2 }
0x153f   :  { %5317 = vmatprep.mubr.msk.f32.mxu1 %vm97_vm0, %v2102_v7 }
0x1540   :  { %5318 = vmatmul.mubr.msk.f32.vlgmr.msra.gmra.mrb[24].mxu1 %vm97_vm0, %v2103_v8  ;;  %5597 = vmatprep.subr.bf16.mxu1 %v5596_v4 }
0x1541   :  { %5599 = vmatpush3.bf16.msra.mxu1 %v5596_v4 }
0x1613   :  { %v5319_v11 = vpop.f32.mrb[24].mxu1 }
0x1614   :  { %v2191_v21 = vadd.f32 %v5319_v11, %v4923_v15  ;;  %v2185_v22 = vpop.f32.mrb[25].mxu1 }
0x1615   :  { %v2186_v27 = vadd.f32 %v4923_v15, %v2185_v22 }
0x1616   :  { %v2195_v31 = vmax.f32 %v2191_v21, 0.0 }
0x1617   :  { %v2194_v30 = vmax.f32 %v2186_v27, 0.0  ;;  %v4929_v27 = vld [vmem:[#allocation4 + $0x20] ss:$0 sm:$0xff] }
0x1619   :  { %5328 = vmatprep.mubr.msk.f32.mxu0 %vm97_vm0, %v2194_v30 }
0x161a   :  { %5329 = vmatmul.mubr.msk.f32.vlgmr.msra.gmra.mrb[20].mxu0 %vm97_vm0, %v2195_v31 }
0x161b   :  { %5606 = vmatpush3.bf16.msra.mxu0 %v5605_v25  ;;  %5350 = vmatprep.mubr.msk.f32.mxu0 %vm5839_vm1, %v5838_v20 }
0x161c   :  { %5607 = vmatprep.subr.bf16.mxu0 %v5846_v14 }
0x161f   :  { %5609 = vmatpush3.bf16.msra.mxu0 %v5608_v38 }
0x1620   :  { %5364 = vmatprep.subr.mxu0 %v5838_v20 }
0x1622   :  { %5351 = vmatmul.mubr.msk.f32.vlgmr.msra.gmra.mrb[22].mxu0 %vm97_vm0, %v87_v39 }
0x1623   :  { %5366 = vmatprep.mubr.msk.f32.mxu0 %vm5839_vm1, %v5838_v20 }
0x16ed   :  { %v5330_v41 = vpop.f32.mrb[20].mxu0 }
0x16ee   :  { %v2277_v42 = vpop.f32.mrb[21].mxu0  ;;  %v2283_v43 = vadd.f32 %v5330_v41, %v4926_v40  ;;  %v2530_v41 = vld [vmem:[#allocation2 + $0x210] sm:$0xff] }
0x16ef   :  { %v2278_v44 = vadd.f32 %v4926_v40, %v2277_v42  ;;  %v2529_v40 = vld [vmem:[#allocation2 + $0x178] sm:$0xff]  ;;  %v4936_v42 = vld [vmem:[#allocation4 + $0x27] ss:$0 sm:$0xff] }
0x16f0   :  { %v2287_v6 = vadd.f32 %v2283_v43, %v2103_v8  ;;  %v2331_v8 = vld [vmem:[#allocation2 + $0x258] sm:$0xff]  ;;  %v5614_v43 = vpack.c.bf16 %v2530_v41, %v2529_v40 }
0x16f1   :  { %v2286_v45 = vadd.f32 %v2278_v44, %v2102_v7  ;;  %v2330_v7 = vld [vmem:[#allocation2 + $0x1c0] sm:$0xff] }
0x16f2   :  { %v2293_v50 = vsel %vm97_vm0, %v2287_v6, 0.0  ;;  %v5600_v10 = vpack.c.bf16 %v2331_v8, %v2330_v7 }
0x16f3   :  { %v2290_v47 = vsel %vm97_vm0, %v2286_v45, 0.0 }
0x16f4   :  { %2291 = vadd.xlane.f32.xlu1 %v2290_v47  ;;  %5601 = vmatprep.subr.bf16.mxu1 %v5600_v10  ;;  %v4931_v47 = vld [vmem:[#allocation4 + $0x11] ss:$0 sm:$0xff] }
0x16f5   :  { %v2496_v5 = vpop.f32.mrb[22].mxu0  ;;  %5603 = vmatpush3.bf16.msra.mxu1 %v5600_v10 }
0x16f6   :  { %v2497_v48 = vadd.f32 %v4934_v46, %v2496_v5  ;;  %v5352_v49 = vpop.f32.mrb[23].mxu0  ;;  %5610 = vmatprep.subr.bf16.mxu1 %v5846_v14 }
0x16f8   :  { %2294 = vadd.xlane.f32.xlu1 %v2293_v50  ;;  %v2500_v51 = vadd.f32 %v2497_v48, %v87_v39 }
0x16fa   :  { %v2504_v52 = vsel %vm2503_vm4, %v2500_v51, 0.0 }
0x16fc   :  { %2505 = vadd.xlane.f32.xlu1 %v2504_v52 }
0x1781   :  { %v2292_v53 = vpop.xlane.xlu1 %2291 }
0x1782   :  { %v2296_v54 = vmul.f32 0.03125, %v2292_v53  ;;  %v4938_v53 = vld [vmem:[#allocation4 + $0x23] ss:$0 sm:$0xff] }
0x1784   :  { %v2298_v55 = vsub.f32 %v2286_v45, %v2296_v54  ;;  %v4937_v45 = vld [vmem:[#allocation4 + $0x28] ss:$0 sm:$0xff] }
0x1785   :  { %v2295_v56 = vpop.xlane.xlu1 %2294 }
0x1786   :  { %v2297_v57 = vmul.f32 0.03125, %v2295_v56  ;;  %v2300_v58 = vmul.f32 %v2298_v55, %v2298_v55 }
0x1788   :  { %v2299_v19 = vsub.f32 %v2287_v6, %v2297_v57  ;;  %v2302_v16 = vsel %vm97_vm0, %v2300_v58, 0.0  ;;  %v5847_v6 = vmov 1966171168  }
0x1789   :  { %2303 = vadd.xlane.f32.xlu1 %v2302_v16  ;;  %v2506_v59 = vpop.xlane.xlu1 %2505  ;;  %v2611_v5 = vunpack.c.l.s4 %v5847_v6 }
0x178a   :  { %v2507_v60 = vmul.f32 0.03125, %v2506_v59  ;;  %v2301_v61 = vmul.f32 %v2299_v19, %v2299_v19 }
0x178b   :  { %v2612_v52 = vunpack.c.0.s8 %v2611_v5 }
0x178c   :  { %v2508_v62 = vsub.f32 %v2500_v51, %v2507_v60  ;;  %v2305_v63 = vsel %vm97_vm0, %v2301_v61, 0.0 }
0x178d   :  { %2306 = vadd.xlane.f32.xlu1 %v2305_v63  ;;  %v6150_v54 = vsub.s32 %v2612_v52, %v6103_v17 }
0x178e   :  { %v2509_v0 = vmul.f32 %v2508_v62, %v2508_v62 }
0x1790   :  { %v2510_v1 = vsel %vm2503_vm4, %v2509_v0, 0.0 }
0x1791   :  { %2511 = vadd.xlane.f32.xlu1 %v2510_v1 }
0x1816   :  { %v2304_v12 = vpop.xlane.xlu1 %2303 }
0x1817   :  { %v2308_v13 = vmul.f32 0.03125, %v2304_v12 }
0x1819   :  { %v2310_v9 = vadd.f32 1e-05, %v2308_v13 }
0x181a   :  { %v2307_v15 = vpop.xlane.xlu1 %2306 }
0x181b   :  { %5731 = vrsqrt.f32 %v2310_v9  ;;  %v2309_v11 = vmul.f32 0.03125, %v2307_v15 }
0x181d   :  { %v2311_v18 = vadd.f32 1e-05, %v2309_v11 }
0x181e   :  { %v2512_v21 = vpop.xlane.xlu1 %2511 }
0x181f   :  { %5733 = vrsqrt.f32 %v2311_v18  ;;  %v2513_v22 = vmul.f32 0.03125, %v2512_v21 }
0x1821   :  { %v2514_v23 = vadd.f32 1e-05, %v2513_v22 }
0x1823   :  { %5735 = vrsqrt.f32 %v2514_v23 }
0x1825   :  { %v5732_v26 = vpop.eup %5731 }
0x1826   :  { %v2314_v24 = vmul.f32 %v5732_v26, %v2298_v55 }
0x1828   :  { %v2320_v30 = vmul.f32 %v4929_v27, %v2314_v24 }
0x1829   :  { %v5734_v25 = vpop.eup %5733 }
0x182a   :  { %v2315_v31 = vmul.f32 %v5734_v25, %v2299_v19  ;;  %v2326_v32 = vadd.f32 %v4930_v29, %v2320_v30 }
0x182c   :  { %v2321_v35 = vmul.f32 %v4929_v27, %v2315_v31  ;;  %5339 = vmatprep.mubr.msk.f32.mxu1 %vm97_vm0, %v2326_v32 }
0x182d   :  { %v5736_v36 = vpop.eup %5735 }
0x182e   :  { %v2516_v38 = vmul.f32 %v5736_v36, %v2508_v62  ;;  %v2327_v39 = vadd.f32 %v4930_v29, %v2321_v35 }
0x1830   :  { %5340 = vmatmul.mubr.msk.f32.vlgmr.msra.gmra.mrb[26].mxu1 %vm97_vm0, %v2327_v39  ;;  %v2521_v44 = vmul.f32 %v4936_v42, %v2516_v38 }
0x1831   :  { %5612 = vmatpush3.bf16.msra.mxu1 %v5611_v37  ;;  %5361 = vmatprep.mubr.msk.f32.mxu1 %vm5839_vm1, %v5838_v20 }
0x1832   :  { %5613 = vmatprep.subr.bf16.mxu1 %v5846_v14  ;;  %v6130_v46 = vadd.f32 %v4937_v45, %v2521_v44 }
0x1835   :  { %5615 = vmatpush3.bf16.msra.mxu1 %v5614_v43 }
0x1836   :  { %5369 = vmatprep.subr.mxu1 %v5838_v20 }
0x1838   :  { %5362 = vmatmul.mubr.msk.f32.vlgmr.msra.gmra.mrb[28].mxu1 %vm97_vm0, %v6130_v46 }
0x1839   :  { %5371 = vmatprep.mubr.msk.f32.mxu1 %vm5839_vm1, %v5838_v20 }
0x1903   :  { %v5341_v48 = vpop.f32.mrb[26].mxu1 }
0x1904   :  { %v6137_v49 = vadd.f32 %v5341_v48, %v4931_v47  ;;  %v2409_v50 = vpop.f32.mrb[27].mxu1 }
0x1905   :  { %v6139_v51 = vadd.f32 %v4931_v47, %v2409_v50 }
0x1906   :  { %5370 = vmatpush3.xpose.msk.msra.mxu1 %vm182_vm2, %v6137_v49 }
0x1907   :  { %2807 = vrot.lane.b32.xlu0 %v6139_v51, %s5840_s0  ;;  %5365 = vmatpush3.xpose.msk.msra.mxu0 %vm182_vm2, %v6139_v51 }
0x1908   :  { %5374 = vmatprep.subr.mxu0 %v5838_v20  ;;  %5379 = vmatprep.subr.mxu1 %v5838_v20 }
0x190b   :  { %v2605_v55 = vpop.f32.mrb[28].mxu1  ;;  %3047 = vrot.lane.b32.xlu0 %v6137_v49, %s5843_s23 }
0x190c   :  { %v2606_v56 = vadd.f32 %v4938_v53, %v2605_v55  ;;  %v5363_v57 = vpop.f32.mrb[29].mxu1 }
0x190e   :  { %v2616_v58 = vrot.slane %v2606_v56, %v6150_v54 }
0x190f   :  { %2965 = vrot.lane.b32.xlu0 %v6139_v51, %s5843_s23 }
0x1910   :  { %v2617_v19 = vcombine.high %v2616_v58, %v2616_v58  ;;  %v2624_v16 = vrot.slane %v2616_v58, %v6150_v54 }
0x1912   :  { %v2631_v59 = vrot.slane %v2617_v19, %v6150_v54  ;;  %5367 = vmatmul.mubr.msk.f32.vlgmr.msra.gmra.mrb[24].mxu0 %vm182_vm2, %v2624_v16  ;;  %v2962_v26 = vrot.slane %v2624_v16, %v6106_v28 }
0x1913   :  { %5376 = vmatprep.mubr.msk.f32.mxu0 %vm5839_vm1, %v5838_v20 }
0x1914   :  { %5372 = vmatmul.mubr.msk.f32.vlgmr.msra.gmra.mrb[30].mxu1 %vm182_vm2, %v2631_v59  ;;  %v3044_v60 = vrot.slane %v2631_v59, %v6106_v28 }
0x1915   :  { %5381 = vmatprep.mubr.msk.f32.mxu1 %vm5839_vm1, %v5838_v20 }
0x1916   :  { %3045 = vrot.lane.b32.xlu0 %v3044_v60, %s5843_s23 }
0x1979   :  { %v2808_v61 = vpop.permute.xlu0 %2807 }
0x197a   :  { %5375 = vmatpush3.msra.mxu0 %v2808_v61 }
0x197b   :  { %5384 = vmatprep.subr.mxu0 %v5838_v20 }
0x197d   :  { %v3048_v29 = vpop.permute.xlu0 %3047 }
0x1981   :  { %v2966_v31 = vpop.permute.xlu0 %2965 }
0x1988   :  { %v3046_v35 = vpop.permute.xlu0 %3045 }
0x19e5   :  { %v2703_v62 = vpop.f32.mrb[24].mxu0 }
0x19e6   :  { %v5368_v63 = vpop.f32.mrb[25].mxu0  ;;  %v2782_v3 = vmul.f32 0.25, %v2703_v62 }
0x19e7   :  { %v2778_v0 = vpop.f32.mrb[30].mxu1 }
0x19e8   :  { %v2783_v1 = vmul.f32 0.25, %v2778_v0  ;;  %v5373_v2 = vpop.f32.mrb[31].mxu1  ;;  %v2785_v7 = vsel %vm2784_vm5, %v2782_v3, -inf }
0x19e9   :  { %v3309_v2 = vld [vmem:[#allocation2 + $0x50] sm:$0xff] }
0x19ea   :  { %v2788_v4 = vsel %vm2784_vm5, %v2783_v1, -inf }
0x19eb   :  { %2789 = vmax.xlane.f32.xlu1 %v2788_v4 }
0x19ef   :  { %2786 = vmax.xlane.f32.xlu1 %v2785_v7  ;;  %v3311_v7 = vld [vmem:[#allocation2 + $0x180] sm:$0xff] }
0x1a00   :  { %2883 = vrot.lane.b32.xlu1 %v6137_v49, %s5840_s0 }
0x1a78   :  { %v2790_v8 = vpop.xlane.xlu1 %2789 }
0x1a79   :  { %v2792_v10 = vsub.f32 %v2783_v1, %v2790_v8  ;;  %v3312_v8 = vld [vmem:[#allocation2 + $0x218] sm:$0xff] }
0x1a7b   :  { %v2795_v9 = vmul.f32 1.442695, %v2792_v10  ;;  %v5620_v10 = vpack.c.bf16 %v3312_v8, %v3311_v7 }
0x1a7c   :  { %v2787_v12 = vpop.xlane.xlu1 %2786 }
0x1a7d   :  { %v2791_v13 = vsub.f32 %v2782_v3, %v2787_v12  ;;  %v3310_v3 = vld [vmem:[#allocation2 + $0xe8] sm:$0xff] }
0x1a7e   :  { %v5617_v4 = vpack.c.bf16 %v3310_v3, %v3309_v2 }
0x1a7f   :  { %v2793_v15 = vmul.f32 1.442695, %v2791_v13 }
0x1a80   :  { %v2884_v11 = vpop.permute.xlu1 %2883 }
0x1a81   :  { %5737 = vpow2.f32 %v2793_v15  ;;  %5380 = vmatpush3.msra.mxu1 %v2884_v11 }
0x1a82   :  { %5389 = vmatprep.subr.mxu1 %v5838_v20  ;;  %5739 = vpow2.f32 %v2795_v9 }
0x1a8b   :  { %v5738_v18 = vpop.eup %5737 }
0x1a8c   :  { %v2797_v21 = vsel %vm2784_vm5, %v5738_v18, 0.0  ;;  %v5740_v22 = vpop.eup %5739 }
0x1a8d   :  { %2798 = vadd.xlane.f32.xlu1 %v2797_v21  ;;  %v2800_v23 = vsel %vm2784_vm5, %v5740_v22, 0.0 }
0x1a91   :  { %2801 = vadd.xlane.f32.xlu1 %v2800_v23 }
0x1aa2   :  { %2963 = vrot.lane.b32.xlu1 %v2962_v26, %s5843_s23 }
0x1b1a   :  { %v2799_v27 = vpop.xlane.xlu1 %2798 }
0x1b1b   :  { %5741 = vrcp.f32 %v2799_v27  ;;  %v4952_v27 = vld [vmem:[#allocation4 + $0x24] ss:$0 sm:$0xff] }
0x1b1e   :  { %v2802_v24 = vpop.xlane.xlu1 %2801 }
0x1b1f   :  { %5743 = vrcp.f32 %v2802_v24 }
0x1b22   :  { %v2964_v34 = vpop.permute.xlu1 %2963 }
0x1b25   :  { %v5742_v30 = vpop.eup %5741 }
0x1b26   :  { %v2805_v25 = vmul.f32 %v5742_v30, %v5738_v18 }
0x1b28   :  { %5377 = vmatmul.mubr.msk.f32.vlgmr.msra.gmra.mrb[26].mxu0 %vm336_vm3, %v2805_v25 }
0x1b29   :  { %v5744_v32 = vpop.eup %5743  ;;  %5385 = vmatpush3.xpose.msk.msra.mxu0 %vm182_vm2, %v2966_v31  ;;  %5386 = vmatprep.mubr.msk.f32.mxu0 %vm5839_vm1, %v5838_v20 }
0x1b2a   :  { %v2806_v33 = vmul.f32 %v5744_v32, %v5740_v22  ;;  %5394 = vmatprep.subr.mxu0 %v5838_v20 }
0x1b2c   :  { %5382 = vmatmul.mubr.msk.f32.vlgmr.msra.gmra.mrb[32].mxu1 %vm336_vm3, %v2806_v33  ;;  %5387 = vmatmul.mubr.msk.f32.vlgmr.msra.gmra.mrb[28].mxu0 %vm182_vm2, %v2964_v34 }
0x1b2d   :  { %5390 = vmatpush3.xpose.msk.msra.mxu1 %vm182_vm2, %v3048_v29  ;;  %5391 = vmatprep.mubr.msk.f32.mxu1 %vm5839_vm1, %v5838_v20 }
0x1b2e   :  { %5399 = vmatprep.subr.mxu1 %v5838_v20  ;;  %5396 = vmatprep.mubr.msk.f32.mxu0 %vm5839_vm1, %v5838_v20 }
0x1b30   :  { %5392 = vmatmul.mubr.msk.f32.vlgmr.msra.gmra.mrb[34].mxu1 %vm182_vm2, %v3046_v35 }
0x1b31   :  { %5401 = vmatprep.mubr.msk.f32.mxu1 %vm5839_vm1, %v5838_v20 }
0x1bfb   :  { %v6193_v36 = vpop.f32.mrb[26].mxu0 }
0x1bfc   :  { %v5378_v37 = vpop.f32.mrb[27].mxu0 }
0x1bfd   :  { %v3421_v37 = vld [vmem:[#allocation2 + $0x58] sm:$0xff] }
0x1bff   :  { %v6195_v38 = vpop.f32.mrb[32].mxu1  ;;  %v3037_v39 = vpop.f32.mrb[28].mxu0 }
0x1c00   :  { %v3123_v40 = vmul.f32 0.25, %v3037_v39  ;;  %v5383_v41 = vpop.f32.mrb[33].mxu1  ;;  %v5388_v42 = vpop.f32.mrb[29].mxu0 }
0x1c01   :  { %v3424_v41 = vld [vmem:[#allocation2 + $0x220] sm:$0xff] }
0x1c02   :  { %v3125_v43 = vsel %vm2784_vm5, %v3123_v40, -inf }
0x1c03   :  { %3126 = vmax.xlane.f32.xlu1 %v3125_v43  ;;  %v3119_v44 = vpop.f32.mrb[34].mxu1  ;;  %v3505_v43 = vld [vmem:[#allocation2 + $0xf8] sm:$0xff] }
0x1c04   :  { %v3124_v45 = vmul.f32 0.25, %v3119_v44  ;;  %v5393_v47 = vpop.f32.mrb[35].mxu1 }
0x1c06   :  { %v3128_v6 = vsel %vm2784_vm5, %v3124_v45, -inf }
0x1c07   :  { %3129 = vmax.xlane.f32.xlu0 %v3128_v6 }
0x1c14   :  { %3223 = vrot.lane.b32.xlu1 %v6137_v49, %s5842_s22 }
0x1c90   :  { %v3127_v5 = vpop.xlane.xlu1 %3126 }
0x1c91   :  { %v3131_v48 = vsub.f32 %v3123_v40, %v3127_v5  ;;  %v3423_v40 = vld [vmem:[#allocation2 + $0x188] sm:$0xff] }
0x1c92   :  { %v5626_v42 = vpack.c.bf16 %v3424_v41, %v3423_v40 }
0x1c93   :  { %v3133_v50 = vmul.f32 1.442695, %v3131_v48  ;;  %v4954_v48 = vld [vmem:[#allocation4 + $0x29] ss:$0 sm:$0xff] }
0x1c94   :  { %v3224_v52 = vpop.permute.xlu1 %3223  ;;  %v3130_v53 = vpop.xlane.xlu0 %3129 }
0x1c95   :  { %5745 = vpow2.f32 %v3133_v50  ;;  %v3132_v55 = vsub.f32 %v3124_v45, %v3130_v53  ;;  %5400 = vmatpush3.msra.mxu1 %v3224_v52  ;;  %v4955_v52 = vld [vmem:[#allocation4 + $0x2a] ss:$0 sm:$0xff] }
0x1c96   :  { %5622 = vmatprep.subr.bf16.mxu1 %v5846_v14 }
0x1c97   :  { %v3135_v56 = vmul.f32 1.442695, %v3132_v55 }
0x1c99   :  { %5747 = vpow2.f32 %v3135_v56  ;;  %v3506_v56 = vld [vmem:[#allocation2 + $0x190] sm:$0xff] }
0x1c9f   :  { %v5746_v57 = vpop.eup %5745 }
0x1ca0   :  { %v3137_v58 = vsel %vm2784_vm5, %v5746_v57, 0.0 }
0x1ca1   :  { %3138 = vadd.xlane.f32.xlu0 %v3137_v58 }
0x1ca3   :  { %v5748_v19 = vpop.eup %5747 }
0x1ca4   :  { %v3140_v16 = vsel %vm2784_vm5, %v5748_v19, 0.0 }
0x1ca5   :  { %3141 = vadd.xlane.f32.xlu0 %v3140_v16 }
0x1cbb   :  { %3147 = vrot.lane.b32.xlu0 %v6139_v51, %s5842_s22 }
0x1d2e   :  { %v3139_v59 = vpop.xlane.xlu0 %3138 }
0x1d2f   :  { %5749 = vrcp.f32 %v3139_v59 }
0x1d32   :  { %v3142_v60 = vpop.xlane.xlu0 %3141 }
0x1d33   :  { %5751 = vrcp.f32 %v3142_v60 }
0x1d36   :  { %v3148_v61 = vpop.permute.xlu0 %3147 }
0x1d37   :  { %5395 = vmatpush3.msra.mxu0 %v3148_v61 }
0x1d38   :  { %5616 = vmatprep.subr.bf16.mxu0 %v5846_v14 }
0x1d39   :  { %v5750_v62 = vpop.eup %5749 }
0x1d3a   :  { %v3145_v63 = vmul.f32 %v5750_v62, %v5746_v57  ;;  %v3507_v57 = vld [vmem:[#allocation2 + $0x228] sm:$0xff]  ;;  %v4958_v62 = vld [vmem:[#allocation4 + $0x26] ss:$0 sm:$0xff] }
0x1d3b   :  { %v5632_v58 = vpack.c.bf16 %v3507_v57, %v3506_v56  ;;  %v4965_v57 = vld [vmem:[#allocation4 + $0x33] ss:$0 sm:$0xff] }
0x1d3c   :  { %5397 = vmatmul.mubr.msk.f32.vlgmr.msra.gmra.mrb[30].mxu0 %vm336_vm3, %v3145_v63 }
0x1d3d   :  { %v5752_v0 = vpop.eup %5751  ;;  %5412 = vmatprep.mubr.msk.f32.mxu0 %vm5839_vm1, %v5838_v20  ;;  %5618 = vmatpush3.bf16.msra.mxu0 %v5617_v4 }
0x1d3e   :  { %v3146_v1 = vmul.f32 %v5752_v0, %v5748_v19  ;;  %5619 = vmatprep.subr.bf16.mxu0 %v5846_v14  ;;  %v4956_v19 = vld [vmem:[#allocation4 + $0x25] ss:$0 sm:$0xff] }
0x1d40   :  { %5402 = vmatmul.mubr.msk.f32.vlgmr.msra.gmra.mrb[36].mxu1 %vm336_vm3, %v3146_v1 }
0x1d41   :  { %5423 = vmatprep.mubr.msk.f32.mxu1 %vm5839_vm1, %v5838_v20  ;;  %5621 = vmatpush3.bf16.msra.mxu0 %v5620_v10 }
0x1d42   :  { %5628 = vmatprep.subr.bf16.mxu0 %v5846_v14 }
0x1e0f   :  { %v3219_v12 = vpop.f32.mrb[30].mxu0 }
0x1e10   :  { %v5398_v13 = vpop.f32.mrb[31].mxu0 }
0x1e11   :  { %v3612_v13 = vld [vmem:[#allocation2 + $0x68] sm:$0xff] }
0x1e13   :  { %v3295_v9 = vpop.f32.mrb[36].mxu1 }
0x1e14   :  { %3303 = vrot.lane.b32.xlu1 %v3295_v9, %s5845_s25  ;;  %v5403_v15 = vpop.f32.mrb[37].mxu1  ;;  %v3613_v9 = vld [vmem:[#allocation2 + $0x100] sm:$0xff] }
0x1e15   :  { %v5635_v15 = vpack.c.bf16 %v3613_v9, %v3612_v13 }
0x1e18   :  { %3301 = vrot.lane.b32.xlu1 %v3219_v12, %s5845_s25 }
0x1e86   :  { %v3304_v11 = vpop.permute.xlu1 %3303 }
0x1e87   :  { %v3308_v18 = vsel %vm182_vm2, %v6195_v38, %v3304_v11  ;;  %v3422_v38 = vld [vmem:[#allocation2 + $0xf0] sm:$0xff]  ;;  %v3614_v11 = vld [vmem:[#allocation2 + $0x198] sm:$0xff] }
0x1e88   :  { %v3320_v21 = vrot.slane %v3308_v18, 7  ;;  %v5623_v39 = vpack.c.bf16 %v3422_v38, %v3421_v37  ;;  %v3615_v18 = vld [vmem:[#allocation2 + $0x230] sm:$0xff] }
0x1e8a   :  { %v3302_v22 = vpop.permute.xlu1 %3301  ;;  %5624 = vmatpush3.bf16.msra.mxu1 %v5623_v39 }
0x1e8b   :  { %v3307_v23 = vsel %vm182_vm2, %v6193_v36, %v3302_v22  ;;  %5625 = vmatprep.subr.bf16.mxu1 %v5846_v14 }
0x1e8c   :  { %v3322_v26 = vsel %vm3321_vm6, %v3320_v21, %v3307_v23  ;;  %v5638_v21 = vpack.c.bf16 %v3615_v18, %v3614_v11 }
0x1e8d   :  { %5413 = vmatmul.mubr.msk.f32.vlgmr.msra.gmra.mrb[32].mxu0 %vm97_vm0, %v3322_v26 }
0x1e8e   :  { %5434 = vmatprep.mubr.msk.f32.mxu0 %vm5839_vm1, %v5838_v20  ;;  %5627 = vmatpush3.bf16.msra.mxu1 %v5626_v42 }
0x1e8f   :  { %5634 = vmatprep.subr.bf16.mxu1 %v5846_v14 }
0x1f60   :  { %v3391_v24 = vpop.f32.mrb[32].mxu0 }
0x1f61   :  { %v3392_v29 = vadd.f32 %v4952_v27, %v3391_v24  ;;  %v5414_v30 = vpop.f32.mrb[33].mxu0  ;;  %v4960_v24 = vld [vmem:[#allocation4 + $0x2b] ss:$0 sm:$0xff] }
0x1f62   :  { %v4961_v30 = vld [vmem:[#allocation4 + $0x2c] ss:$0 sm:$0xff] }
0x1f63   :  { %v3395_v25 = vadd.f32 %v3392_v29, %v6130_v46  ;;  %v3504_v46 = vld [vmem:[#allocation2 + $0x60] sm:$0xff] }
0x1f64   :  { %v5629_v44 = vpack.c.bf16 %v3505_v43, %v3504_v46  ;;  %v3720_v43 = vld [vmem:[#allocation2 + $0x70] sm:$0xff] }
0x1f65   :  { %v3398_v31 = vsel %vm2503_vm4, %v3395_v25, 0.0 }
0x1f66   :  { %3399 = vadd.xlane.f32.xlu0 %v3398_v31  ;;  %5630 = vmatpush3.bf16.msra.mxu0 %v5629_v44  ;;  %v3721_v44 = vld [vmem:[#allocation2 + $0x108] sm:$0xff] }
0x1f67   :  { %5631 = vmatprep.subr.bf16.mxu0 %v5846_v14 }
0x1f6a   :  { %5633 = vmatpush3.bf16.msra.mxu0 %v5632_v58 }
0x1f6b   :  { %5640 = vmatprep.subr.bf16.mxu0 %v5846_v14 }
0x1ff3   :  { %v3400_v32 = vpop.xlane.xlu0 %3399 }
0x1ff4   :  { %v3401_v33 = vmul.f32 0.03125, %v3400_v32  ;;  %v4962_v32 = vld [vmem:[#allocation4 + $0x2d] ss:$0 sm:$0xff] }
0x1ff6   :  { %v3402_v34 = vsub.f32 %v3395_v25, %v3401_v33 }
0x1ff8   :  { %v3403_v35 = vmul.f32 %v3402_v34, %v3402_v34 }
0x1ffa   :  { %v3404_v36 = vsel %vm2503_vm4, %v3403_v35, 0.0 }
0x1ffb   :  { %3405 = vadd.xlane.f32.xlu1 %v3404_v36 }
0x2088   :  { %v3406_v45 = vpop.xlane.xlu1 %3405 }
0x2089   :  { %v3407_v47 = vmul.f32 0.03125, %v3406_v45  ;;  %v5641_v45 = vpack.c.bf16 %v3721_v44, %v3720_v43 }
0x208b   :  { %v3408_v6 = vadd.f32 1e-05, %v3407_v47  ;;  %v3722_v47 = vld [vmem:[#allocation2 + $0x1a0] sm:$0xff] }
0x208d   :  { %5753 = vrsqrt.f32 %v3408_v6  ;;  %v3723_v6 = vld [vmem:[#allocation2 + $0x238] sm:$0xff] }
0x2097   :  { %v5754_v5 = vpop.eup %5753 }
0x2098   :  { %v3410_v50 = vmul.f32 %v5754_v5, %v3402_v34  ;;  %v5644_v5 = vpack.c.bf16 %v3723_v6, %v3722_v47 }
0x209a   :  { %v3415_v53 = vmul.f32 %v4954_v48, %v3410_v50 }
0x209c   :  { %v3420_v55 = vadd.f32 %v4955_v52, %v3415_v53 }
0x209e   :  { %5424 = vmatmul.mubr.msk.f32.vlgmr.msra.gmra.mrb[38].mxu1 %vm97_vm0, %v3420_v55 }
0x209f   :  { %5445 = vmatprep.mubr.msk.f32.mxu1 %vm5839_vm1, %v5838_v20  ;;  %5636 = vmatpush3.bf16.msra.mxu1 %v5635_v15 }
0x20a0   :  { %5637 = vmatprep.subr.bf16.mxu1 %v5846_v14 }
0x20a3   :  { %5639 = vmatpush3.bf16.msra.mxu1 %v5638_v21 }
0x20a4   :  { %5459 = vmatprep.subr.mxu1 %v5838_v20 }
0x2171   :  { %v3499_v16 = vpop.f32.mrb[38].mxu1 }
0x2172   :  { %v3500_v59 = vadd.f32 %v4956_v19, %v3499_v16  ;;  %v5425_v60 = vpop.f32.mrb[39].mxu1  ;;  %v4966_v16 = vld [vmem:[#allocation4 + $0x2e] ss:$0 sm:$0xff] }
0x2174   :  { %v3503_v61 = vmax.f32 %v3500_v59, 0.0 }
0x2176   :  { %5435 = vmatmul.mubr.msk.f32.vlgmr.msra.gmra.mrb[34].mxu0 %vm97_vm0, %v3503_v61 }
0x2177   :  { %5456 = vmatprep.mubr.msk.f32.mxu0 %vm5839_vm1, %v5838_v20  ;;  %5642 = vmatpush3.bf16.msra.mxu0 %v5641_v45 }
0x2178   :  { %5643 = vmatprep.subr.bf16.mxu0 %v5846_v14 }
0x217b   :  { %5645 = vmatpush3.bf16.msra.mxu0 %v5644_v5 }
0x217c   :  { %5469 = vmatprep.subr.mxu0 %v5838_v20 }
0x2249   :  { %v3582_v63 = vpop.f32.mrb[34].mxu0 }
0x224a   :  { %v3583_v0 = vadd.f32 %v4958_v62, %v3582_v63  ;;  %v5436_v1 = vpop.f32.mrb[35].mxu0 }
0x224c   :  { %v3586_v2 = vadd.f32 %v3583_v0, %v3420_v55  ;;  %v4964_v55 = vld [vmem:[#allocation4 + $0x32] ss:$0 sm:$0xff] }
0x224e   :  { %v3589_v3 = vsel %vm2503_vm4, %v3586_v2, 0.0 }
0x224f   :  { %3590 = vadd.xlane.f32.xlu0 %v3589_v3 }
0x22dc   :  { %v3591_v4 = vpop.xlane.xlu0 %3590 }
0x22dd   :  { %v3592_v7 = vmul.f32 0.03125, %v3591_v4 }
0x22df   :  { %v3593_v8 = vsub.f32 %v3586_v2, %v3592_v7 }
0x22e1   :  { %v3594_v10 = vmul.f32 %v3593_v8, %v3593_v8 }
0x22e3   :  { %v3595_v12 = vsel %vm2503_vm4, %v3594_v10, 0.0 }
0x22e4   :  { %3596 = vadd.xlane.f32.xlu0 %v3595_v12 }
0x2371   :  { %v3597_v22 = vpop.xlane.xlu0 %3596 }
0x2372   :  { %v3598_v23 = vmul.f32 0.03125, %v3597_v22 }
0x2374   :  { %v3599_v26 = vadd.f32 1e-05, %v3598_v23 }
0x2376   :  { %5755 = vrsqrt.f32 %v3599_v26 }
0x2380   :  { %v5756_v27 = vpop.eup %5755 }
0x2381   :  { %v3601_v29 = vmul.f32 %v5756_v27, %v3593_v8 }
0x2383   :  { %v3606_v25 = vmul.f32 %v4960_v24, %v3601_v29 }
0x2385   :  { %v3611_v31 = vadd.f32 %v4961_v30, %v3606_v25 }
0x2387   :  { %5446 = vmatmul.mubr.msk.f32.vlgmr.msra.gmra.mrb[40].mxu1 %vm97_vm0, %v3611_v31 }
0x2388   :  { %5461 = vmatprep.mubr.msk.f32.mxu1 %vm5839_vm1, %v5838_v20 }
0x245a   :  { %v3690_v33 = vpop.f32.mrb[40].mxu1 }
0x245b   :  { %v3691_v34 = vadd.f32 %v4962_v32, %v3690_v33  ;;  %v5447_v35 = vpop.f32.mrb[41].mxu1 }
0x245d   :  { %v3694_v36 = vadd.f32 %v3691_v34, %v3611_v31 }
0x245f   :  { %v3697_v37 = vsel %vm2503_vm4, %v3694_v36, 0.0 }
0x2460   :  { %3698 = vadd.xlane.f32.xlu1 %v3697_v37 }
0x2471   :  { %3825 = vrot.lane.b32.xlu1 %v6139_v51, %s5841_s4 }
0x24ed   :  { %v3699_v38 = vpop.xlane.xlu1 %3698 }
0x24ee   :  { %v3700_v39 = vmul.f32 0.03125, %v3699_v38 }
0x24f0   :  { %v3701_v40 = vsub.f32 %v3694_v36, %v3700_v39 }
0x24f1   :  { %v3826_v41 = vpop.permute.xlu1 %3825 }
0x24f2   :  { %5460 = vmatpush3.xpose.msk.msra.mxu1 %vm182_vm2, %v3826_v41  ;;  %v3702_v42 = vmul.f32 %v3701_v40, %v3701_v40 }
0x24f3   :  { %5464 = vmatprep.subr.mxu1 %v5838_v20 }
0x24f4   :  { %v3703_v46 = vsel %vm2503_vm4, %v3702_v42, 0.0 }
0x24f5   :  { %3704 = vadd.xlane.f32.xlu0 %v3703_v46 }
0x250b   :  { %3901 = vrot.lane.b32.xlu0 %v6137_v49, %s5841_s4 }
0x2582   :  { %v3705_v48 = vpop.xlane.xlu0 %3704 }
0x2583   :  { %v3706_v50 = vmul.f32 0.03125, %v3705_v48 }
0x2585   :  { %v3707_v52 = vadd.f32 1e-05, %v3706_v50 }
0x2586   :  { %v3902_v1 = vpop.permute.xlu0 %3901 }
0x2587   :  { %5757 = vrsqrt.f32 %v3707_v52 }
0x2591   :  { %v5758_v53 = vpop.eup %5757 }
0x2592   :  { %v3709_v56 = vmul.f32 %v5758_v53, %v3701_v40 }
0x2594   :  { %v3714_v58 = vmul.f32 %v4964_v55, %v3709_v56 }
0x2596   :  { %v6255_v19 = vadd.f32 %v4965_v57, %v3714_v58 }
0x2598   :  { %5457 = vmatmul.mubr.msk.f32.vlgmr.msra.gmra.mrb[36].mxu0 %vm97_vm0, %v6255_v19 }
0x2599   :  { %5471 = vmatprep.mubr.msk.f32.mxu0 %vm5839_vm1, %v5838_v20 }
0x266b   :  { %v3798_v59 = vpop.f32.mrb[36].mxu0 }
0x266c   :  { %v3799_v60 = vadd.f32 %v4966_v16, %v3798_v59  ;;  %v5458_v61 = vpop.f32.mrb[37].mxu0 }
0x266e   :  { %v3809_v62 = vrot.slane %v3799_v60, %v6150_v54 }
0x2670   :  { %v3810_v63 = vcombine.high %v3809_v62, %v3809_v62  ;;  %v3817_v0 = vrot.slane %v3809_v62, %v6150_v54 }
0x2672   :  { %5462 = vmatmul.mubr.msk.f32.vlgmr.msra.gmra.mrb[42].mxu1 %vm182_vm2, %v3817_v0  ;;  %v3824_v2 = vrot.slane %v3810_v63, %v6150_v54  ;;  %v4156_v25 = vrot.slane %v3817_v0, %v6106_v28 }
0x2673   :  { %5465 = vmatpush3.xpose.msk.msra.mxu1 %vm182_vm2, %v3902_v1  ;;  %5466 = vmatprep.mubr.msk.f32.mxu1 %vm5839_vm1, %v5838_v20 }
0x2674   :  { %5474 = vmatprep.subr.mxu1 %v5838_v20  ;;  %v4238_v31 = vrot.slane %v3824_v2, %v6106_v28 }
0x2676   :  { %5467 = vmatmul.mubr.msk.f32.vlgmr.msra.gmra.mrb[44].mxu1 %vm182_vm2, %v3824_v2 }
0x2677   :  { %5476 = vmatprep.mubr.msk.f32.mxu1 %vm5839_vm1, %v5838_v20 }
0x2745   :  { %v3897_v3 = vpop.f32.mrb[42].mxu1 }
0x2746   :  { %v3977_v4 = vmul.f32 0.25, %v3897_v3  ;;  %v5463_v7 = vpop.f32.mrb[43].mxu1 }
0x2748   :  { %v3979_v8 = vsel %vm2784_vm5, %v3977_v4, -inf }
0x2749   :  { %3980 = vmax.xlane.f32.xlu0 %v3979_v8  ;;  %v3973_v10 = vpop.f32.mrb[44].mxu1 }
0x274a   :  { %v3978_v12 = vmul.f32 0.25, %v3973_v10  ;;  %v5468_v13 = vpop.f32.mrb[45].mxu1  ;;  %v4504_v10 = vld [vmem:[#allocation2 + $0x110] sm:$0xff] }
0x274b   :  { %v4505_v13 = vld [vmem:[#allocation2 + $0x1a8] sm:$0xff] }
0x274c   :  { %v3982_v9 = vsel %vm2784_vm5, %v3978_v12, -inf }
0x274d   :  { %3983 = vmax.xlane.f32.xlu1 %v3982_v9  ;;  %v4506_v9 = vld [vmem:[#allocation2 + $0x240] sm:$0xff] }
0x275e   :  { %4077 = vrot.lane.b32.xlu1 %v6137_v49, %s5848_s1 }
0x275f   :  { %4001 = vrot.lane.b32.xlu0 %v6139_v51, %s5848_s1 }
0x2762   :  { %4241 = vrot.lane.b32.xlu1 %v6137_v49, %s5844_s24 }
0x2766   :  { %4159 = vrot.lane.b32.xlu1 %v6139_v51, %s5844_s24 }
0x27d6   :  { %v3981_v54 = vpop.xlane.xlu0 %3980 }
0x27d7   :  { %v3985_v15 = vsub.f32 %v3977_v4, %v3981_v54  ;;  %v5650_v54 = vpack.c.bf16 %v4506_v9, %v4505_v13 }
0x27d9   :  { %v3987_v11 = vmul.f32 1.442695, %v3985_v15 }
0x27da   :  { %v4002_v18 = vpop.permute.xlu0 %4001  ;;  %v3984_v21 = vpop.xlane.xlu1 %3983 }
0x27db   :  { %5759 = vpow2.f32 %v3987_v11  ;;  %v3986_v22 = vsub.f32 %v3978_v12, %v3984_v21  ;;  %5470 = vmatpush3.msra.mxu0 %v4002_v18 }
0x27dc   :  { %5479 = vmatprep.subr.mxu0 %v5838_v20 }
0x27dd   :  { %v3989_v23 = vmul.f32 1.442695, %v3986_v22 }
0x27de   :  { %v4078_v26 = vpop.permute.xlu1 %4077 }
0x27df   :  { %5761 = vpow2.f32 %v3989_v23  ;;  %5475 = vmatpush3.msra.mxu1 %v4078_v26 }
0x27e0   :  { %5484 = vmatprep.subr.mxu1 %v5838_v20 }
0x27e2   :  { %v4242_v32 = vpop.permute.xlu1 %4241 }
0x27e5   :  { %v5760_v27 = vpop.eup %5759 }
0x27e6   :  { %v3991_v24 = vsel %vm2784_vm5, %v5760_v27, 0.0  ;;  %v4160_v33 = vpop.permute.xlu1 %4159 }
0x27e7   :  { %3992 = vadd.xlane.f32.xlu0 %v3991_v24 }
0x27e9   :  { %v5762_v29 = vpop.eup %5761 }
0x27ea   :  { %v3994_v30 = vsel %vm2784_vm5, %v5762_v29, 0.0 }
0x27eb   :  { %3995 = vadd.xlane.f32.xlu1 %v3994_v30  ;;  %v4980_v30 = vld [vmem:[#allocation4 + $0x2f] ss:$0 sm:$0xff] }
0x27fc   :  { %4157 = vrot.lane.b32.xlu1 %v4156_v25, %s5843_s23 }
0x27fd   :  { %4239 = vrot.lane.b32.xlu0 %v4238_v31, %s5843_s23 }
0x2874   :  { %v3993_v34 = vpop.xlane.xlu0 %3992 }
0x2875   :  { %5763 = vrcp.f32 %v3993_v34 }
0x2878   :  { %v3996_v35 = vpop.xlane.xlu1 %3995  ;;  %v4240_v41 = vpop.permute.xlu0 %4239 }
0x2879   :  { %5765 = vrcp.f32 %v3996_v35 }
0x287c   :  { %v4158_v40 = vpop.permute.xlu1 %4157 }
0x287f   :  { %v5764_v36 = vpop.eup %5763 }
0x2880   :  { %v3999_v37 = vmul.f32 %v5764_v36, %v5760_v27 }
0x2882   :  { %5472 = vmatmul.mubr.msk.f32.vlgmr.msra.gmra.mrb[38].mxu0 %vm336_vm3, %v3999_v37 }
0x2883   :  { %v5766_v38 = vpop.eup %5765  ;;  %5480 = vmatpush3.xpose.msk.msra.mxu0 %vm182_vm2, %v4160_v33  ;;  %5481 = vmatprep.mubr.msk.f32.mxu0 %vm5839_vm1, %v5838_v20 }
0x2884   :  { %v4000_v39 = vmul.f32 %v5766_v38, %v5762_v29  ;;  %5489 = vmatprep.subr.mxu0 %v5838_v20 }
0x2886   :  { %5477 = vmatmul.mubr.msk.f32.vlgmr.msra.gmra.mrb[46].mxu1 %vm336_vm3, %v4000_v39  ;;  %5482 = vmatmul.mubr.msk.f32.vlgmr.msra.gmra.mrb[40].mxu0 %vm182_vm2, %v4158_v40  ;;  %v4614_v40 = vld [vmem:[#allocation2 + $0x80] sm:$0xff] }
0x2887   :  { %5485 = vmatpush3.xpose.msk.msra.mxu1 %vm182_vm2, %v4242_v32  ;;  %5486 = vmatprep.mubr.msk.f32.mxu1 %vm5839_vm1, %v5838_v20 }
0x2888   :  { %5494 = vmatprep.subr.mxu1 %v5838_v20  ;;  %5491 = vmatprep.mubr.msk.f32.mxu0 %vm5839_vm1, %v5838_v20 }
0x288a   :  { %5487 = vmatmul.mubr.msk.f32.vlgmr.msra.gmra.mrb[48].mxu1 %vm182_vm2, %v4240_v41  ;;  %v4615_v41 = vld [vmem:[#allocation2 + $0x118] sm:$0xff] }
0x288b   :  { %5496 = vmatprep.mubr.msk.f32.mxu1 %vm5839_vm1, %v5838_v20 }
0x2955   :  { %v6304_v42 = vpop.f32.mrb[38].mxu0 }
0x2956   :  { %v5473_v46 = vpop.f32.mrb[39].mxu0 }
0x2957   :  { %v4617_v46 = vld [vmem:[#allocation2 + $0x248] sm:$0xff] }
0x2959   :  { %v6306_v43 = vpop.f32.mrb[46].mxu1  ;;  %v4231_v44 = vpop.f32.mrb[40].mxu0 }
0x295a   :  { %v4317_v45 = vmul.f32 0.25, %v4231_v44  ;;  %v5478_v47 = vpop.f32.mrb[47].mxu1  ;;  %v5483_v6 = vpop.f32.mrb[41].mxu0  ;;  %v4698_v44 = vld [vmem:[#allocation2 + $0x120] sm:$0xff] }
0x295c   :  { %v4319_v5 = vsel %vm2784_vm5, %v4317_v45, -inf }
0x295d   :  { %4320 = vmax.xlane.f32.xlu1 %v4319_v5  ;;  %v4313_v48 = vpop.f32.mrb[48].mxu1 }
0x295e   :  { %v4318_v50 = vmul.f32 0.25, %v4313_v48  ;;  %v5488_v52 = vpop.f32.mrb[49].mxu1 }
0x2960   :  { %v4322_v53 = vsel %vm2784_vm5, %v4318_v50, -inf }
0x2961   :  { %4323 = vmax.xlane.f32.xlu0 %v4322_v53  ;;  %v4983_v53 = vld [vmem:[#allocation4 + $0x35] ss:$0 sm:$0xff] }
0x296e   :  { %4417 = vrot.lane.b32.xlu1 %v6137_v49, %s5845_s25 }
0x29ea   :  { %v4321_v55 = vpop.xlane.xlu1 %4320 }
0x29eb   :  { %v4325_v56 = vsub.f32 %v4317_v45, %v4321_v55 }
0x29ed   :  { %v4327_v57 = vmul.f32 1.442695, %v4325_v56 }
0x29ee   :  { %v4418_v58 = vpop.permute.xlu1 %4417  ;;  %v4324_v16 = vpop.xlane.xlu0 %4323 }
0x29ef   :  { %5767 = vpow2.f32 %v4327_v57  ;;  %v4326_v59 = vsub.f32 %v4318_v50, %v4324_v16  ;;  %5495 = vmatpush3.msra.mxu1 %v4418_v58  ;;  %v4982_v50 = vld [vmem:[#allocation4 + $0x34] ss:$0 sm:$0xff]  ;;  %v4699_v57 = vld [vmem:[#allocation2 + $0x1b8] sm:$0xff] }
0x29f0   :  { %5652 = vmatprep.subr.bf16.mxu1 %v5846_v14  ;;  %v4700_v58 = vld [vmem:[#allocation2 + $0x250] sm:$0xff] }
0x29f1   :  { %v4329_v60 = vmul.f32 1.442695, %v4326_v59  ;;  %v5662_v16 = vpack.c.bf16 %v4700_v58, %v4699_v57  ;;  %v4984_v59 = vld [vmem:[#allocation4 + $0x30] ss:$0 sm:$0xff] }
0x29f3   :  { %5769 = vpow2.f32 %v4329_v60 }
0x29f9   :  { %v5768_v61 = vpop.eup %5767 }
0x29fa   :  { %v4331_v62 = vsel %vm2784_vm5, %v5768_v61, 0.0 }
0x29fb   :  { %4332 = vadd.xlane.f32.xlu0 %v4331_v62 }
0x29fd   :  { %v5770_v63 = vpop.eup %5769 }
0x29fe   :  { %v4334_v0 = vsel %vm2784_vm5, %v5770_v63, 0.0 }
0x29ff   :  { %4335 = vadd.xlane.f32.xlu0 %v4334_v0 }
0x2a15   :  { %4341 = vrot.lane.b32.xlu0 %v6139_v51, %s5845_s25  ;;  %v4503_v51 = vld [vmem:[#allocation2 + $0x78] sm:$0xff] }
0x2a16   :  { %v5647_v12 = vpack.c.bf16 %v4504_v10, %v4503_v51 }
0x2a88   :  { %v4333_v49 = vpop.xlane.xlu0 %4332 }
0x2a89   :  { %5771 = vrcp.f32 %v4333_v49 }
0x2a8c   :  { %v4336_v1 = vpop.xlane.xlu0 %4335 }
0x2a8d   :  { %5773 = vrcp.f32 %v4336_v1 }
0x2a90   :  { %v4342_v2 = vpop.permute.xlu0 %4341 }
0x2a91   :  { %5490 = vmatpush3.msra.mxu0 %v4342_v2 }
0x2a92   :  { %5646 = vmatprep.subr.bf16.mxu0 %v5846_v14 }
0x2a93   :  { %v5772_v3 = vpop.eup %5771 }
0x2a94   :  { %v4339_v4 = vmul.f32 %v5772_v3, %v5768_v61 }
0x2a96   :  { %5492 = vmatmul.mubr.msk.f32.vlgmr.msra.gmra.mrb[42].mxu0 %vm336_vm3, %v4339_v4 }
0x2a97   :  { %v5774_v7 = vpop.eup %5773  ;;  %5507 = vmatprep.mubr.msk.f32.mxu0 %vm5839_vm1, %v5838_v20  ;;  %5648 = vmatpush3.bf16.msra.mxu0 %v5647_v12 }
0x2a98   :  { %v4340_v8 = vmul.f32 %v5774_v7, %v5770_v63  ;;  %5649 = vmatprep.subr.bf16.mxu0 %v5846_v14  ;;  %v4986_v63 = vld [vmem:[#allocation4 + $0x31] ss:$0 sm:$0xff] }
0x2a9a   :  { %5497 = vmatmul.mubr.msk.f32.vlgmr.msra.gmra.mrb[50].mxu1 %vm336_vm3, %v4340_v8 }
0x2a9b   :  { %5518 = vmatprep.mubr.msk.f32.mxu1 %vm5839_vm1, %v5838_v20  ;;  %5651 = vmatpush3.bf16.msra.mxu0 %v5650_v54 }
0x2a9c   :  { %5658 = vmatprep.subr.bf16.mxu0 %v5846_v14 }
0x2b69   :  { %v4413_v15 = vpop.f32.mrb[42].mxu0 }
0x2b6a   :  { %v5493_v11 = vpop.f32.mrb[43].mxu0 }
0x2b6d   :  { %v4489_v18 = vpop.f32.mrb[50].mxu1 }
0x2b6e   :  { %4497 = vrot.lane.b32.xlu1 %v4489_v18, %s5845_s25  ;;  %v5498_v21 = vpop.f32.mrb[51].mxu1  ;;  %v4989_v18 = vld [vmem:[#allocation4 + $0x37] ss:$0 sm:$0xff] }
0x2b72   :  { %4495 = vrot.lane.b32.xlu1 %v4413_v15, %s5845_s25  ;;  %v4988_v15 = vld [vmem:[#allocation4 + $0x36] ss:$0 sm:$0xff] }
0x2be0   :  { %v4498_v22 = vpop.permute.xlu1 %4497 }
0x2be1   :  { %v4502_v23 = vsel %vm182_vm2, %v6306_v43, %v4498_v22  ;;  %v4990_v22 = vld [vmem:[#allocation4 + $0xa] ss:$0 sm:$0xff] }
0x2be2   :  { %v4514_v26 = vrot.slane %v4502_v23, 7 }
0x2be4   :  { %v4496_v27 = vpop.permute.xlu1 %4495 }
0x2be5   :  { %v4501_v24 = vsel %vm182_vm2, %v6304_v42, %v4496_v27  ;;  %v5653_v42 = vpack.c.bf16 %v4615_v41, %v4614_v40  ;;  %v4993_v41 = vld [vmem:[#allocation4 + $0xf] ss:$0 sm:$0xff] }
0x2be6   :  { %v4515_v29 = vsel %vm3321_vm6, %v4514_v26, %v4501_v24  ;;  %v4831_v24 = vld [vmem:[%s6356_s2] sm:$0x3] }
0x2be7   :  { %5508 = vmatmul.mubr.msk.f32.vlgmr.msra.gmra.mrb[44].mxu0 %vm97_vm0, %v4515_v29  ;;  %5654 = vmatpush3.bf16.msra.mxu1 %v5653_v42  ;;  %v4991_v29 = vld [vmem:[#allocation4 + $0xb] ss:$0 sm:$0xff] }
0x2be8   :  { %5529 = vmatprep.mubr.msk.f32.mxu0 %vm5839_vm1, %v5838_v20  ;;  %v4616_v20 = vld [vmem:[#allocation2 + $0x1b0] sm:$0xff]  ;;  %5655 = vmatprep.subr.bf16.mxu1 %v5846_v14 }
0x2be9   :  { %v5656_v43 = vpack.c.bf16 %v4617_v46, %v4616_v20 }
0x2beb   :  { %5657 = vmatpush3.bf16.msra.mxu1 %v5656_v43  ;;  %v4994_v43 = vld [vmem:[#allocation4 + $0x10] ss:$0 sm:$0xff] }
0x2cba   :  { %v4584_v25 = vpop.f32.mrb[44].mxu0 }
0x2cbb   :  { %v4585_v31 = vadd.f32 %v4980_v30, %v4584_v25  ;;  %v5509_v32 = vpop.f32.mrb[45].mxu0 }
0x2cbc   :  { %v4820_v32 = vld [vmem:[#allocation4 + $0xc] sm:$0x3] }
0x2cbd   :  { %v4588_v33 = vadd.f32 %v4585_v31, %v6255_v19  ;;  %v4697_v19 = vld [vmem:[#allocation2 + $0x88] sm:$0xff]  ;;  %v4839_v31 = vsub.s32 1, %v6103_v17 }
0x2cbe   :  { %v5659_v45 = vpack.c.bf16 %v4698_v44, %v4697_v19 }
0x2cbf   :  { %v4591_v34 = vsel %vm2503_vm4, %v4588_v33, 0.0 }
0x2cc0   :  { %4592 = vadd.xlane.f32.xlu0 %v4591_v34  ;;  %5660 = vmatpush3.bf16.msra.mxu0 %v5659_v45 }
0x2cc1   :  { %5661 = vmatprep.subr.bf16.mxu0 %v5846_v14 }
0x2cc4   :  { %5663 = vmatpush3.bf16.msra.mxu0 %v5662_v16 }
0x2d4d   :  { %v4593_v35 = vpop.xlane.xlu0 %4592 }
0x2d4e   :  { %v4594_v36 = vmul.f32 0.03125, %v4593_v35  ;;  %v4829_v35 = vrot.slane %v4820_v32, %v6106_v28 }
0x2d50   :  { %v4595_v37 = vsub.f32 %v4588_v33, %v4594_v36  ;;  %v4840_v33 = vrot.slane %v4820_v32, %v4839_v31 }
0x2d52   :  { %v4596_v38 = vmul.f32 %v4595_v37, %v4595_v37 }
0x2d54   :  { %v4597_v39 = vsel %vm2503_vm4, %v4596_v38, 0.0 }
0x2d55   :  { %4598 = vadd.xlane.f32.xlu1 %v4597_v39  ;;  %v4992_v39 = vld [vmem:[#allocation4 + $0xe] ss:$0 sm:$0xff] }
0x2de2   :  { %v4599_v47 = vpop.xlane.xlu1 %4598 }
0x2de3   :  { %v4600_v6 = vmul.f32 0.03125, %v4599_v47 }
0x2de5   :  { %v4601_v5 = vadd.f32 1e-05, %v4600_v6 }
0x2de7   :  { %5775 = vrsqrt.f32 %v4601_v5 }
0x2df1   :  { %v5776_v48 = vpop.eup %5775 }
0x2df2   :  { %v4603_v52 = vmul.f32 %v5776_v48, %v4595_v37 }
0x2df4   :  { %v4608_v55 = vmul.f32 %v4982_v50, %v4603_v52 }
0x2df6   :  { %v4613_v56 = vadd.f32 %v4983_v53, %v4608_v55 }
0x2df8   :  { %5519 = vmatmul.mubr.msk.f32.vlgmr.msra.gmra.mrb[52].mxu1 %vm97_vm0, %v4613_v56 }
0x2ecb   :  { %v4692_v60 = vpop.f32.mrb[52].mxu1 }
0x2ecc   :  { %v4693_v61 = vadd.f32 %v4984_v59, %v4692_v60  ;;  %v5520_v14 = vpop.f32.mrb[53].mxu1 }
0x2ece   :  { %v4696_v62 = vmax.f32 %v4693_v61, 0.0 }
0x2ed0   :  { %5530 = vmatmul.mubr.msk.f32.vlgmr.msra.gmra.mrb[46].mxu0 %vm97_vm0, %v4696_v62 }
0x2fa3   :  { %v4775_v0 = vpop.f32.mrb[46].mxu0 }
0x2fa4   :  { %v4776_v49 = vadd.f32 %v4986_v63, %v4775_v0  ;;  %v5531_v1 = vpop.f32.mrb[47].mxu0 }
0x2fa6   :  { %v4779_v2 = vadd.f32 %v4776_v49, %v4613_v56 }
0x2fa8   :  { %v4782_v3 = vsel %vm2503_vm4, %v4779_v2, 0.0 }
0x2fa9   :  { %4783 = vadd.xlane.f32.xlu0 %v4782_v3 }
0x3036   :  { %v4784_v4 = vpop.xlane.xlu0 %4783 }
0x3037   :  { %v4785_v7 = vmul.f32 0.03125, %v4784_v4 }
0x3039   :  { %v4786_v8 = vsub.f32 %v4779_v2, %v4785_v7 }
0x303b   :  { %v4787_v51 = vmul.f32 %v4786_v8, %v4786_v8 }
0x303d   :  { %v4788_v10 = vsel %vm2503_vm4, %v4787_v51, 0.0 }
0x303e   :  { %4789 = vadd.xlane.f32.xlu0 %v4788_v10 }
0x30cb   :  { %v4790_v12 = vpop.xlane.xlu0 %4789 }
0x30cc   :  { %v4791_v13 = vmul.f32 0.03125, %v4790_v12 }
0x30ce   :  { %v4792_v9 = vadd.f32 1e-05, %v4791_v13 }
0x30d0   :  { %5777 = vrsqrt.f32 %v4792_v9 }
0x30da   :  { %v5778_v54 = vpop.eup %5777 }
0x30db   :  { %v4794_v11 = vmul.f32 %v5778_v54, %v4786_v8 }
0x30dd   :  { %v4799_v21 = vmul.f32 %v4988_v15, %v4794_v11 }
0x30df   :  { %v4804_v23 = vadd.f32 %v4989_v18, %v4799_v21 }
0x30e1   :  { %v4810_v26 = vmul.f32 %v4990_v22, %v4804_v23 }
0x30e3   :  { %v4811_v27 = vsel %vm2503_vm4, %v4810_v26, 0.0 }
0x30e4   :  { %4812 = vadd.xlane.f32.xlu1 %v4811_v27 }
0x30f5   :  { %4834 = vperm.xlu1 %5686, %v4831_v24  }
0x3171   :  { %v4813_v30 = vpop.xlane.xlu1 %4812 }
0x3172   :  { %v4819_v25 = vadd.f32 %v4991_v29, %v4813_v30 }
0x3174   :  { %4823 = vperm.xlu0 %5685, %v4819_v25  }
0x3175   :  { %v4835_v34 = vpop.permute.xlu1 %4834 }
0x3176   :  { %v4841_v36 = vmul.f32 %v4840_v33, %v4835_v34 }
0x31f3   :  { %v4824_v37 = vpop.permute.xlu0 %4823 }
0x31f4   :  { %v4830_v38 = vmul.f32 %v4829_v35, %v4824_v37 }
0x31f6   :  { %v4842_v40 = vadd.f32 %v4841_v36, %v4830_v38 }
0x31f8   :  { %v4848_v42 = vadd.f32 %v4992_v39, %v4842_v40 }
0x31fa   :  { %v4854_v20 = vmul.f32 %v4993_v41, %v4848_v42 }
0x31fc   :  { %v4856_v46 = vsel %vm4855_vm7, %v4854_v20, 0.0 }
0x31fd   :  { %4857 = vadd.xlane.f32.xlu1 %v4856_v46 }
0x328a   :  { %v4858_v19 = vpop.xlane.xlu1 %4857 }
0x328b   :  { %v4864_v17 = vadd.f32 %v4994_v43, %v4858_v19 }
0x328d   :  { %4866 = vst.msk [vmem:[%s6359_s5] sm:$0x3] %vm4865_vm8, %v4864_v17 }
0x328e   :  { %4871 = vsyncpa [#allocation3], 1 }
0x328f   :  { %4872 = vsyncpa [#allocation5], 1 }

</bundles_post_ra>
